<compile_context>
chip_gen: v5e
topology: v5e:2x2
jax: 0.10.0
libtpu: 0.0.40
codegen_flags: <defaults>
</compile_context>

<pallas_src>
import functools
import math

import jax
import jax.numpy as jnp
from jax.experimental import pallas as pl
from jax.experimental.pallas import tpu as pltpu


# ------------------------------- fused kernel ------------------------------- #

def _decoupled_head_kernel(x_ref, w0_ref, s0_ref, w1_ref, s1_ref, w2_ref,
                           b2_ref, o_ref, xp_s, h1p_s):
    """Fused bbox+cls head for one batch element.

    x_ref:  (1, H, W, C)      bf16 input (NHWC)
    w0_ref: (9*C, 2C)   bf16  layer-0 im2col weight (BN scale folded)
    s0_ref: (1, 2C)     f32   layer-0 BN shift
    w1_ref: (9*2C, 2C)  bf16  layer-1 block-diagonal im2col weight
    s1_ref: (1, 2C)     f32   layer-1 BN shift
    w2_ref: (2C, COpad) bf16  layer-2 1x1 weight (zero-padded to 128 lanes)
    b2_ref: (1, COpad)  f32   layer-2 bias (zero-padded)
    o_ref:  (1, H*W, COpad)   f32 lane-dense output
    xp_s:   (H+2, W+2, C)  f32 VMEM scratch (padded layer-0 input)
    h1p_s:  (H+2, W+2, 2C) f32 VMEM scratch (padded layer-1 input)
    """
    Hp, Wp, _ = xp_s.shape
    H, W = Hp - 2, Wp - 2
    HW = H * W
    C2 = h1p_s.shape[-1]

    def conv3x3_shift_relu(pad_ref, w_r, s_r):
        xp = pad_ref[...]                                      # (H+2, W+2, Cin)
        taps = []
        for dy in range(3):
            for dx in range(3):
                taps.append(xp[dy:dy + H, dx:dx + W, :].reshape(HW, -1))
        patches = jnp.concatenate(taps, axis=-1)               # (HW, 9*Cin) im2col
        acc = jnp.dot(patches.astype(w_r.dtype), w_r[...],     # one MXU matmul
                      preferred_element_type=jnp.float32)
        return jnp.maximum(acc + s_r[...], 0.0)                # BN shift + ReLU (f32)

    # ---- layer 0 (both branches fused along Cout) ----
    xp_s[...] = jnp.zeros_like(xp_s)                           # zero border ("same" pad)
    xp_s[1:H + 1, 1:W + 1, :] = x_ref[0].astype(xp_s.dtype)
    h0 = conv3x3_shift_relu(xp_s, w0_ref, s0_ref)              # (HW, 2C) f32

    # ---- layer 1 (block-diagonal: each branch sees only its own features) ----
    h1p_s[...] = jnp.zeros_like(h1p_s)
    h1p_s[1:H + 1, 1:W + 1, :] = h0.reshape(H, W, C2).astype(h1p_s.dtype)
    h1 = conv3x3_shift_relu(h1p_s, w1_ref, s1_ref)             # (HW, 2C) f32

    # ---- layer 2: 1x1 conv + bias, lane-dense store ----
    y = jnp.dot(h1.astype(w2_ref.dtype), w2_ref[...],
                preferred_element_type=jnp.float32) + b2_ref[...]
    o_ref[0] = y.astype(o_ref.dtype)                           # (HW, 128) unmasked vst


# ------------------------------ wrapper / call ------------------------------ #

@functools.partial(jax.jit, static_argnames=("num_outputs", "porting"))
def decoupled_head_forward(x_nchw, folded, *, num_outputs, porting=False):
    N, C, H, W = x_nchw.shape
    C2 = 2 * C
    HW = H * W
    co_pad = folded["w2"].shape[-1]

    x = jnp.transpose(x_nchw, (0, 2, 3, 1)).astype(jnp.bfloat16)   # NCHW -> NHWC, bf16

    out = pl.pallas_call(
        _decoupled_head_kernel,
        out_shape=jax.ShapeDtypeStruct((N, HW, co_pad), jnp.float32),
        grid=(N,),
        in_specs=[
            pl.BlockSpec((1, H, W, C), lambda n: (n, 0, 0, 0)),
            pl.BlockSpec((9 * C, C2), lambda n: (0, 0)),
            pl.BlockSpec((1, C2), lambda n: (0, 0)),
            pl.BlockSpec((9 * C2, C2), lambda n: (0, 0)),
            pl.BlockSpec((1, C2), lambda n: (0, 0)),
            pl.BlockSpec((C2, co_pad), lambda n: (0, 0)),
            pl.BlockSpec((1, co_pad), lambda n: (0, 0)),
        ],
        out_specs=pl.BlockSpec((1, HW, co_pad), lambda n: (n, 0, 0)),
        scratch_shapes=[
            pltpu.VMEM((H + 2, W + 2, C), jnp.float32),   # padded layer-0 input
            pltpu.VMEM((H + 2, W + 2, C2), jnp.float32),  # padded layer-1 input
        ],
        compiler_params=pltpu.CompilerParams(dimension_semantics=("parallel",)),
    )(x, folded["w0"], folded["s0"], folded["w1"], folded["s1"],
      folded["w2"], folded["b2"])

    out = out[:, :, :num_outputs].reshape(N, H, W, num_outputs)
    out = jnp.transpose(out, (0, 3, 1, 2))                     # NHWC -> NCHW
    if porting:
        return out[:, :4], jax.nn.sigmoid(out[:, 4:])
    return out


# ------------------------------ parameter setup ----------------------------- #

def _bn_fold(gamma, beta, mean, var, eps=1e-5):
    scale = gamma / jnp.sqrt(var + eps)
    shift = beta - mean * scale
    return scale, shift


def _convmodule_params(key, c_in, c_out):
    k_w, k_g, k_b, k_m, k_v = jax.random.split(key, 5)
    w = jax.random.normal(k_w, (3, 3, c_in, c_out), jnp.float32) * 0.05  # HWIO
    gamma = 1.0 + 0.1 * jax.random.normal(k_g, (c_out,), jnp.float32)
    beta = 0.1 * jax.random.normal(k_b, (c_out,), jnp.float32)
    mean = 0.1 * jax.random.normal(k_m, (c_out,), jnp.float32)
    var = 1.0 + 0.1 * jnp.abs(jax.random.normal(k_v, (c_out,), jnp.float32))
    scale, shift = _bn_fold(gamma, beta, mean, var)
    return {"w": w, "scale": scale, "shift": shift}


def make_decoupled_head_params(key, in_channels, nc=80, stride=8):
    keys = jax.random.split(key, 6)
    cls_bias_val = math.log(5.0 / nc / (640.0 / stride) ** 2)
    return {
        "bbox": {
            "m0": _convmodule_params(keys[0], in_channels, in_channels),
            "m1": _convmodule_params(keys[1], in_channels, in_channels),
            "w2": jax.random.normal(keys[2], (in_channels, 4), jnp.float32) * 0.05,
            "b2": jnp.ones((4,), jnp.float32),                 # bias_init: 1.0
        },
        "cls": {
            "m0": _convmodule_params(keys[3], in_channels, in_channels),
            "m1": _convmodule_params(keys[4], in_channels, in_channels),
            "w2": jax.random.normal(keys[5], (in_channels, nc), jnp.float32) * 0.05,
            "b2": jnp.full((nc,), cls_bias_val, jnp.float32),  # bias_init
        },
    }


def fold_head_params(params, in_channels, nc):
    """Fold BN scale into weights, fuse branches, reshape to im2col layout."""
    C = in_channels
    C2 = 2 * C
    co = 4 + nc
    co_pad = ((co + 127) // 128) * 128        # lane-dense final store

    def wfold(m):  # fold BN scale along Cout
        return m["w"] * m["scale"]

    b, c = params["bbox"], params["cls"]

    # layer 0: both branches read x -> concat along Cout
    w0 = jnp.concatenate([wfold(b["m0"]), wfold(c["m0"])], axis=-1)     # (3,3,C,2C)
    s0 = jnp.concatenate([b["m0"]["shift"], c["m0"]["shift"]])          # (2C,)

    # layer 1: block-diagonal (branch-private features)
    w1 = jnp.zeros((3, 3, C2, C2), jnp.float32)
    w1 = w1.at[:, :, :C, :C].set(wfold(b["m1"]))
    w1 = w1.at[:, :, C:, C:].set(wfold(c["m1"]))
    s1 = jnp.concatenate([b["m1"]["shift"], c["m1"]["shift"]])

    # layer 2: 1x1 conv, block layout, zero-padded to 128 output lanes
    w2 = jnp.zeros((C2, co_pad), jnp.float32)
    w2 = w2.at[:C, :4].set(b["w2"])
    w2 = w2.at[C:, 4:co].set(c["w2"])
    b2 = jnp.zeros((co_pad,), jnp.float32)
    b2 = b2.at[:4].set(b["b2"])
    b2 = b2.at[4:co].set(c["b2"])

    return {
        "w0": w0.reshape(9 * C, C2).astype(jnp.bfloat16),
        "s0": s0.reshape(1, C2).astype(jnp.float32),
        "w1": w1.reshape(9 * C2, C2).astype(jnp.bfloat16),
        "s1": s1.reshape(1, C2).astype(jnp.float32),
        "w2": w2.astype(jnp.bfloat16),
        "b2": b2.reshape(1, co_pad).astype(jnp.float32),
    }


# ------------------------------ reference (pure JAX) ------------------------ #

def _ref_conv3x3_bn_relu(x, w, scale, shift):
    y = jax.lax.conv_general_dilated(
        x, w, window_strides=(1, 1), padding="SAME",
        dimension_numbers=("NHWC", "HWIO", "NHWC"))
    return jnp.maximum(y * scale + shift, 0.0)


def decoupled_head_ref(x_nchw, params):
    x = jnp.transpose(x_nchw, (0, 2, 3, 1))

    def branch(h, p):
        h = _ref_conv3x3_bn_relu(h, p["m0"]["w"], p["m0"]["scale"], p["m0"]["shift"])
        h = _ref_conv3x3_bn_relu(h, p["m1"]["w"], p["m1"]["scale"], p["m1"]["shift"])
        return jnp.einsum("nhwc,cd->nhwd", h, p["w2"]) + p["b2"]

    out = jnp.concatenate([branch(x, params["bbox"]), branch(x, params["cls"])],
                          axis=-1)
    return jnp.transpose(out, (0, 3, 1, 2))


# ----------------------------------- main ----------------------------------- #

if __name__ == "__main__":
    key = jax.random.PRNGKey(0)
    k_param, k_x = jax.random.split(key)

    N, C, H, W = 2, 32, 16, 16       # small shapes; in_channels=32
    nc, stride = 8, 8                # small class count for a small head

    params = make_decoupled_head_params(k_param, in_channels=C, nc=nc, stride=stride)
    folded = fold_head_params(params, in_channels=C, nc=nc)
    x = jax.random.normal(k_x, (N, C, H, W), jnp.float32)   # NCHW like PyTorch

    out = decoupled_head_forward(x, folded, num_outputs=4 + nc)
    out = jax.block_until_ready(out)
    assert out.shape == (N, 4 + nc, H, W), out.shape

    ref = jax.block_until_ready(decoupled_head_ref(x, params))
    max_err = jnp.max(jnp.abs(out - ref))
    # bf16 MXU operands vs f32 reference -> loosened tolerance
    assert jnp.allclose(out, ref, atol=5e-2, rtol=5e-2), f"max abs err {max_err}"

    print("KERNEL_OK")
</pallas_src>

<mosaic_0001>
module attributes {stable_mosaic.version = 11 : i64} {
  func.func @_decoupled_head_kernel(%arg0: i32, %arg1: memref<1x16x16x32xbf16, #tpu.memory_space<vmem>>, %arg2: memref<288x64xbf16, #tpu.memory_space<vmem>>, %arg3: memref<1x64xf32, #tpu.memory_space<vmem>>, %arg4: memref<576x64xbf16, #tpu.memory_space<vmem>>, %arg5: memref<1x64xf32, #tpu.memory_space<vmem>>, %arg6: memref<64x128xbf16, #tpu.memory_space<vmem>>, %arg7: memref<1x128xf32, #tpu.memory_space<vmem>>, %arg8: memref<1x256x128xf32, #tpu.memory_space<vmem>>, %arg9: memref<18x18x32xf32, #tpu.memory_space<vmem>>, %arg10: memref<18x18x64xf32, #tpu.memory_space<vmem>>) attributes {dimension_semantics = [#tpu.dimension_semantics<parallel>], iteration_bounds = array<i64: 2>, scalar_prefetch = 0 : i64, scratch_operands = 2 : i64, tpu.core_type = #tpu.core_type<tc>, window_params = [{transform_indices = @transform_0, window_bounds = array<i64: 1, 16, 16, 32>}, {pipeline_mode = #tpu.pipeline_mode<synchronous>, transform_indices = @transform_1, window_bounds = array<i64: 288, 64>}, {pipeline_mode = #tpu.pipeline_mode<synchronous>, transform_indices = @transform_2, window_bounds = array<i64: 1, 64>}, {pipeline_mode = #tpu.pipeline_mode<synchronous>, transform_indices = @transform_3, window_bounds = array<i64: 576, 64>}, {pipeline_mode = #tpu.pipeline_mode<synchronous>, transform_indices = @transform_4, window_bounds = array<i64: 1, 64>}, {pipeline_mode = #tpu.pipeline_mode<synchronous>, transform_indices = @transform_5, window_bounds = array<i64: 64, 128>}, {pipeline_mode = #tpu.pipeline_mode<synchronous>, transform_indices = @transform_6, window_bounds = array<i64: 1, 128>}, {transform_indices = @transform_7, window_bounds = array<i64: 1, 256, 128>}]} {
    %cst = arith.constant 0.000000e+00 : f32
    %0 = vector.broadcast %cst : f32 to vector<18x18x32xf32>
    %c0 = arith.constant 0 : index
    %c0_0 = arith.constant 0 : index
    %c0_1 = arith.constant 0 : index
    %1 = vector.load %arg9[%c0, %c0_0, %c0_1] : memref<18x18x32xf32, #tpu.memory_space<vmem>>, vector<18x18x32xf32>
    tpu.vector_store %arg9[%c0, %c0_0, %c0_1], %0 {strides = array<i32>} : memref<18x18x32xf32, #tpu.memory_space<vmem>>, vector<18x18x32xf32>,
    %c0_2 = arith.constant 0 : index
    %c0_3 = arith.constant 0 : index
    %c0_4 = arith.constant 0 : index
    %c0_5 = arith.constant 0 : index
    %2 = vector.load %arg1[%c0_2, %c0_3, %c0_4, %c0_5] : memref<1x16x16x32xbf16, #tpu.memory_space<vmem>>, vector<1x16x16x32xbf16>
    %3 = vector.shape_cast %2 : vector<1x16x16x32xbf16> to vector<16x16x32xbf16>
    %4 = arith.extf %3 : vector<16x16x32xbf16> to vector<16x16x32xf32>
    %c1 = arith.constant 1 : index
    %c1_6 = arith.constant 1 : index
    %c0_7 = arith.constant 0 : index
    %5 = vector.load %arg9[%c1, %c1_6, %c0_7] : memref<18x18x32xf32, #tpu.memory_space<vmem>>, vector<16x16x32xf32>
    tpu.vector_store %arg9[%c1, %c1_6, %c0_7], %4 {strides = array<i32>} : memref<18x18x32xf32, #tpu.memory_space<vmem>>, vector<16x16x32xf32>,
    %c0_8 = arith.constant 0 : index
    %c0_9 = arith.constant 0 : index
    %c0_10 = arith.constant 0 : index
    %6 = vector.load %arg9[%c0_8, %c0_9, %c0_10] : memref<18x18x32xf32, #tpu.memory_space<vmem>>, vector<18x18x32xf32>
    %7 = vector.extract_strided_slice %6 {offsets = [0, 0, 0], sizes = [16, 16, 32], strides = [1, 1, 1]} : vector<18x18x32xf32> to vector<16x16x32xf32>
    %8 = vector.shape_cast %7 : vector<16x16x32xf32> to vector<256x32xf32>
    %9 = vector.extract_strided_slice %6 {offsets = [0, 1, 0], sizes = [16, 16, 32], strides = [1, 1, 1]} : vector<18x18x32xf32> to vector<16x16x32xf32>
    %10 = vector.shape_cast %9 : vector<16x16x32xf32> to vector<256x32xf32>
    %11 = vector.extract_strided_slice %6 {offsets = [0, 2, 0], sizes = [16, 16, 32], strides = [1, 1, 1]} : vector<18x18x32xf32> to vector<16x16x32xf32>
    %12 = vector.shape_cast %11 : vector<16x16x32xf32> to vector<256x32xf32>
    %13 = vector.extract_strided_slice %6 {offsets = [1, 0, 0], sizes = [16, 16, 32], strides = [1, 1, 1]} : vector<18x18x32xf32> to vector<16x16x32xf32>
    %14 = vector.shape_cast %13 : vector<16x16x32xf32> to vector<256x32xf32>
    %15 = vector.extract_strided_slice %6 {offsets = [1, 1, 0], sizes = [16, 16, 32], strides = [1, 1, 1]} : vector<18x18x32xf32> to vector<16x16x32xf32>
    %16 = vector.shape_cast %15 : vector<16x16x32xf32> to vector<256x32xf32>
    %17 = vector.extract_strided_slice %6 {offsets = [1, 2, 0], sizes = [16, 16, 32], strides = [1, 1, 1]} : vector<18x18x32xf32> to vector<16x16x32xf32>
    %18 = vector.shape_cast %17 : vector<16x16x32xf32> to vector<256x32xf32>
    %19 = vector.extract_strided_slice %6 {offsets = [2, 0, 0], sizes = [16, 16, 32], strides = [1, 1, 1]} : vector<18x18x32xf32> to vector<16x16x32xf32>
    %20 = vector.shape_cast %19 : vector<16x16x32xf32> to vector<256x32xf32>
    %21 = vector.extract_strided_slice %6 {offsets = [2, 1, 0], sizes = [16, 16, 32], strides = [1, 1, 1]} : vector<18x18x32xf32> to vector<16x16x32xf32>
    %22 = vector.shape_cast %21 : vector<16x16x32xf32> to vector<256x32xf32>
    %23 = vector.extract_strided_slice %6 {offsets = [2, 2, 0], sizes = [16, 16, 32], strides = [1, 1, 1]} : vector<18x18x32xf32> to vector<16x16x32xf32>
    %24 = vector.shape_cast %23 : vector<16x16x32xf32> to vector<256x32xf32>
    %25 = tpu.concatenate %8, %10, %12, %14, %16, %18, %20, %22, %24 in 1 : vector<256x32xf32>, vector<256x32xf32>, vector<256x32xf32>, vector<256x32xf32>, vector<256x32xf32>, vector<256x32xf32>, vector<256x32xf32>, vector<256x32xf32>, vector<256x32xf32> -> vector<256x288xf32>
    %26 = arith.truncf %25 : vector<256x288xf32> to vector<256x288xbf16>
    %c0_11 = arith.constant 0 : index
    %c0_12 = arith.constant 0 : index
    %27 = vector.load %arg2[%c0_11, %c0_12] : memref<288x64xbf16, #tpu.memory_space<vmem>>, vector<288x64xbf16>
    %cst_13 = arith.constant dense<0.000000e+00> : vector<256x64xf32>
    %28 = tpu.matmul %26, %27, %cst_13 {dimension_numbers = #tpu.dot_dimension_numbers<[1], [0], [0], [1], [0, 0, 1, 1], [], []>} : vector<256x288xbf16>, vector<288x64xbf16>, vector<256x64xf32> -> vector<256x64xf32>
    %c0_14 = arith.constant 0 : index
    %c0_15 = arith.constant 0 : index
    %29 = vector.load %arg3[%c0_14, %c0_15] : memref<1x64xf32, #tpu.memory_space<vmem>>, vector<1x64xf32>
    %30 = vector.broadcast %29 : vector<1x64xf32> to vector<256x64xf32>
    %31 = arith.addf %28, %30 : vector<256x64xf32>
    %cst_16 = arith.constant 0.000000e+00 : f32
    %32 = vector.broadcast %cst_16 : f32 to vector<256x64xf32>
    %33 = arith.maximumf %31, %32 : vector<256x64xf32>
    %cst_17 = arith.constant 0.000000e+00 : f32
    %34 = vector.broadcast %cst_17 : f32 to vector<18x18x64xf32>
    %c0_18 = arith.constant 0 : index
    %c0_19 = arith.constant 0 : index
    %c0_20 = arith.constant 0 : index
    %35 = vector.load %arg10[%c0_18, %c0_19, %c0_20] : memref<18x18x64xf32, #tpu.memory_space<vmem>>, vector<18x18x64xf32>
    tpu.vector_store %arg10[%c0_18, %c0_19, %c0_20], %34 {strides = array<i32>} : memref<18x18x64xf32, #tpu.memory_space<vmem>>, vector<18x18x64xf32>,
    %36 = vector.shape_cast %33 : vector<256x64xf32> to vector<16x16x64xf32>
    %c1_21 = arith.constant 1 : index
    %c1_22 = arith.constant 1 : index
    %c0_23 = arith.constant 0 : index
    %37 = vector.load %arg10[%c1_21, %c1_22, %c0_23] : memref<18x18x64xf32, #tpu.memory_space<vmem>>, vector<16x16x64xf32>
    tpu.vector_store %arg10[%c1_21, %c1_22, %c0_23], %36 {strides = array<i32>} : memref<18x18x64xf32, #tpu.memory_space<vmem>>, vector<16x16x64xf32>,
    %c0_24 = arith.constant 0 : index
    %c0_25 = arith.constant 0 : index
    %c0_26 = arith.constant 0 : index
    %38 = vector.load %arg10[%c0_24, %c0_25, %c0_26] : memref<18x18x64xf32, #tpu.memory_space<vmem>>, vector<18x18x64xf32>
    %39 = vector.extract_strided_slice %38 {offsets = [0, 0, 0], sizes = [16, 16, 64], strides = [1, 1, 1]} : vector<18x18x64xf32> to vector<16x16x64xf32>
    %40 = vector.shape_cast %39 : vector<16x16x64xf32> to vector<256x64xf32>
    %41 = vector.extract_strided_slice %38 {offsets = [0, 1, 0], sizes = [16, 16, 64], strides = [1, 1, 1]} : vector<18x18x64xf32> to vector<16x16x64xf32>
    %42 = vector.shape_cast %41 : vector<16x16x64xf32> to vector<256x64xf32>
    %43 = vector.extract_strided_slice %38 {offsets = [0, 2, 0], sizes = [16, 16, 64], strides = [1, 1, 1]} : vector<18x18x64xf32> to vector<16x16x64xf32>
    %44 = vector.shape_cast %43 : vector<16x16x64xf32> to vector<256x64xf32>
    %45 = vector.extract_strided_slice %38 {offsets = [1, 0, 0], sizes = [16, 16, 64], strides = [1, 1, 1]} : vector<18x18x64xf32> to vector<16x16x64xf32>
    %46 = vector.shape_cast %45 : vector<16x16x64xf32> to vector<256x64xf32>
    %47 = vector.extract_strided_slice %38 {offsets = [1, 1, 0], sizes = [16, 16, 64], strides = [1, 1, 1]} : vector<18x18x64xf32> to vector<16x16x64xf32>
    %48 = vector.shape_cast %47 : vector<16x16x64xf32> to vector<256x64xf32>
    %49 = vector.extract_strided_slice %38 {offsets = [1, 2, 0], sizes = [16, 16, 64], strides = [1, 1, 1]} : vector<18x18x64xf32> to vector<16x16x64xf32>
    %50 = vector.shape_cast %49 : vector<16x16x64xf32> to vector<256x64xf32>
    %51 = vector.extract_strided_slice %38 {offsets = [2, 0, 0], sizes = [16, 16, 64], strides = [1, 1, 1]} : vector<18x18x64xf32> to vector<16x16x64xf32>
    %52 = vector.shape_cast %51 : vector<16x16x64xf32> to vector<256x64xf32>
    %53 = vector.extract_strided_slice %38 {offsets = [2, 1, 0], sizes = [16, 16, 64], strides = [1, 1, 1]} : vector<18x18x64xf32> to vector<16x16x64xf32>
    %54 = vector.shape_cast %53 : vector<16x16x64xf32> to vector<256x64xf32>
    %55 = vector.extract_strided_slice %38 {offsets = [2, 2, 0], sizes = [16, 16, 64], strides = [1, 1, 1]} : vector<18x18x64xf32> to vector<16x16x64xf32>
    %56 = vector.shape_cast %55 : vector<16x16x64xf32> to vector<256x64xf32>
    %57 = tpu.concatenate %40, %42, %44, %46, %48, %50, %52, %54, %56 in 1 : vector<256x64xf32>, vector<256x64xf32>, vector<256x64xf32>, vector<256x64xf32>, vector<256x64xf32>, vector<256x64xf32>, vector<256x64xf32>, vector<256x64xf32>, vector<256x64xf32> -> vector<256x576xf32>
    %58 = arith.truncf %57 : vector<256x576xf32> to vector<256x576xbf16>
    %c0_27 = arith.constant 0 : index
    %c0_28 = arith.constant 0 : index
    %59 = vector.load %arg4[%c0_27, %c0_28] : memref<576x64xbf16, #tpu.memory_space<vmem>>, vector<576x64xbf16>
    %cst_29 = arith.constant dense<0.000000e+00> : vector<256x64xf32>
    %60 = tpu.matmul %58, %59, %cst_29 {dimension_numbers = #tpu.dot_dimension_numbers<[1], [0], [0], [1], [0, 0, 1, 1], [], []>} : vector<256x576xbf16>, vector<576x64xbf16>, vector<256x64xf32> -> vector<256x64xf32>
    %c0_30 = arith.constant 0 : index
    %c0_31 = arith.constant 0 : index
    %61 = vector.load %arg5[%c0_30, %c0_31] : memref<1x64xf32, #tpu.memory_space<vmem>>, vector<1x64xf32>
    %62 = vector.broadcast %61 : vector<1x64xf32> to vector<256x64xf32>
    %63 = arith.addf %60, %62 : vector<256x64xf32>
    %cst_32 = arith.constant 0.000000e+00 : f32
    %64 = vector.broadcast %cst_32 : f32 to vector<256x64xf32>
    %65 = arith.maximumf %63, %64 : vector<256x64xf32>
    %66 = arith.truncf %65 : vector<256x64xf32> to vector<256x64xbf16>
    %c0_33 = arith.constant 0 : index
    %c0_34 = arith.constant 0 : index
    %67 = vector.load %arg6[%c0_33, %c0_34] : memref<64x128xbf16, #tpu.memory_space<vmem>>, vector<64x128xbf16>
    %cst_35 = arith.constant dense<0.000000e+00> : vector<256x128xf32>
    %68 = tpu.matmul %66, %67, %cst_35 {dimension_numbers = #tpu.dot_dimension_numbers<[1], [0], [0], [1], [0, 0, 1, 1], [], []>} : vector<256x64xbf16>, vector<64x128xbf16>, vector<256x128xf32> -> vector<256x128xf32>
    %c0_36 = arith.constant 0 : index
    %c0_37 = arith.constant 0 : index
    %69 = vector.load %arg7[%c0_36, %c0_37] : memref<1x128xf32, #tpu.memory_space<vmem>>, vector<1x128xf32>
    %70 = vector.broadcast %69 : vector<1x128xf32> to vector<256x128xf32>
    %71 = arith.addf %68, %70 : vector<256x128xf32>
    %c0_38 = arith.constant 0 : index
    %c0_39 = arith.constant 0 : index
    %c0_40 = arith.constant 0 : index
    %72 = vector.load %arg8[%c0_38, %c0_39, %c0_40] : memref<1x256x128xf32, #tpu.memory_space<vmem>>, vector<1x256x128xf32>
    %73 = vector.shape_cast %72 : vector<1x256x128xf32> to vector<256x128xf32>
    %74 = vector.shape_cast %71 : vector<256x128xf32> to vector<1x256x128xf32>
    tpu.vector_store %arg8[%c0_38, %c0_39, %c0_40], %74 {strides = array<i32>} : memref<1x256x128xf32, #tpu.memory_space<vmem>>, vector<1x256x128xf32>,
    return
  }
  func.func @transform_0(%arg0: i32) -> (i32, i32, i32, i32) {
    %c0_i32 = arith.constant 0 : i32
    %c0_i32_0 = arith.constant 0 : i32
    %c0_i32_1 = arith.constant 0 : i32
    %c0_i32_2 = arith.constant 0 : i32
    return %arg0, %c0_i32, %c0_i32_0, %c0_i32_1 : i32, i32, i32, i32
  }
  func.func @transform_1(%arg0: i32) -> (i32, i32) {
    %c0_i32 = arith.constant 0 : i32
    %c0_i32_0 = arith.constant 0 : i32
    %c0_i32_1 = arith.constant 0 : i32
    return %c0_i32, %c0_i32_0 : i32, i32
  }
  func.func @transform_2(%arg0: i32) -> (i32, i32) {
    %c0_i32 = arith.constant 0 : i32
    %c0_i32_0 = arith.constant 0 : i32
    %c0_i32_1 = arith.constant 0 : i32
    return %c0_i32, %c0_i32_0 : i32, i32
  }
  func.func @transform_3(%arg0: i32) -> (i32, i32) {
    %c0_i32 = arith.constant 0 : i32
    %c0_i32_0 = arith.constant 0 : i32
    %c0_i32_1 = arith.constant 0 : i32
    return %c0_i32, %c0_i32_0 : i32, i32
  }
  func.func @transform_4(%arg0: i32) -> (i32, i32) {
    %c0_i32 = arith.constant 0 : i32
    %c0_i32_0 = arith.constant 0 : i32
    %c0_i32_1 = arith.constant 0 : i32
    return %c0_i32, %c0_i32_0 : i32, i32
  }
  func.func @transform_5(%arg0: i32) -> (i32, i32) {
    %c0_i32 = arith.constant 0 : i32
    %c0_i32_0 = arith.constant 0 : i32
    %c0_i32_1 = arith.constant 0 : i32
    return %c0_i32, %c0_i32_0 : i32, i32
  }
  func.func @transform_6(%arg0: i32) -> (i32, i32) {
    %c0_i32 = arith.constant 0 : i32
    %c0_i32_0 = arith.constant 0 : i32
    %c0_i32_1 = arith.constant 0 : i32
    return %c0_i32, %c0_i32_0 : i32, i32
  }
  func.func @transform_7(%arg0: i32) -> (i32, i32, i32) {
    %c0_i32 = arith.constant 0 : i32
    %c0_i32_0 = arith.constant 0 : i32
    %c0_i32_1 = arith.constant 0 : i32
    return %arg0, %c0_i32, %c0_i32_0 : i32, i32, i32
  }
}

</mosaic_0001>

<bundles_post_ra>
// kernel: decoupled_head_forward.1
= control target key start
LH: loop header
LB: loop body
LE: loop exit
PB: predicated region body
PF: predicated region fallthrough
CT: control target
= control target key end

     0   :  { %s5383_s24 = smov 0   ;;  %s8354_s0 = inlined_call_operand.vmem [shape: bf16[2,16,16,32], index: 0, kind: input, shape index: {}]   ;;  %s8355_s1 = inlined_call_operand.vmem [shape: bf16[288,64], index: 1, kind: input, shape index: {}]   ;;  %s8356_s2 = inlined_call_operand.vmem [shape: f32[1,64], index: 2, kind: input, shape index: {}]   ;;  %s8357_s3 = inlined_call_operand.vmem [shape: bf16[576,64], index: 3, kind: input, shape index: {}]   ;;  %s8358_s4 = inlined_call_operand.vmem [shape: f32[1,64], index: 4, kind: input, shape index: {}]   ;;  %s8359_s5 = inlined_call_operand.vmem [shape: bf16[64,128], index: 5, kind: input, shape index: {}]   ;;  %s8360_s6 = inlined_call_operand.vmem [shape: f32[1,128], index: 6, kind: input, shape index: {}]   ;;  %s8361_s7 = inlined_call_operand.vmem [shape: f32[2,256,128], index: 7, kind: output, shape index: {}]  }
   0x1 LB: > { %s4103_s25 = sadd.s32 4294967295, %s5337_s24   ;;  %p4107_p0 = scmp.ge.s32.totalorder %s5337_s24, 1  ;;  %s5337_s24 = sphi %s5383_s24, %s17_s24  }
   0x2   : > { %p237_p1 = scmp.lt.s32.totalorder %s5337_s24, 3 }
   0x4   : > { %p238_p2 = pnand %p4107_p0, %p237_p1 }
   0x6   : > { %241 = sbr.rel (%p238_p2) target bundleno = 1471 (0x5bf), region = 48 }
   0xb   : > { %vm280_vm0 = vcmask 261120   ;;  %vm283_vm1 = vcmask 254976   ;;  %v8362_v0 = vmov 0.0   ;;  %vm535_vm2 = vcmask 1046528   ;;  %s5340_s26 = smov 32   ;;  %p269_p3 = scmp.lt.s32.totalorder %s4103_s25, 1 }
   0xc   : > { %281 = vst.msk [vmem:[#allocation2] sm:$0xff] %vm280_vm0, %v8362_v0  ;;  %vm616_vm3 = vcmask 1045504   ;;  %s5341_s27 = smov 64   ;;  %s5342_s9 = smov 96   ;;  %vm1395_vm4 = vcmask 523264   ;;  %vm1428_vm5 = vcmask 785408  }
   0xd   : > { %282 = vst.msk [vmem:[#allocation2 + $0x8] sm:$0xff] %vm280_vm0, %v8362_v0  ;;  %s8637_s25 = smov (!%p269_p3, %s4103_s25), 1  ;;  %vm2102_vm6 = vcmask 517120  }
   0xe   : > { %284 = vst.msk [vmem:[#allocation2 + $0x10] sm:$0x3] %vm283_vm1, %v8362_v0  ;;  %s4394_s28 = sshll.u32 %s8637_s25, 7  ;;  %s4395_s18 = sshll.u32 %s8637_s25, 8 }
   0xf   : > { %285 = vst.msk [vmem:[#allocation2 + $0x18] sm:$0xff] %vm280_vm0, %v8362_v0  ;;  %s5505_s8 = scalar_lea.vmem %s8354_s0, %s4394_s28  ;;  %s8258_s23 = scalar_lea.vmem %s8361_s7, %s4395_s18 }
  0x10   : > { %286 = vst.msk [vmem:[#allocation2 + $0x20] sm:$0xff] %vm280_vm0, %v8362_v0  ;;  %v4455_v16 = vld [vmem:[%s5505_s8] sm:$0xff]   ;;  %v4518_v17 = vld [vmem:[%s5505_s8 + $0x8] sm:$0xff]   ;;  %v4519_v20 = vld [vmem:[%s5505_s8 + $0x10] sm:$0xff]  }
  0x11   : > { %287 = vst.msk [vmem:[#allocation2 + $0x28] sm:$0x3] %vm283_vm1, %v8362_v0  ;;  %v4456_v18 = vunpack.c.l.bf16 %v4455_v16  ;;  %v4457_v19 = vunpack.c.h.bf16 %v4455_v16  ;;  %v4460_v21 = vunpack.c.l.bf16 %v4518_v17  ;;  %v4461_v22 = vunpack.c.h.bf16 %v4518_v17  ;;  %v4520_v23 = vld [vmem:[%s5505_s8 + $0x18] sm:$0xff]   ;;  %v4521_v26 = vld [vmem:[%s5505_s8 + $0x20] sm:$0xff]   ;;  %v4522_v30 = vld [vmem:[%s5505_s8 + $0x28] sm:$0xff]  }
  0x12   : > { %288 = vst.msk [vmem:[#allocation2 + $0x30] sm:$0xff] %vm280_vm0, %v8362_v0  ;;  %v4464_v24 = vunpack.c.l.bf16 %v4519_v20  ;;  %v4465_v25 = vunpack.c.h.bf16 %v4519_v20  ;;  %v4468_v27 = vunpack.c.l.bf16 %v4520_v23  ;;  %v4469_v28 = vunpack.c.h.bf16 %v4520_v23 }
  0x13   : > { %v5405_v1 = vld [vmem:[#allocation2] sm:$0xff]  ;;  %289 = vst.msk [vmem:[#allocation2 + $0x38] sm:$0xff] %vm280_vm0, %v8362_v0  ;;  %v4472_v29 = vunpack.c.l.bf16 %v4521_v26  ;;  %v4473_v31 = vunpack.c.h.bf16 %v4521_v26  ;;  %v4476_v33 = vunpack.c.l.bf16 %v4522_v30  ;;  %v4477_v41 = vunpack.c.h.bf16 %v4522_v30 }
  0x14   : > { %v5409_v2 = vld [vmem:[#allocation2 + $0x8] sm:$0xff]  ;;  %v536_v3 = vrot.slane %v5405_v1, 1  ;;  %290 = vst.msk [vmem:[#allocation2 + $0x40] sm:$0x3] %vm283_vm1, %v8362_v0  ;;  %v617_v11 = vrot.slane %v5405_v1, 2 }
  0x15   : > { %v435_v4 = vld [vmem:[#allocation2 + $0x10] sm:$0x3]  ;;  %v537_v5 = vrot.slane %v5409_v2, 1  ;;  %291 = vst.msk [vmem:[#allocation2 + $0x48] sm:$0xff] %vm280_vm0, %v8362_v0  ;;  %v618_v12 = vrot.slane %v5409_v2, 2 }
  0x16   : > { %v539_v6 = vrot.slane %v435_v4, 1  ;;  %292 = vst.msk [vmem:[#allocation2 + $0x50] sm:$0xff] %vm280_vm0, %v8362_v0  ;;  %v620_v10 = vrot.slane %v435_v4, 2 }
  0x17   : > { %v538_v7 = vsel %vm535_vm2, %v536_v3, %v537_v5  ;;  %293 = vst.msk [vmem:[#allocation2 + $0x58] sm:$0x3] %vm283_vm1, %v8362_v0  ;;  %v619_v13 = vsel %vm616_vm3, %v617_v11, %v618_v12 }
  0x18   : > { %v540_v8 = vsel %vm535_vm2, %v537_v5, %v539_v6  ;;  %294 = vst.msk [vmem:[#allocation2 + $0x60] sm:$0xff] %vm280_vm0, %v8362_v0  ;;  %v621_v14 = vsel %vm616_vm3, %v618_v12, %v620_v10 }
  0x19   : > { %v4563_v9 = vpack.i.bf16 %v540_v8, %v538_v7  ;;  %295 = vst.msk [vmem:[#allocation2 + $0x68] sm:$0xff] %vm280_vm0, %v8362_v0  ;;  %v4568_v15 = vpack.i.bf16 %v621_v14, %v619_v13 }
  0x1a   : > { %296 = vst.msk [vmem:[#allocation2 + $0x70] sm:$0x3] %vm283_vm1, %v8362_v0 }
  0x1b   : > { %4564 = vrot.lane.b32.xlu0 %v4563_v9, %s5340_s26  ;;  %297 = vst.msk [vmem:[#allocation2 + $0x78] sm:$0xff] %vm280_vm0, %v8362_v0 }
  0x1c   : > { %298 = vst.msk [vmem:[#allocation2 + $0x80] sm:$0xff] %vm280_vm0, %v8362_v0 }
  0x1d   : > { %299 = vst.msk [vmem:[#allocation2 + $0x88] sm:$0x3] %vm283_vm1, %v8362_v0 }
  0x1e   : > { %300 = vst.msk [vmem:[#allocation2 + $0x90] sm:$0xff] %vm280_vm0, %v8362_v0 }
  0x1f   : > { %301 = vst.msk [vmem:[#allocation2 + $0x98] sm:$0xff] %vm280_vm0, %v8362_v0 }
  0x20   : > { %302 = vst.msk [vmem:[#allocation2 + $0xa0] sm:$0x3] %vm283_vm1, %v8362_v0 }
  0x21   : > { %303 = vst.msk [vmem:[#allocation2 + $0xa8] sm:$0xff] %vm280_vm0, %v8362_v0 }
  0x22   : > { %304 = vst.msk [vmem:[#allocation2 + $0xb0] sm:$0xff] %vm280_vm0, %v8362_v0 }
  0x23   : > { %305 = vst.msk [vmem:[#allocation2 + $0xb8] sm:$0x3] %vm283_vm1, %v8362_v0  ;;  %4569 = vrot.lane.b32.xlu0 %v4568_v15, %s5341_s27 }
  0x24   : > { %306 = vst.msk [vmem:[#allocation2 + $0xc0] sm:$0xff] %vm280_vm0, %v8362_v0 }
  0x25   : > { %307 = vst.msk [vmem:[#allocation2 + $0xc8] sm:$0xff] %vm280_vm0, %v8362_v0 }
  0x26   : > { %308 = vst.msk [vmem:[#allocation2 + $0xd0] sm:$0x3] %vm283_vm1, %v8362_v0 }
  0x27   : > { %309 = vst.msk [vmem:[#allocation2 + $0xd8] sm:$0xff] %vm280_vm0, %v8362_v0 }
  0x28   : > { %310 = vst.msk [vmem:[#allocation2 + $0xe0] sm:$0xff] %vm280_vm0, %v8362_v0 }
  0x29   : > { %311 = vst.msk [vmem:[#allocation2 + $0xe8] sm:$0x3] %vm283_vm1, %v8362_v0 }
  0x2a   : > { %312 = vst.msk [vmem:[#allocation2 + $0xf0] sm:$0xff] %vm280_vm0, %v8362_v0 }
  0x2b   : > { %313 = vst.msk [vmem:[#allocation2 + $0xf8] sm:$0xff] %vm280_vm0, %v8362_v0 }
  0x2c   : > { %314 = vst.msk [vmem:[#allocation2 + $0x100] sm:$0x3] %vm283_vm1, %v8362_v0 }
  0x2d   : > { %315 = vst.msk [vmem:[#allocation2 + $0x108] sm:$0xff] %vm280_vm0, %v8362_v0 }
  0x2e   : > { %316 = vst.msk [vmem:[#allocation2 + $0x110] sm:$0xff] %vm280_vm0, %v8362_v0 }
  0x2f   : > { %317 = vst.msk [vmem:[#allocation2 + $0x118] sm:$0x3] %vm283_vm1, %v8362_v0 }
  0x30   : > { %318 = vst.msk [vmem:[#allocation2 + $0x120] sm:$0xff] %vm280_vm0, %v8362_v0 }
  0x31   : > { %319 = vst.msk [vmem:[#allocation2 + $0x128] sm:$0xff] %vm280_vm0, %v8362_v0 }
  0x32   : > { %320 = vst.msk [vmem:[#allocation2 + $0x130] sm:$0x3] %vm283_vm1, %v8362_v0 }
  0x33   : > { %321 = vst.msk [vmem:[#allocation2 + $0x138] sm:$0xff] %vm280_vm0, %v8362_v0 }
  0x34   : > { %322 = vst.msk [vmem:[#allocation2 + $0x140] sm:$0xff] %vm280_vm0, %v8362_v0 }
  0x35   : > { %323 = vst.msk [vmem:[#allocation2 + $0x148] sm:$0x3] %vm283_vm1, %v8362_v0 }
  0x36   : > { %324 = vst.msk [vmem:[#allocation2 + $0x150] sm:$0xff] %vm280_vm0, %v8362_v0 }
  0x37   : > { %325 = vst.msk [vmem:[#allocation2 + $0x158] sm:$0xff] %vm280_vm0, %v8362_v0 }
  0x38   : > { %326 = vst.msk [vmem:[#allocation2 + $0x160] sm:$0x3] %vm283_vm1, %v8362_v0 }
  0x39   : > { %327 = vst.msk [vmem:[#allocation2 + $0x168] sm:$0xff] %vm280_vm0, %v8362_v0 }
  0x3a   : > { %328 = vst.msk [vmem:[#allocation2 + $0x170] sm:$0xff] %vm280_vm0, %v8362_v0 }
  0x3b   : > { %329 = vst.msk [vmem:[#allocation2 + $0x178] sm:$0x3] %vm283_vm1, %v8362_v0 }
  0x3c   : > { %330 = vst.msk [vmem:[#allocation2 + $0x180] sm:$0xff] %vm280_vm0, %v8362_v0 }
  0x3d   : > { %331 = vst.msk [vmem:[#allocation2 + $0x188] sm:$0xff] %vm280_vm0, %v8362_v0 }
  0x3e   : > { %332 = vst.msk [vmem:[#allocation2 + $0x190] sm:$0x3] %vm283_vm1, %v8362_v0 }
  0x3f   : > { %333 = vst.msk [vmem:[#allocation2 + $0x198] sm:$0xff] %vm280_vm0, %v8362_v0 }
  0x40   : > { %334 = vst.msk [vmem:[#allocation2 + $0x1a0] sm:$0xff] %vm280_vm0, %v8362_v0 }
  0x41   : > { %335 = vst.msk [vmem:[#allocation2 + $0x1a8] sm:$0x3] %vm283_vm1, %v8362_v0 }
  0x42   : > { %401 = vst.msk [vmem:[#allocation2 + $0x19] sm:$0xff] %vm280_vm0, %v4456_v18 }
  0x43   : > { %402 = vst.msk [vmem:[#allocation2 + $0x21] sm:$0xff] %vm280_vm0, %v4457_v19  ;;  %v4523_v19 = vld [vmem:[%s5505_s8 + $0x30] sm:$0xff]  }
  0x44   : > { %403 = vst.msk [vmem:[#allocation2 + $0x31] sm:$0xff] %vm280_vm0, %v4460_v21  ;;  %v4480_v30 = vunpack.c.l.bf16 %v4523_v19 }
  0x45   : > { %404 = vst.msk [vmem:[#allocation2 + $0x39] sm:$0xff] %vm280_vm0, %v4461_v22 }
  0x46   : > { %405 = vst.msk [vmem:[#allocation2 + $0x49] sm:$0xff] %vm280_vm0, %v4464_v24  ;;  %v4526_v24 = vld [vmem:[%s5505_s8 + $0x48] sm:$0xff]  }
  0x47   : > { %406 = vst.msk [vmem:[#allocation2 + $0x51] sm:$0xff] %vm280_vm0, %v4465_v25 }
  0x48   : > { %407 = vst.msk [vmem:[#allocation2 + $0x61] sm:$0xff] %vm280_vm0, %v4468_v27 }
  0x49   : > { %v5538_v32 = vld [vmem:[#allocation2 + $0x18] sm:$0xff]  ;;  %408 = vst.msk [vmem:[#allocation2 + $0x69] sm:$0xff] %vm280_vm0, %v4469_v28 }
  0x4a   : > { %v5541_v34 = vld [vmem:[#allocation2 + $0x20] sm:$0xff]  ;;  %v438_v35 = vld [vmem:[#allocation2 + $0x28] sm:$0x3]  ;;  %v541_v36 = vrot.slane %v5538_v32, 1  ;;  %409 = vst.msk [vmem:[#allocation2 + $0x79] sm:$0xff] %vm280_vm0, %v4472_v29  ;;  %v622_v48 = vrot.slane %v5538_v32, 2 }
  0x4b   : > { %v4573_v37 = vpack.i.bf16 %v5541_v34, %v5538_v32  ;;  %v542_v38 = vrot.slane %v5541_v34, 1  ;;  %v544_v39 = vrot.slane %v438_v35, 1  ;;  %v5548_v40 = vld [vmem:[#allocation2 + $0x30] sm:$0xff]  ;;  %410 = vst.msk [vmem:[#allocation2 + $0x81] sm:$0xff] %vm280_vm0, %v4473_v31  ;;  %v623_v49 = vrot.slane %v5541_v34, 2 }
  0x4c   : > { %v5551_v42 = vld [vmem:[#allocation2 + $0x38] sm:$0xff]  ;;  %v441_v43 = vld [vmem:[#allocation2 + $0x40] sm:$0x3]  ;;  %v546_v44 = vrot.slane %v5548_v40, 1  ;;  %411 = vst.msk [vmem:[#allocation2 + $0x91] sm:$0xff] %vm280_vm0, %v4476_v33  ;;  %v625_v55 = vrot.slane %v438_v35, 2  ;;  %v4481_v31 = vunpack.c.h.bf16 %v4523_v19  ;;  %v4492_v33 = vunpack.c.l.bf16 %v4526_v24 }
  0x4d   : > { %4574 = vrot.lane.b32.xlu1 %v4573_v37, %s5342_s9  ;;  %v547_v45 = vrot.slane %v5551_v42, 1  ;;  %v549_v46 = vrot.slane %v441_v43, 1  ;;  %v5556_v47 = vld [vmem:[#allocation2 + $0x48] sm:$0xff]  ;;  %v5562_v50 = vsel %vm535_vm2, %v541_v36, %v542_v38  ;;  %v5565_v51 = vsel %vm535_vm2, %v542_v38, %v544_v39  ;;  %412 = vst.msk [vmem:[#allocation2 + $0x99] sm:$0xff] %vm280_vm0, %v4477_v41 }
  0x4e   : > { %v5567_v52 = vld [vmem:[#allocation2 + $0x50] sm:$0xff]  ;;  %v444_v53 = vld [vmem:[#allocation2 + $0x58] sm:$0x3]  ;;  %v551_v54 = vrot.slane %v5556_v47, 1  ;;  %v4578_v61 = vpack.i.bf16 %v5565_v51, %v5562_v50  ;;  %v627_v62 = vrot.slane %v5548_v40, 2  ;;  %v628_v63 = vrot.slane %v5551_v42, 2 }
  0x4f   : > { %v5571_v56 = vsel %vm535_vm2, %v546_v44, %v547_v45  ;;  %v5574_v57 = vsel %vm535_vm2, %v547_v45, %v549_v46  ;;  %v552_v58 = vrot.slane %v5567_v52, 1  ;;  %v554_v59 = vrot.slane %v444_v53, 1  ;;  %v5596_v8 = vld [vmem:[#allocation2 + $0x60] sm:$0xff]  ;;  %413 = vst.msk [vmem:[#allocation2 + $0xa9] sm:$0xff] %vm280_vm0, %v4480_v30 }
  0x50   : > { %8438 = vst [vmem:[#allocation4_spill] sm:$0xff] %v5574_v57  ;;  %v5580_v60 = vpack.i.bf16 %v5574_v57, %v5571_v56  ;;  %v630_v3 = vrot.slane %v441_v43, 2  ;;  %v624_v6 = vsel %vm616_vm3, %v622_v48, %v623_v49  ;;  %v626_v7 = vsel %vm616_vm3, %v623_v49, %v625_v55  ;;  %v5598_v9 = vld [vmem:[#allocation2 + $0x68] sm:$0xff]  ;;  %v447_v10 = vld [vmem:[#allocation2 + $0x70] sm:$0x3] }
  0x51   : > { %v5589_v4 = vsel %vm535_vm2, %v551_v54, %v552_v58  ;;  %v5592_v5 = vsel %vm535_vm2, %v552_v58, %v554_v59  ;;  %v5600_v11 = vpack.i.bf16 %v626_v7, %v624_v6  ;;  %v5604_v12 = vsel %vm616_vm3, %v627_v62, %v628_v63  ;;  %v5637_v27 = vld [vmem:[#allocation2 + $0x78] sm:$0xff]  ;;  %414 = vst.msk [vmem:[#allocation2 + $0xb1] sm:$0xff] %vm280_vm0, %v4481_v31  ;;  %v4527_v48 = vld [vmem:[%s5505_s8 + $0x50] sm:$0xff]  }
  0x52   : > { %4594 = vrot.lane.b32.xlu0 %v5580_v60, %s5340_s26  ;;  %8439 = vst [vmem:[#allocation5_spill] sm:$0xff] %v5589_v4  ;;  %v5607_v13 = vsel %vm616_vm3, %v628_v63, %v630_v3  ;;  %v5611_v14 = vpack.i.bf16 %v5592_v5, %v5589_v4  ;;  %v556_v15 = vrot.slane %v5596_v8, 1  ;;  %v557_v16 = vrot.slane %v5598_v9, 1  ;;  %v5639_v28 = vld [vmem:[#allocation2 + $0x80] sm:$0xff]  ;;  %v450_v29 = vld [vmem:[#allocation2 + $0x88] sm:$0x3] }
  0x53   : > { %8440 = vst [vmem:[#allocation6_spill] sm:$0xff] %v5592_v5  ;;  %4584 = vrot.lane.b32.xlu2 %v5600_v11, %s5341_s27  ;;  %v559_v17 = vrot.slane %v447_v10, 1  ;;  %v5619_v18 = vpack.i.bf16 %v5607_v13, %v5604_v12  ;;  %v632_v20 = vrot.slane %v5556_v47, 2  ;;  %v633_v21 = vrot.slane %v5567_v52, 2  ;;  %v4524_v6 = vld [vmem:[%s5505_s8 + $0x38] sm:$0xff]  }
  0x54   : > { %8441 = vst [vmem:[#allocation7_spill] sm:$0xff] %v5604_v12  ;;  %v635_v22 = vrot.slane %v444_v53, 2  ;;  %v5628_v23 = vpack.i.bf16 %v5551_v42, %v5548_v40  ;;  %v5632_v25 = vsel %vm535_vm2, %v556_v15, %v557_v16  ;;  %v4493_v38 = vunpack.c.h.bf16 %v4526_v24  ;;  %v5682_v62 = vld [vmem:[#allocation2 + $0x98] sm:$0xff]  ;;  %v453_v63 = vld [vmem:[#allocation2 + $0xa0] sm:$0x3] }
  0x55   : > { %4579 = vrot.lane.b32.xlu1 %v4578_v61, %s5340_s26  ;;  %8442 = vst [vmem:[#allocation8_spill] sm:$0xff] %v5607_v13  ;;  %v5635_v26 = vsel %vm535_vm2, %v557_v16, %v559_v17  ;;  %v5644_v35 = vsel %vm616_vm3, %v632_v20, %v633_v21  ;;  %v561_v39 = vrot.slane %v5637_v27, 1  ;;  %v562_v41 = vrot.slane %v5639_v28, 1  ;;  %v5680_v61 = vld [vmem:[#allocation2 + $0x90] sm:$0xff] }
  0x56   : > { %8443 = vst [vmem:[#allocation9_spill] sm:$0xff] %v5632_v25  ;;  %v5647_v36 = vsel %vm616_vm3, %v633_v21, %v635_v22  ;;  %v5651_v37 = vpack.i.bf16 %v5635_v26, %v5632_v25  ;;  %v564_v43 = vrot.slane %v450_v29, 1  ;;  %v637_v45 = vrot.slane %v5596_v8, 2 }
  0x57   : > { %8444 = vst [vmem:[#allocation10_spill] sm:$0xff] %v5635_v26  ;;  %v5662_v44 = vpack.i.bf16 %v5647_v36, %v5644_v35  ;;  %v638_v46 = vrot.slane %v5598_v9, 2  ;;  %v640_v49 = vrot.slane %v447_v10, 2  ;;  %v5672_v53 = vpack.i.bf16 %v5567_v52, %v5556_v47 }
  0x58   : > { %8445 = vst [vmem:[#allocation11_spill] sm:$0xff] %v5644_v35  ;;  %v4496_v54 = vunpack.c.l.bf16 %v4527_v48  ;;  %v4497_v55 = vunpack.c.h.bf16 %v4527_v48  ;;  %v5675_v58 = vsel %vm535_vm2, %v561_v39, %v562_v41  ;;  %v5678_v59 = vsel %vm535_vm2, %v562_v41, %v564_v43  ;;  %v454_v39 = vld [vmem:[#allocation2 + $0xa8] sm:$0xff]  ;;  %v455_v41 = vld [vmem:[#allocation2 + $0xb0] sm:$0xff]  ;;  %v456_v43 = vld [vmem:[#allocation2 + $0xb8] sm:$0x3] }
  0x59   : > { %8446 = vst [vmem:[#allocation12_spill] sm:$0xff] %v5647_v36  ;;  %v5688_v3 = vsel %vm616_vm3, %v637_v45, %v638_v46  ;;  %v5693_v7 = vsel %vm616_vm3, %v638_v46, %v640_v49  ;;  %v5697_v10 = vpack.i.bf16 %v5678_v59, %v5675_v58  ;;  %v4484_v15 = vunpack.c.l.bf16 %v4524_v6 }
  0x5a   : > { %4609 = vrot.lane.b32.xlu0 %v5611_v14, %s5340_s26  ;;  %419 = vst.msk [vmem:[#allocation2 + $0xf1] sm:$0xff] %vm280_vm0, %v4492_v33  ;;  %v4485_v16 = vunpack.c.h.bf16 %v4524_v6  ;;  %v566_v17 = vrot.slane %v5680_v61, 1  ;;  %v567_v19 = vrot.slane %v5682_v62, 1  ;;  %v569_v20 = vrot.slane %v453_v63, 1 }
  0x5b   : > { %4589 = vrot.lane.b32.xlu2 %v5628_v23, %s5342_s9  ;;  %420 = vst.msk [vmem:[#allocation2 + $0xf9] sm:$0xff] %vm280_vm0, %v4493_v38  ;;  %v5706_v21 = vpack.i.bf16 %v5693_v7, %v5688_v3  ;;  %v642_v22 = vrot.slane %v5637_v27, 2  ;;  %v643_v24 = vrot.slane %v5639_v28, 2  ;;  %v645_v30 = vrot.slane %v450_v29, 2 }
  0x5c   : > { %8447 = vst [vmem:[#allocation13_spill] sm:$0xff] %v5675_v58  ;;  %v5715_v31 = vpack.i.bf16 %v5598_v9, %v5596_v8  ;;  %v5718_v33 = vsel %vm535_vm2, %v566_v17, %v567_v19  ;;  %v5721_v38 = vsel %vm535_vm2, %v567_v19, %v569_v20  ;;  %v571_v48 = vrot.slane %v454_v39, 1 }
  0x5d   : > { %4599 = vrot.lane.b32.xlu1 %v5619_v18, %s5341_s27  ;;  %8448 = vst [vmem:[#allocation14_spill] sm:$0xff] %v5678_v59  ;;  %v5726_v45 = vsel %vm616_vm3, %v642_v22, %v643_v24  ;;  %v5729_v29 = vsel %vm616_vm3, %v643_v24, %v645_v30  ;;  %v5733_v46 = vpack.i.bf16 %v5721_v38, %v5718_v33  ;;  %v572_v49 = vrot.slane %v455_v41, 1 }
  0x5e   : > { %421 = vst.msk [vmem:[#allocation2 + $0x109] sm:$0xff] %vm280_vm0, %v4496_v54  ;;  %v574_v54 = vrot.slane %v456_v43, 1  ;;  %v647_v6 = vrot.slane %v5680_v61, 2  ;;  %v650_v17 = vrot.slane %v453_v63, 2  ;;  %v5748_v19 = vpack.i.bf16 %v5639_v28, %v5637_v27 }
  0x5f   : > { %8449 = vst [vmem:[#allocation15_spill] sm:$0xff] %v5688_v3  ;;  %v5751_v24 = vsel %vm535_vm2, %v571_v48, %v572_v49  ;;  %v4525_v48 = vld [vmem:[%s5505_s8 + $0x40] sm:$0xff]  }
  0x60   : > { %422 = vst.msk [vmem:[#allocation2 + $0x111] sm:$0xff] %vm280_vm0, %v4497_v55  ;;  %v5739_v55 = vpack.i.bf16 %v5729_v29, %v5726_v45  ;;  %v5754_v30 = vsel %vm535_vm2, %v572_v49, %v574_v54  ;;  %v4488_v54 = vunpack.c.l.bf16 %v4525_v48 }
  0x61   : > { %8450 = vst [vmem:[#allocation16_spill] sm:$0xff] %v5693_v7  ;;  %v5756_v0 = vld [vmem:[#allocation2 + $0xf0] sm:$0xff]  ;;  %v5773_v49 = vpack.i.bf16 %v5754_v30, %v5751_v24 }
  0x62   : > { %4624 = vrot.lane.b32.xlu0 %v5651_v37, %s5340_s26  ;;  %415 = vst.msk [vmem:[#allocation2 + $0xc1] sm:$0xff] %vm280_vm0, %v4484_v15  ;;  %v648_v15 = vrot.slane %v5682_v62, 2  ;;  %v586_v7 = vrot.slane %v5756_v0, 1 }
  0x63   : > { %4604 = vrot.lane.b32.xlu2 %v5672_v53, %s5342_s9  ;;  %416 = vst.msk [vmem:[#allocation2 + $0xc9] sm:$0xff] %vm280_vm0, %v4485_v16  ;;  %v4528_v16 = vld [vmem:[%s5505_s8 + $0x58] sm:$0xff]  }
  0x64   : > { %8451 = vst [vmem:[#allocation17_spill] sm:$0xff] %v5718_v33  ;;  %v4500_v20 = vunpack.c.l.bf16 %v4528_v16  ;;  %v4501_v22 = vunpack.c.h.bf16 %v4528_v16  ;;  %v5764_v63 = vsel %vm616_vm3, %v647_v6, %v648_v15  ;;  %v5769_v16 = vsel %vm616_vm3, %v648_v15, %v650_v17 }
  0x65   : > { %4614 = vrot.lane.b32.xlu1 %v5662_v44, %s5341_s27  ;;  %8452 = vst [vmem:[#allocation18_spill] sm:$0xff] %v5721_v38  ;;  %v5782_v15 = vpack.i.bf16 %v5769_v16, %v5764_v63  ;;  %v652_v17 = vrot.slane %v454_v39, 2 }
  0x66   : > { %8453 = vst [vmem:[#allocation19_spill] sm:$0xff] %v5726_v45  ;;  %v465_v45 = vld [vmem:[#allocation2 + $0x100] sm:$0x3] }
  0x67   : > { %8454 = vst [vmem:[#allocation20_spill] sm:$0xff] %v5729_v29  ;;  %v5758_v29 = vld [vmem:[#allocation2 + $0xf8] sm:$0xff]  ;;  %v589_v3 = vrot.slane %v465_v45, 1 }
  0x68   : > { %8455 = vst [vmem:[#allocation21_spill] sm:$0xff] %v5751_v24  ;;  %v587_v6 = vrot.slane %v5758_v29, 1  ;;  %v655_v24 = vrot.slane %v456_v43, 2 }
  0x69   : > { %8456 = vst [vmem:[#allocation22_spill] sm:$0xff] %v5754_v30 }
  0x6a   : > { %4639 = vrot.lane.b32.xlu0 %v5697_v10, %s5340_s26  ;;  %423 = vst.msk [vmem:[#allocation2 + $0x121] sm:$0xff] %vm280_vm0, %v4500_v20  ;;  %v4489_v20 = vunpack.c.h.bf16 %v4525_v48  ;;  %v5789_v48 = vpack.i.bf16 %v5682_v62, %v5680_v61  ;;  %v5792_v30 = vsel %vm535_vm2, %v586_v7, %v587_v6  ;;  %v667_v7 = vrot.slane %v5756_v0, 2  ;;  %v459_v35 = vld [vmem:[#allocation2 + $0xd0] sm:$0x3] }
  0x6b   : > { %4619 = vrot.lane.b32.xlu2 %v5715_v31, %s5342_s9  ;;  %8457 = vst [vmem:[#allocation23_spill] sm:$0xff] %v5764_v63  ;;  %v660_v12 = vrot.slane %v459_v35, 2 }
  0x6c   : > { %424 = vst.msk [vmem:[#allocation2 + $0x129] sm:$0xff] %vm280_vm0, %v4501_v22  ;;  %v653_v22 = vrot.slane %v455_v41, 2 }
  0x6d   : > { %4629 = vrot.lane.b32.xlu1 %v5706_v21, %s5341_s27  ;;  %8458 = vst [vmem:[#allocation24_spill] sm:$0xff] %v5769_v16 }
  0x6e   : > { %417 = vst.msk [vmem:[#allocation2 + $0xd9] sm:$0xff] %vm280_vm0, %v4488_v54  ;;  %v5795_v54 = vsel %vm535_vm2, %v587_v6, %v589_v3  ;;  %v5803_v16 = vsel %vm616_vm3, %v653_v22, %v655_v24  ;;  %v668_v6 = vrot.slane %v5758_v29, 2  ;;  %v670_v24 = vrot.slane %v465_v45, 2 }
  0x6f   : > { %418 = vst.msk [vmem:[#allocation2 + $0xe1] sm:$0xff] %vm280_vm0, %v4489_v20  ;;  %v5800_v20 = vsel %vm616_vm3, %v652_v17, %v653_v22  ;;  %v5807_v43 = vpack.i.bf16 %v5795_v54, %v5792_v30  ;;  %v5819_v17 = vpack.i.bf16 %v455_v41, %v454_v39  ;;  %v5821_v22 = vld [vmem:[#allocation2 + $0x108] sm:$0xff]  ;;  %v457_v41 = vld [vmem:[#allocation2 + $0xc0] sm:$0xff] }
  0x70   : > { %8459 = vst [vmem:[#allocation25_spill] sm:$0xff] %v5792_v30  ;;  %v5813_v3 = vpack.i.bf16 %v5803_v16, %v5800_v20  ;;  %v5823_v30 = vld [vmem:[#allocation2 + $0x110] sm:$0xff]  ;;  %v5834_v63 = vsel %vm616_vm3, %v668_v6, %v670_v24  ;;  %v591_v45 = vrot.slane %v5821_v22, 1  ;;  %v657_v38 = vrot.slane %v457_v41, 2 }
  0x71   : > { %8460 = vst [vmem:[#allocation26_spill] sm:$0xff] %v5795_v54  ;;  %v468_v54 = vld [vmem:[#allocation2 + $0x118] sm:$0x3]  ;;  %v4698_v39 = vpack.i.bf16 %v5823_v30, %v5821_v22  ;;  %v592_v36 = vrot.slane %v5823_v30, 1  ;;  %v576_v26 = vrot.slane %v457_v41, 1 }
  0x72   : > { %4654 = vrot.lane.b32.xlu0 %v5733_v46, %s5340_s26  ;;  %8461 = vst [vmem:[#allocation27_spill] sm:$0xff] %v5800_v20  ;;  %v4403_v20 = vld [vmem:[%s8355_s1 + $0x38] sm:$0xff]  ;;  %v594_v33 = vrot.slane %v468_v54, 1 }
  0x73   : > { %4634 = vrot.lane.b32.xlu2 %v5748_v19, %s5342_s9  ;;  %8462 = vst [vmem:[#allocation28_spill] sm:$0xff] %v5803_v16  ;;  %v5828_v16 = vsel %vm616_vm3, %v667_v7, %v668_v6  ;;  %v458_v7 = vld [vmem:[#allocation2 + $0xc8] sm:$0xff]  ;;  %1801 = vmatpush.bf16.msra.mxu0 %v4403_v20  ;;  %v4402_v6 = vld [vmem:[%s8355_s1 + $0x30] sm:$0xff]  ;;  %v5851_v58 = vsel %vm535_vm2, %v591_v45, %v592_v36 }
  0x74   : > { %8463 = vst [vmem:[#allocation29_spill] sm:$0xff] %v5828_v16  ;;  %4533 = vmatpush.bf16.msra.mxu1 %v4403_v20  ;;  %4534 = vmatpush.bf16.msra.mxu3 %v4403_v20  ;;  %v5847_v24 = vpack.i.bf16 %v5834_v63, %v5828_v16  ;;  %v658_v13 = vrot.slane %v458_v7, 2  ;;  %v5853_v59 = vpack.i.bf16 %v458_v7, %v457_v41  ;;  %v577_v4 = vrot.slane %v458_v7, 1  ;;  %v5896_v7 = vld [vmem:[#allocation2 + $0x120] sm:$0xff] }
  0x75   : > { %4644 = vrot.lane.b32.xlu1 %v5739_v55, %s5341_s27  ;;  %8464 = vst [vmem:[#allocation30_spill] sm:$0xff] %v5834_v63  ;;  %v5856_v25 = vsel %vm535_vm2, %v592_v36, %v594_v33  ;;  %v579_v20 = vrot.slane %v459_v35, 1 }
  0x76   : > { %8465 = vst [vmem:[#allocation31_spill] sm:$0xff] %v5851_v58  ;;  %v5864_v45 = vsel %vm616_vm3, %v657_v38, %v658_v13  ;;  %v5867_v63 = vsel %vm616_vm3, %v658_v13, %v660_v12  ;;  %v5871_v36 = vpack.i.bf16 %v5856_v25, %v5851_v58  ;;  %v5876_v35 = vsel %vm535_vm2, %v576_v26, %v577_v4  ;;  %v4400_v38 = vld [vmem:[%s8355_s1 + $0x20] sm:$0xff]  ;;  %v462_v58 = vld [vmem:[#allocation2 + $0xe8] sm:$0x3] }
  0x77   : > { %8466 = vst [vmem:[#allocation32_spill] sm:$0xff] %v5856_v25  ;;  %1802 = vmatpush.bf16.msra.mxu0 %v4402_v6  ;;  %v5879_v33 = vsel %vm535_vm2, %v577_v4, %v579_v20  ;;  %v5886_v12 = vpack.i.bf16 %v5867_v63, %v5864_v45  ;;  %v672_v13 = vrot.slane %v5821_v22, 2  ;;  %v673_v26 = vrot.slane %v5823_v30, 2  ;;  %v4399_v20 = vld [vmem:[%s8355_s1 + $0x18] sm:$0xff] }
  0x78   : > { %4535 = vmatpush.bf16.msra.mxu1 %v4402_v6  ;;  %4536 = vmatpush.bf16.msra.mxu3 %v4402_v6  ;;  %8467 = vst [vmem:[#allocation33_spill] sm:$0xff] %v5864_v45  ;;  %v675_v4 = vrot.slane %v468_v54, 2  ;;  %v5894_v41 = vpack.i.bf16 %v5879_v33, %v5876_v35  ;;  %v5898_v6 = vld [vmem:[#allocation2 + $0x128] sm:$0xff]  ;;  %v461_v45 = vld [vmem:[#allocation2 + $0xe0] sm:$0xff]  ;;  %v665_v25 = vrot.slane %v462_v58, 2  ;;  %v584_v57 = vrot.slane %v462_v58, 1 }
  0x79   : > { %8468 = vst [vmem:[#allocation34_spill] sm:$0xff] %v5867_v63  ;;  %v5906_v54 = vsel %vm616_vm3, %v672_v13, %v673_v26  ;;  %v4728_v16 = vpack.i.bf16 %v5898_v6, %v5896_v7  ;;  %v460_v63 = vld [vmem:[#allocation2 + $0xd8] sm:$0xff]  ;;  %v582_v5 = vrot.slane %v461_v45, 1 }
  0x7a   : > { %4669 = vrot.lane.b32.xlu0 %v5773_v49, %s5340_s26  ;;  %8469 = vst [vmem:[#allocation35_spill] sm:$0xff] %v5876_v35  ;;  %v5923_v35 = vpack.i.bf16 %v461_v45, %v460_v63 }
  0x7b   : > { %4649 = vrot.lane.b32.xlu2 %v5789_v48, %s5342_s9  ;;  %8470 = vst [vmem:[#allocation36_spill] sm:$0xff] %v5879_v33  ;;  %v581_v33 = vrot.slane %v460_v63, 1 }
  0x7d   : > { %4659 = vrot.lane.b32.xlu1 %v5782_v15, %s5341_s27  ;;  %v5939_v58 = vsel %vm535_vm2, %v581_v33, %v582_v5 }
  0x82   : > { %4684 = vrot.lane.b32.xlu0 %v5807_v43, %s5340_s26 }
  0x83   : > { %4664 = vrot.lane.b32.xlu2 %v5819_v17, %s5342_s9 }
  0x85   : > { %4674 = vrot.lane.b32.xlu1 %v5813_v3, %s5341_s27 }
  0x8a   : > { %4699 = vrot.lane.b32.xlu0 %v4698_v39, %s5342_s9  ;;  %v4401_v39 = vld [vmem:[%s8355_s1 + $0x28] sm:$0xff] }
  0x8b   : > { %4679 = vrot.lane.b32.xlu2 %v5853_v59, %s5342_s9  ;;  %1803 = vmatpush.bf16.msra.mxu0 %v4401_v39 }
  0x8c   : > { %4537 = vmatpush.bf16.msra.mxu1 %v4401_v39  ;;  %4538 = vmatpush.bf16.msra.mxu3 %v4401_v39  ;;  %v5909_v39 = vsel %vm616_vm3, %v673_v26, %v675_v4  ;;  %v662_v26 = vrot.slane %v460_v63, 2  ;;  %v663_v4 = vrot.slane %v461_v45, 2  ;;  %v4397_v63 = vld [vmem:[%s8355_s1 + $0x8] sm:$0xff]  ;;  %v4396_v45 = vld [vmem:[%s8355_s1] sm:$0xff] }
  0x8d   : > { %4689 = vrot.lane.b32.xlu1 %v5847_v24, %s5341_s27  ;;  %8471 = vst [vmem:[#allocation37_spill] sm:$0xff] %v5909_v39  ;;  %v5920_v13 = vpack.i.bf16 %v5909_v39, %v5906_v54 }
  0x8e   : > { %v5931_v39 = vsel %vm616_vm3, %v663_v4, %v665_v25 }
  0x8f   : > { %1804 = vmatpush.bf16.msra.mxu0 %v4400_v38 }
  0x90   : > { %4539 = vmatpush.bf16.msra.mxu1 %v4400_v38  ;;  %4540 = vmatpush.bf16.msra.mxu3 %v4400_v38  ;;  %v4398_v38 = vld [vmem:[%s8355_s1 + $0x10] sm:$0xff] }
  0x92   : > { %4714 = vrot.lane.b32.xlu0 %v5871_v36, %s5340_s26 }
  0x93   : > { %4694 = vrot.lane.b32.xlu2 %v5894_v41, %s5340_s26  ;;  %1805 = vmatpush.bf16.msra.mxu0 %v4399_v20 }
  0x94   : > { %4541 = vmatpush.bf16.msra.mxu1 %v4399_v20  ;;  %4542 = vmatpush.bf16.msra.mxu3 %v4399_v20  ;;  %v5928_v20 = vsel %vm616_vm3, %v662_v26, %v663_v4 }
  0x95   : > { %4704 = vrot.lane.b32.xlu1 %v5886_v12, %s5341_s27  ;;  %v5949_v25 = vpack.i.bf16 %v5931_v39, %v5928_v20 }
  0x97   : > { %1806 = vmatpush.bf16.msra.mxu0 %v4398_v38 }
  0x98   : > { %4543 = vmatpush.bf16.msra.mxu1 %v4398_v38  ;;  %4544 = vmatpush.bf16.msra.mxu3 %v4398_v38  ;;  %v8472_v38 = vmov 0.0  }
  0x99   : > { %2100 = vst.msk [vmem:[#allocation3] sm:$0xff] %vm1395_vm4, %v8472_v38 }
  0x9a   : > { %4729 = vrot.lane.b32.xlu0 %v4728_v16, %s5342_s9  ;;  %v5942_v16 = vsel %vm535_vm2, %v582_v5, %v584_v57  ;;  %2101 = vst.msk [vmem:[#allocation3 + $0x8] sm:$0xff] %vm1395_vm4, %v8472_v38  ;;  %v4413_v5 = vld [vmem:[%s8355_s1 + $0x88] sm:$0xff] }
  0x9b   : > { %4709 = vrot.lane.b32.xlu2 %v5923_v35, %s5342_s9  ;;  %1807 = vmatpush.bf16.msra.mxu0 %v4397_v63  ;;  %v5957_v57 = vpack.i.bf16 %v5942_v16, %v5939_v58  ;;  %2104 = vst.msk [vmem:[#allocation3 + $0x18] sm:$0xff] %vm1395_vm4, %v8472_v38 }
  0x9c   : > { %4545 = vmatpush.bf16.msra.mxu1 %v4397_v63  ;;  %4546 = vmatpush.bf16.msra.mxu3 %v4397_v63  ;;  %2105 = vst.msk [vmem:[#allocation3 + $0x20] sm:$0xff] %vm1395_vm4, %v8472_v38 }
  0x9d   : > { %4719 = vrot.lane.b32.xlu1 %v5920_v13, %s5341_s27  ;;  %2107 = vst.msk [vmem:[#allocation3 + $0x30] sm:$0xff] %vm1395_vm4, %v8472_v38  ;;  %4549 = vmatpush.bf16.msra.mxu2 %v4413_v5 }
  0x9e   : > { %2108 = vst.msk [vmem:[#allocation3 + $0x38] sm:$0xff] %vm1395_vm4, %v8472_v38 }
  0x9f   : > { %1808 = vmatpush.bf16.msra.mxu0 %v4396_v45  ;;  %2110 = vst.msk [vmem:[#allocation3 + $0x48] sm:$0xff] %vm1395_vm4, %v8472_v38 }
  0xa0   : > { %4547 = vmatpush.bf16.msra.mxu1 %v4396_v45  ;;  %4548 = vmatpush.bf16.msra.mxu3 %v4396_v45  ;;  %2111 = vst.msk [vmem:[#allocation3 + $0x50] sm:$0xff] %vm1395_vm4, %v8472_v38 }
  0xa1   : > { %2113 = vst.msk [vmem:[#allocation3 + $0x60] sm:$0xff] %vm1395_vm4, %v8472_v38 }
  0xa2   : > { %4744 = vrot.lane.b32.xlu0 %v5600_v11, %s5340_s26  ;;  %v5986_v11 = vpack.i.bf16 %v5758_v29, %v5756_v0  ;;  %2114 = vst.msk [vmem:[#allocation3 + $0x68] sm:$0xff] %vm1395_vm4, %v8472_v38 }
  0xa3   : > { %4724 = vrot.lane.b32.xlu2 %v5957_v57, %s5340_s26  ;;  %1985 = vmatpush.bf16.msrb.mxu0 %v4413_v5  ;;  %2116 = vst.msk [vmem:[#allocation3 + $0x78] sm:$0xff] %vm1395_vm4, %v8472_v38 }
  0xa4   : > { %2117 = vst.msk [vmem:[#allocation3 + $0x80] sm:$0xff] %vm1395_vm4, %v8472_v38 }
  0xa5   : > { %4734 = vrot.lane.b32.xlu1 %v5949_v25, %s5341_s27  ;;  %2119 = vst.msk [vmem:[#allocation3 + $0x90] sm:$0xff] %vm1395_vm4, %v8472_v38 }
  0xa6   : > { %2120 = vst.msk [vmem:[#allocation3 + $0x98] sm:$0xff] %vm1395_vm4, %v8472_v38 }
  0xa7   : > { %2122 = vst.msk [vmem:[#allocation3 + $0xa8] sm:$0xff] %vm1395_vm4, %v8472_v38 }
  0xa8   : > { %2123 = vst.msk [vmem:[#allocation3 + $0xb0] sm:$0xff] %vm1395_vm4, %v8472_v38 }
  0xa9   : > { %2125 = vst.msk [vmem:[#allocation3 + $0xc0] sm:$0xff] %vm1395_vm4, %v8472_v38 }
  0xaa   : > { %4759 = vrot.lane.b32.xlu0 %v5619_v18, %s5340_s26  ;;  %v4565_v18 = vpop.permute.xlu0 %4564  ;;  %2126 = vst.msk [vmem:[#allocation3 + $0xc8] sm:$0xff] %vm1395_vm4, %v8472_v38 }
  0xab   : > { %4739 = vrot.lane.b32.xlu2 %v5986_v11, %s5342_s9  ;;  %2128 = vst.msk [vmem:[#allocation3 + $0xd8] sm:$0xff] %vm1395_vm4, %v8472_v38  ;;  %v4566_v26 = vunpack.i.l.bf16 %v4565_v18 }
  0xac   : > { %2129 = vst.msk [vmem:[#allocation3 + $0xe0] sm:$0xff] %vm1395_vm4, %v8472_v38 }
  0xad   : > { %4749 = vrot.lane.b32.xlu1 %v5628_v23, %s5341_s27  ;;  %v6004_v33 = vpop.permute.xlu2 %4584  ;;  %2131 = vst.msk [vmem:[#allocation3 + $0xf0] sm:$0xff] %vm1395_vm4, %v8472_v38 }
  0xae   : > { %2132 = vst.msk [vmem:[#allocation3 + $0xf8] sm:$0xff] %vm1395_vm4, %v8472_v38 }
  0xaf   : > { %2134 = vst.msk [vmem:[#allocation3 + $0x108] sm:$0xff] %vm1395_vm4, %v8472_v38 }
  0xb0   : > { %2135 = vst.msk [vmem:[#allocation3 + $0x110] sm:$0xff] %vm1395_vm4, %v8472_v38 }
  0xb1   : > { %2137 = vst.msk [vmem:[#allocation3 + $0x120] sm:$0xff] %vm1395_vm4, %v8472_v38 }
  0xb2   : > { %4774 = vrot.lane.b32.xlu0 %v5662_v44, %s5340_s26  ;;  %v4570_v23 = vpop.permute.xlu0 %4569  ;;  %2138 = vst.msk [vmem:[#allocation3 + $0x128] sm:$0xff] %vm1395_vm4, %v8472_v38 }
  0xb3   : > { %4754 = vrot.lane.b32.xlu2 %v5580_v60, %s5342_s9  ;;  %v4572_v60 = vunpack.i.h.bf16 %v4570_v23  ;;  %v4571_v4 = vunpack.i.l.bf16 %v4570_v23  ;;  %2140 = vst.msk [vmem:[#allocation3 + $0x138] sm:$0xff] %vm1395_vm4, %v8472_v38 }
  0xb4   : > { %2141 = vst.msk [vmem:[#allocation3 + $0x140] sm:$0xff] %vm1395_vm4, %v8472_v38 }
  0xb5   : > { %4764 = vrot.lane.b32.xlu1 %v5672_v53, %s5341_s27  ;;  %v4590_v44 = vpop.permute.xlu2 %4589  ;;  %v4567_v53 = vunpack.i.h.bf16 %v4565_v18  ;;  %2143 = vst.msk [vmem:[#allocation3 + $0x150] sm:$0xff] %vm1395_vm4, %v8472_v38 }
  0xb6   : > { %2144 = vst.msk [vmem:[#allocation3 + $0x158] sm:$0xff] %vm1395_vm4, %v8472_v38 }
  0xb7   : > { %v1364_v63 = vsel %vm280_vm0, %v5409_v2, %v4567_v53  ;;  %2146 = vst.msk [vmem:[#allocation3 + $0x168] sm:$0xff] %vm1395_vm4, %v8472_v38 }
  0xb8   : > { %v1397_v18 = vsel %vm1395_vm4, %v1364_v63, %v4572_v60  ;;  %2147 = vst.msk [vmem:[#allocation3 + $0x170] sm:$0xff] %vm1395_vm4, %v8472_v38 }
  0xb9   : > { %2149 = vst.msk [vmem:[#allocation3 + $0x180] sm:$0xff] %vm1395_vm4, %v8472_v38 }
  0xba   : > { %4789 = vrot.lane.b32.xlu0 %v5706_v21, %s5340_s26  ;;  %v1363_v21 = vsel %vm280_vm0, %v5405_v1, %v4566_v26  ;;  %2150 = vst.msk [vmem:[#allocation3 + $0x188] sm:$0xff] %vm1395_vm4, %v8472_v38 }
  0xbb   : > { %4769 = vrot.lane.b32.xlu2 %v5611_v14, %s5342_s9  ;;  %v1396_v5 = vsel %vm1395_vm4, %v1363_v21, %v4571_v4  ;;  %2152 = vst.msk [vmem:[#allocation3 + $0x198] sm:$0xff] %vm1395_vm4, %v8472_v38 }
  0xbc   : > { %2153 = vst.msk [vmem:[#allocation3 + $0x1a0] sm:$0xff] %vm1395_vm4, %v8472_v38 }
  0xbd   : > { %4779 = vrot.lane.b32.xlu1 %v5715_v31, %s5341_s27  ;;  %v4605_v1 = vpop.permute.xlu2 %4604  ;;  %2103 = vst.msk [vmem:[#allocation3 + $0x10] sm:$0x3] %vm2102_vm6, %v8472_v38 }
  0xbe   : > { %2106 = vst.msk [vmem:[#allocation3 + $0x28] sm:$0x3] %vm2102_vm6, %v8472_v38 }
  0xbf   : > { %v4575_v45 = vpop.permute.xlu1 %4574  ;;  %2109 = vst.msk [vmem:[#allocation3 + $0x40] sm:$0x3] %vm2102_vm6, %v8472_v38 }
  0xc0   : > { %v4577_v31 = vunpack.i.h.bf16 %v4575_v45  ;;  %v4576_v2 = vunpack.i.l.bf16 %v4575_v45  ;;  %v4587_v45 = vunpack.i.h.bf16 %v6004_v33  ;;  %2112 = vst.msk [vmem:[#allocation3 + $0x58] sm:$0x3] %vm2102_vm6, %v8472_v38 }
  0xc1   : > { %2115 = vst.msk [vmem:[#allocation3 + $0x70] sm:$0x3] %vm2102_vm6, %v8472_v38 }
  0xc2   : > { %v1429_v14 = vsel %vm1428_vm5, %v1396_v5, %v4576_v2  ;;  %v1430_v23 = vsel %vm1428_vm5, %v1397_v18, %v4577_v31  ;;  %v4586_v5 = vunpack.i.l.bf16 %v6004_v33  ;;  %4804 = vrot.lane.b32.xlu0 %v5739_v55, %s5340_s26  ;;  %2118 = vst.msk [vmem:[#allocation3 + $0x88] sm:$0x3] %vm2102_vm6, %v8472_v38 }
  0xc3   : > { %v1557_v53 = vpack.c.bf16 %v1430_v23, %v1429_v14  ;;  %4784 = vrot.lane.b32.xlu2 %v5651_v37, %s5342_s9  ;;  %v4591_v37 = vunpack.i.l.bf16 %v4590_v44  ;;  %2121 = vst.msk [vmem:[#allocation3 + $0xa0] sm:$0x3] %vm2102_vm6, %v8472_v38 }
  0xc4   : > { %v4595_v26 = vpop.permute.xlu0 %4594  ;;  %2124 = vst.msk [vmem:[#allocation3 + $0xb8] sm:$0x3] %vm2102_vm6, %v8472_v38 }
  0xc5   : > { %1809 = vmatmul.bf16.vlgmr.msra.gmra.mxu0 %v1557_v53  ;;  %4794 = vrot.lane.b32.xlu1 %v5748_v19, %s5341_s27  ;;  %v6072_v21 = vpop.permute.xlu2 %4619  ;;  %v4592_v19 = vunpack.i.h.bf16 %v4590_v44  ;;  %v4597_v55 = vunpack.i.h.bf16 %v4595_v26  ;;  %v4596_v44 = vunpack.i.l.bf16 %v4595_v26  ;;  %2127 = vst.msk [vmem:[#allocation3 + $0xd0] sm:$0x3] %vm2102_vm6, %v8472_v38 }
  0xc6   : > { %2130 = vst.msk [vmem:[#allocation3 + $0xe8] sm:$0x3] %vm2102_vm6, %v8472_v38 }
  0xc7   : > { %v4580_v60 = vpop.permute.xlu1 %4579  ;;  %2133 = vst.msk [vmem:[#allocation3 + $0x100] sm:$0x3] %vm2102_vm6, %v8472_v38 }
  0xc8   : > { %v4582_v4 = vunpack.i.h.bf16 %v4580_v60  ;;  %v4581_v63 = vunpack.i.l.bf16 %v4580_v60  ;;  %2136 = vst.msk [vmem:[#allocation3 + $0x118] sm:$0x3] %vm2102_vm6, %v8472_v38 }
  0xc9   : > { %2139 = vst.msk [vmem:[#allocation3 + $0x130] sm:$0x3] %vm2102_vm6, %v8472_v38 }
  0xca   : > { %v1366_v18 = vsel %vm280_vm0, %v5541_v34, %v4582_v4  ;;  %v1365_v31 = vsel %vm280_vm0, %v5538_v32, %v4581_v63  ;;  %4819 = vrot.lane.b32.xlu0 %v5782_v15, %s5340_s26  ;;  %2142 = vst.msk [vmem:[#allocation3 + $0x148] sm:$0x3] %vm2102_vm6, %v8472_v38 }
  0xcb   : > { %v1398_v14 = vsel %vm1395_vm4, %v1365_v31, %v4586_v5  ;;  %v1399_v23 = vsel %vm1395_vm4, %v1366_v18, %v4587_v45  ;;  %4799 = vrot.lane.b32.xlu2 %v5697_v10, %s5342_s9  ;;  %v1367_v18 = vsel %vm280_vm0, %v5548_v40, %v4596_v44  ;;  %2145 = vst.msk [vmem:[#allocation3 + $0x160] sm:$0x3] %vm2102_vm6, %v8472_v38 }
  0xcc   : > { %v4610_v2 = vpop.permute.xlu0 %4609  ;;  %v1431_v53 = vsel %vm1428_vm5, %v1398_v14, %v4591_v37  ;;  %v1432_v34 = vsel %vm1428_vm5, %v1399_v23, %v4592_v19  ;;  %v4607_v19 = vunpack.i.h.bf16 %v4605_v1  ;;  %v4606_v37 = vunpack.i.l.bf16 %v4605_v1  ;;  %2148 = vst.msk [vmem:[#allocation3 + $0x178] sm:$0x3] %vm2102_vm6, %v8472_v38 }
  0xcd   : > { %4809 = vrot.lane.b32.xlu1 %v5789_v48, %s5341_s27  ;;  %v6088_v60 = vpop.permute.xlu2 %4634  ;;  %v1560_v32 = vpack.c.bf16 %v1432_v34, %v1431_v53  ;;  %v1368_v48 = vsel %vm280_vm0, %v5551_v42, %v4597_v55  ;;  %v4612_v15 = vunpack.i.h.bf16 %v4610_v2  ;;  %v4411_v34 = vld [vmem:[%s8355_s1 + $0x78] sm:$0xff]  ;;  %2151 = vst.msk [vmem:[#allocation3 + $0x190] sm:$0x3] %vm2102_vm6, %v8472_v38 }
  0xce   : > { %1890 = vmatpush.bf16.msrb.mxu1 %v4411_v34  ;;  %2154 = vst.msk [vmem:[#allocation3 + $0x1a8] sm:$0x3] %vm2102_vm6, %v8472_v38 }
  0xcf   : > { %v4600_v33 = vpop.permute.xlu1 %4599 }
  0xd0   : > { %v4602_v63 = vunpack.i.h.bf16 %v4600_v33  ;;  %v4601_v45 = vunpack.i.l.bf16 %v4600_v33 }
  0xd2   : > { %v1400_v10 = vsel %vm1395_vm4, %v1367_v18, %v4601_v45  ;;  %v1401_v26 = vsel %vm1395_vm4, %v1368_v48, %v4602_v63  ;;  %v1370_v63 = vsel %vm280_vm0, %v5567_v52, %v4612_v15  ;;  %v4622_v48 = vunpack.i.h.bf16 %v6072_v21  ;;  %4834 = vrot.lane.b32.xlu0 %v5813_v3, %s5340_s26  ;;  %v6152_v3 = vld [vmem:[#allocation2 + $0x130] sm:$0x3] }
  0xd3   : > { %v1433_v42 = vsel %vm1428_vm5, %v1400_v10, %v4606_v37  ;;  %v1434_v40 = vsel %vm1428_vm5, %v1401_v26, %v4607_v19  ;;  %4814 = vrot.lane.b32.xlu2 %v5733_v46, %s5342_s9  ;;  %v4621_v18 = vunpack.i.l.bf16 %v6072_v21  ;;  %v596_v26 = vrot.slane %v5896_v7, 1 }
  0xd4   : > { %v6092_v4 = vpop.permute.xlu0 %4624  ;;  %v1563_v1 = vpack.c.bf16 %v1434_v40, %v1433_v42  ;;  %v597_v40 = vrot.slane %v5898_v6, 1 }
  0xd5   : > { %1814 = vmatmul.bf16.gmra.mxu0 %v1560_v32  ;;  %v6098_v31 = vpop.permute.xlu2 %4649  ;;  %4824 = vrot.lane.b32.xlu1 %v5819_v17, %s5341_s27  ;;  %v4611_v17 = vunpack.i.l.bf16 %v4610_v2  ;;  %v4410_v2 = vld [vmem:[%s8355_s1 + $0x70] sm:$0xff]  ;;  %v4626_v15 = vunpack.i.l.bf16 %v6092_v4 }
  0xd6   : > { %1891 = vmatpush.bf16.msrb.mxu1 %v4410_v2  ;;  %v6163_v34 = vsel %vm535_vm2, %v596_v26, %v597_v40  ;;  %v4637_v26 = vunpack.i.h.bf16 %v6088_v60 }
  0xd7   : > { %v4615_v5 = vpop.permute.xlu1 %4614  ;;  %v1369_v46 = vsel %vm280_vm0, %v5556_v47, %v4611_v17 }
  0xd8   : > { %v4617_v32 = vunpack.i.h.bf16 %v4615_v5  ;;  %v4616_v55 = vunpack.i.l.bf16 %v4615_v5  ;;  %v4409_v5 = vld [vmem:[%s8355_s1 + $0x68] sm:$0xff] }
  0xda   : > { %v1402_v52 = vsel %vm1395_vm4, %v1369_v46, %v4616_v55  ;;  %v1403_v47 = vsel %vm1395_vm4, %v1370_v63, %v4617_v32  ;;  %1892 = vmatpush.bf16.msrb.mxu1 %v4409_v5  ;;  %v4627_v55 = vunpack.i.h.bf16 %v6092_v4  ;;  %v4529_v4 = vld [vmem:[%s5505_s8 + $0x60] sm:$0xff]   ;;  %4849 = vrot.lane.b32.xlu0 %v5886_v12, %s5340_s26 }
  0xdb   : > { %v1435_v37 = vsel %vm1428_vm5, %v1402_v52, %v4621_v18  ;;  %v1436_v21 = vsel %vm1428_vm5, %v1403_v47, %v4622_v48  ;;  %4829 = vrot.lane.b32.xlu2 %v5773_v49, %s5342_s9  ;;  %v4407_v49 = vld [vmem:[%s8355_s1 + $0x58] sm:$0xff]  ;;  %v4412_v48 = vld [vmem:[%s8355_s1 + $0x80] sm:$0xff]  ;;  %v1371_v18 = vsel %vm280_vm0, %v5596_v8, %v4626_v15  ;;  %v4504_v5 = vunpack.c.l.bf16 %v4529_v4 }
  0xdc   : > { %v6106_v14 = vpop.permute.xlu0 %4639  ;;  %v1566_v42 = vpack.c.bf16 %v1436_v21, %v1435_v37  ;;  %v4505_v37 = vunpack.c.h.bf16 %v4529_v4  ;;  %v1372_v21 = vsel %vm280_vm0, %v5598_v9, %v4627_v55  ;;  %1986 = vmatpush.bf16.msrb.mxu0 %v4412_v48  ;;  %4550 = vmatpush.bf16.msra.mxu2 %v4412_v48  ;;  %v4636_v8 = vunpack.i.l.bf16 %v6088_v60 }
  0xdd   : > { %v6112_v33 = vpop.permute.xlu2 %4664  ;;  %4839 = vrot.lane.b32.xlu1 %v5853_v59, %s5341_s27  ;;  %v4408_v59 = vld [vmem:[%s8355_s1 + $0x60] sm:$0xff]  ;;  %425 = vst.msk [vmem:[#allocation2 + $0x139] sm:$0xff] %vm280_vm0, %v4504_v5  ;;  %v680_v5 = vrot.slane %v6152_v3, 2 }
  0xde   : > { %1893 = vmatpush.bf16.msrb.mxu1 %v4408_v59  ;;  %v4406_v59 = vld [vmem:[%s8355_s1 + $0x50] sm:$0xff]  ;;  %426 = vst.msk [vmem:[#allocation2 + $0x141] sm:$0xff] %vm280_vm0, %v4505_v37 }
  0xdf   : > { %v6110_v23 = vpop.permute.xlu1 %4629 }
  0xe0   : > { %v4631_v2 = vunpack.i.l.bf16 %v6110_v23  ;;  %v4632_v52 = vunpack.i.h.bf16 %v6110_v23 }
  0xe2   : > { %1894 = vmatpush.bf16.msrb.mxu1 %v4407_v49  ;;  %v1405_v9 = vsel %vm1395_vm4, %v1372_v21, %v4632_v52  ;;  %v678_v52 = vrot.slane %v5898_v6, 2 }
  0xe3   : > { %4844 = vrot.lane.b32.xlu2 %v5894_v41, %s5342_s9 }
  0xe4   : > { %v6116_v53 = vpop.permute.xlu0 %4654  ;;  %v6217_v21 = vld [vmem:[#allocation2 + $0x138] sm:$0xff] }
  0xe5   : > { %1819 = vmatmul.bf16.gmra.mxu0 %v1563_v1  ;;  %v6130_v45 = vpop.permute.xlu2 %4679  ;;  %v599_v1 = vrot.slane %v6152_v3, 1  ;;  %v474_v6 = vld [vmem:[#allocation2 + $0x148] sm:$0x3] }
  0xe6   : > { %1895 = vmatpush.bf16.msrb.mxu1 %v4406_v59  ;;  %v4404_v59 = vld [vmem:[%s8355_s1 + $0x40] sm:$0xff] }
  0xe7   : > { %v6121_v44 = vpop.permute.xlu1 %4644  ;;  %v6166_v32 = vsel %vm535_vm2, %v597_v40, %v599_v1  ;;  %v1404_v40 = vsel %vm1395_vm4, %v1371_v18, %v4631_v2  ;;  %v4405_v1 = vld [vmem:[%s8355_s1 + $0x48] sm:$0xff]  ;;  %v1438_v2 = vsel %vm1428_vm5, %v1405_v9, %v4637_v26  ;;  %v677_v18 = vrot.slane %v5896_v7, 2  ;;  %v6228_v7 = vld [vmem:[#allocation2 + $0x140] sm:$0xff] }
  0xe8   : > { %v6171_v46 = vpack.i.bf16 %v6166_v32, %v6163_v34  ;;  %v1437_v60 = vsel %vm1428_vm5, %v1404_v40, %v4636_v8  ;;  %v6226_v26 = vsel %vm616_vm3, %v678_v52, %v680_v5  ;;  %v4641_v40 = vunpack.i.l.bf16 %v6106_v14  ;;  %v4530_v5 = vld [vmem:[%s5505_s8 + $0x68] sm:$0xff]  }
  0xea   : > { %4854 = vrot.lane.b32.xlu1 %v6171_v46, %s5340_s26  ;;  %1896 = vmatpush.bf16.msrb.mxu1 %v4405_v1 }
  0xeb   : > { %4859 = vrot.lane.b32.xlu2 %v5923_v35, %s5341_s27 }
  0xec   : > { %v6143_v19 = vpop.permute.xlu0 %4669 }
  0xed   : > { %v6160_v17 = vpop.permute.xlu2 %4694 }
  0xee   : > { %1897 = vmatpush.bf16.msrb.mxu1 %v4404_v59  ;;  %v685_v59 = vrot.slane %v474_v6, 2 }
  0xef   : > { %v6147_v10 = vpop.permute.xlu1 %4659 }
  0xf2   : > { %4869 = vrot.lane.b32.xlu1 %v5957_v57, %s5342_s9  ;;  %v6223_v57 = vsel %vm616_vm3, %v677_v18, %v678_v52 }
  0xf4   : > { %v4685_v63 = vpop.permute.xlu0 %4684 }
  0xf5   : > { %1824 = vmatmul.bf16.gmra.mxu0 %v1566_v42  ;;  %v4687_v23 = vunpack.i.h.bf16 %v4685_v63  ;;  %v4686_v42 = vunpack.i.l.bf16 %v4685_v63  ;;  %v6205_v55 = vpop.permute.xlu2 %4709 }
  0xf7   : > { %v6186_v47 = vpop.permute.xlu1 %4674  ;;  %v1384_v63 = vsel %vm280_vm0, %v5758_v29, %v4687_v23  ;;  %v1383_v12 = vsel %vm280_vm0, %v5756_v0, %v4686_v42  ;;  %v1569_v0 = vpack.c.bf16 %v1438_v2, %v1437_v60  ;;  %v6234_v23 = vpack.i.bf16 %v6226_v26, %v6223_v57 }
  0xf8   : > { %v4642_v42 = vunpack.i.h.bf16 %v6106_v14  ;;  %v604_v2 = vrot.slane %v474_v6, 1 }
  0xf9   : > { %4864 = vrot.lane.b32.xlu0 %v6234_v23, %s5341_s27 }
  0xfc   : > { %v4700_v15 = vpop.permute.xlu0 %4699 }
  0xfd   : > { %v4702_v49 = vunpack.i.h.bf16 %v4700_v15  ;;  %v4701_v4 = vunpack.i.l.bf16 %v4700_v15  ;;  %v6256_v41 = vpop.permute.xlu2 %4724 }
  0xff   : > { %v4690_v48 = vpop.permute.xlu1 %4689 }
 0x100   : > { %v4692_v37 = vunpack.i.h.bf16 %v4690_v48  ;;  %v4691_v29 = vunpack.i.l.bf16 %v4690_v48  ;;  %v4647_v48 = vunpack.i.h.bf16 %v6121_v44 }
 0x101   : > { %4879 = vrot.lane.b32.xlu0 %v5949_v25, %s5340_s26 }
 0x102   : > { %v1416_v3 = vsel %vm1395_vm4, %v1383_v12, %v4691_v29  ;;  %v1417_v8 = vsel %vm1395_vm4, %v1384_v63, %v4692_v37  ;;  %v601_v63 = vrot.slane %v6217_v21, 1  ;;  %v602_v12 = vrot.slane %v6228_v7, 1 }
 0x103   : > { %v1449_v9 = vsel %vm1428_vm5, %v1416_v3, %v4701_v4  ;;  %v1450_v1 = vsel %vm1428_vm5, %v1417_v8, %v4702_v49  ;;  %v4646_v4 = vunpack.i.l.bf16 %v6121_v44  ;;  %v1374_v37 = vsel %vm280_vm0, %v5639_v28, %v4642_v42 }
 0x104   : > { %v1587_v15 = vpack.c.bf16 %v1450_v1, %v1449_v9  ;;  %v4715_v60 = vpop.permute.xlu0 %4714  ;;  %v6247_v14 = vsel %vm535_vm2, %v601_v63, %v602_v12  ;;  %v6250_v49 = vsel %vm535_vm2, %v602_v12, %v604_v2  ;;  %v1373_v29 = vsel %vm280_vm0, %v5637_v27, %v4641_v40 }
 0x105   : > { %1829 = vmatmul.bf16.gmra.mxu0 %v1569_v0  ;;  %v6260_v52 = vpack.i.bf16 %v6250_v49, %v6247_v14  ;;  %v682_v44 = vrot.slane %v6217_v21, 2  ;;  %v683_v0 = vrot.slane %v6228_v7, 2  ;;  %v4652_v3 = vunpack.i.h.bf16 %v6098_v31 }
 0x106   : > { %1859 = vmatmul.bf16.vlgmr.msra.gmra.mxu1 %v1587_v15  ;;  %v4651_v8 = vunpack.i.l.bf16 %v6098_v31  ;;  %v4508_v9 = vunpack.c.l.bf16 %v4530_v5  ;;  %v4509_v1 = vunpack.c.h.bf16 %v4530_v5  ;;  %v4717_v15 = vunpack.i.h.bf16 %v4715_v60 }
 0x107   : > { %v6254_v18 = vpop.permute.xlu1 %4704  ;;  %4884 = vrot.lane.b32.xlu1 %v6260_v52, %s5340_s26  ;;  %v4716_v63 = vunpack.i.l.bf16 %v4715_v60  ;;  %v1406_v28 = vsel %vm1395_vm4, %v1373_v29, %v4646_v4  ;;  %v1407_v27 = vsel %vm1395_vm4, %v1374_v37, %v4647_v48  ;;  %v6281_v6 = vsel %vm616_vm3, %v682_v44, %v683_v0  ;;  %v6297_v44 = vpop.permute.xlu2 %4739 }
 0x108   : > { %427 = vst.msk [vmem:[#allocation2 + $0x151] sm:$0xff] %vm280_vm0, %v4508_v9  ;;  %v6284_v31 = vsel %vm616_vm3, %v683_v0, %v685_v59  ;;  %v1439_v40 = vsel %vm1428_vm5, %v1406_v28, %v4651_v8  ;;  %v1440_v60 = vsel %vm1428_vm5, %v1407_v27, %v4652_v3  ;;  %v1386_v25 = vsel %vm280_vm0, %v5823_v30, %v4717_v15 }
 0x109   : > { %428 = vst.msk [vmem:[#allocation2 + $0x159] sm:$0xff] %vm280_vm0, %v4509_v1  ;;  %v1385_v35 = vsel %vm280_vm0, %v5821_v22, %v4716_v63  ;;  %v6295_v37 = vpack.i.bf16 %v6284_v31, %v6281_v6  ;;  %v1572_v29 = vpack.c.bf16 %v1440_v60, %v1439_v40  ;;  %v4656_v22 = vunpack.i.l.bf16 %v6116_v53 }
 0x10a   : > { %v4657_v9 = vunpack.i.h.bf16 %v6116_v53  ;;  %v6318_v40 = vpack.i.bf16 %v6228_v7, %v6217_v21  ;;  %v4531_v53 = vld [vmem:[%s5505_s8 + $0x70] sm:$0xff]  }
 0x10b   : > { %4894 = vrot.lane.b32.xlu0 %v6295_v37, %s5341_s27  ;;  %v1375_v60 = vsel %vm280_vm0, %v5680_v61, %v4656_v22  ;;  %v4512_v61 = vunpack.c.l.bf16 %v4531_v53 }
 0x10c   : > { %v4730_v42 = vpop.permute.xlu0 %4729  ;;  %4874 = vrot.lane.b32.xlu2 %v6318_v40, %s5342_s9 }
 0x10d   : > { %v4732_v2 = vunpack.i.h.bf16 %v4730_v42  ;;  %v4731_v48 = vunpack.i.l.bf16 %v4730_v42  ;;  %v4661_v42 = vunpack.i.l.bf16 %v6147_v10  ;;  %429 = vst.msk [vmem:[#allocation2 + $0x169] sm:$0xff] %vm280_vm0, %v4512_v61 }
 0x10f   : > { %v4720_v12 = vpop.permute.xlu1 %4719  ;;  %4899 = vrot.lane.b32.xlu1 %v5807_v43, %s5342_s9  ;;  %v6306_v8 = vld [vmem:[#allocation2 + $0x150] sm:$0xff] }
 0x110   : > { %v4722_v4 = vunpack.i.h.bf16 %v4720_v12  ;;  %v4721_v5 = vunpack.i.l.bf16 %v4720_v12  ;;  %v6311_v43 = vld [vmem:[#allocation2 + $0x158] sm:$0xff]  ;;  %v477_v15 = vld [vmem:[#allocation2 + $0x160] sm:$0x3]  ;;  %v606_v63 = vrot.slane %v6306_v8, 1 }
 0x111   : > { %v607_v28 = vrot.slane %v6311_v43, 1  ;;  %v609_v27 = vrot.slane %v477_v15, 1 }
 0x112   : > { %v1418_v30 = vsel %vm1395_vm4, %v1385_v35, %v4721_v5  ;;  %v1419_v0 = vsel %vm1395_vm4, %v1386_v25, %v4722_v4  ;;  %v4662_v25 = vunpack.i.h.bf16 %v6147_v10  ;;  %v4666_v10 = vunpack.i.l.bf16 %v6112_v33 }
 0x113   : > { %v1451_v59 = vsel %vm1428_vm5, %v1418_v30, %v4731_v48  ;;  %v1452_v3 = vsel %vm1428_vm5, %v1419_v0, %v4732_v2  ;;  %v6327_v12 = vsel %vm535_vm2, %v606_v63, %v607_v28  ;;  %v6330_v2 = vsel %vm535_vm2, %v607_v28, %v609_v27  ;;  %4909 = vrot.lane.b32.xlu0 %v5847_v24, %s5340_s26 }
 0x114   : > { %v1590_v1 = vpack.c.bf16 %v1452_v3, %v1451_v59  ;;  %8473 = vst [vmem:[#allocation38_spill] sm:$0xff] %v6327_v12  ;;  %v1376_v48 = vsel %vm280_vm0, %v5682_v62, %v4657_v9  ;;  %v4745_v4 = vpop.permute.xlu0 %4744  ;;  %v6336_v5 = vpack.i.bf16 %v6330_v2, %v6327_v12  ;;  %v4667_v30 = vunpack.i.h.bf16 %v6112_v33  ;;  %v4755_v59 = vpop.permute.xlu2 %4754  ;;  %4889 = vrot.lane.b32.xlu2 %v5986_v11, %s5341_s27 }
 0x115   : > { %1834 = vmatmul.bf16.gmra.mxu0 %v1572_v29  ;;  %8474 = vst [vmem:[#allocation39_spill] sm:$0xff] %v6330_v2  ;;  %v4513_v29 = vunpack.c.h.bf16 %v4531_v53  ;;  %v1408_v0 = vsel %vm1395_vm4, %v1375_v60, %v4661_v42  ;;  %v4747_v62 = vunpack.i.h.bf16 %v4745_v4  ;;  %v4746_v22 = vunpack.i.l.bf16 %v4745_v4 }
 0x116   : > { %1864 = vmatmul.bf16.gmra.mxu1 %v1590_v1  ;;  %v1409_v3 = vsel %vm1395_vm4, %v1376_v48, %v4662_v25  ;;  %v1441_v9 = vsel %vm1428_vm5, %v1408_v0, %v4666_v10  ;;  %v4757_v33 = vunpack.i.h.bf16 %v4755_v59  ;;  %v4756_v1 = vunpack.i.l.bf16 %v4755_v59 }
 0x117   : > { %v6324_v35 = vpop.permute.xlu1 %4734  ;;  %4914 = vrot.lane.b32.xlu1 %v6336_v5, %s5340_s26  ;;  %430 = vst.msk [vmem:[#allocation2 + $0x171] sm:$0xff] %vm280_vm0, %v4513_v29  ;;  %v1442_v63 = vsel %vm1428_vm5, %v1409_v3, %v4667_v30  ;;  %v1462_v28 = vsel %vm280_vm0, %v5565_v51, %v4747_v62  ;;  %v1461_v27 = vsel %vm280_vm0, %v5562_v50, %v4746_v22  ;;  %v687_v53 = vrot.slane %v6306_v8, 2  ;;  %v6361_v29 = vld [vmem:[#allocation2 + $0x168] sm:$0xff] }
 0x118   : > { %v688_v60 = vrot.slane %v6311_v43, 2  ;;  %v690_v24 = vrot.slane %v477_v15, 2  ;;  %v1575_v4 = vpack.c.bf16 %v1442_v63, %v1441_v9  ;;  %v611_v62 = vrot.slane %v6361_v29, 1 }
 0x119   : > { %v4676_v11 = vunpack.i.l.bf16 %v6186_v47 }
 0x11a   : > { %v6359_v10 = vsel %vm616_vm3, %v687_v53, %v688_v60  ;;  %v6368_v50 = vsel %vm616_vm3, %v688_v60, %v690_v24 }
 0x11b   : > { %v6377_v3 = vpack.i.bf16 %v6368_v50, %v6359_v10 }
 0x11c   : > { %v4760_v61 = vpop.permute.xlu0 %4759 }
 0x11d   : > { %v4761_v63 = vunpack.i.l.bf16 %v4760_v61  ;;  %4924 = vrot.lane.b32.xlu0 %v6377_v3, %s5341_s27 }
 0x11e   : > { %v6370_v0 = vld [vmem:[#allocation2 + $0x170] sm:$0xff]  ;;  %v480_v15 = vld [vmem:[#allocation2 + $0x178] sm:$0x3] }
 0x11f   : > { %v4750_v42 = vpop.permute.xlu1 %4749  ;;  %4929 = vrot.lane.b32.xlu1 %v5871_v36, %s5342_s9  ;;  %v612_v36 = vrot.slane %v6370_v0, 1 }
 0x120   : > { %v4752_v25 = vunpack.i.h.bf16 %v4750_v42  ;;  %v4751_v48 = vunpack.i.l.bf16 %v4750_v42  ;;  %v4672_v42 = vunpack.i.h.bf16 %v6143_v19 }
 0x122   : > { %v1494_v51 = vsel %vm1395_vm4, %v1462_v28, %v4752_v25  ;;  %v1493_v30 = vsel %vm1395_vm4, %v1461_v27, %v4751_v48  ;;  %v614_v28 = vrot.slane %v480_v15, 1  ;;  %v4762_v27 = vunpack.i.h.bf16 %v4760_v61 }
 0x123   : > { %v1525_v22 = vsel %vm1428_vm5, %v1493_v30, %v4756_v1  ;;  %v1526_v59 = vsel %vm1428_vm5, %v1494_v51, %v4757_v33  ;;  %v4671_v1 = vunpack.i.l.bf16 %v6143_v19  ;;  %v6387_v33 = vsel %vm535_vm2, %v611_v62, %v612_v36  ;;  %v8477_v30 = vld [vmem:[#allocation4_spill] sm:$0xff] }
 0x124   : > { %v1558_v9 = vpack.c.bf16 %v1526_v59, %v1525_v22  ;;  %8475 = vst [vmem:[#allocation40_spill] sm:$0xff] %v6387_v33  ;;  %v6390_v53 = vsel %vm535_vm2, %v612_v36, %v614_v28  ;;  %v1463_v48 = vsel %vm280_vm0, %v5571_v56, %v4761_v63  ;;  %v4677_v61 = vunpack.i.h.bf16 %v6186_v47  ;;  %v5296_v22 = vld [vmem:[#allocation2 + $0xb0] sm:$0xff] }
 0x125   : > { %1839 = vmatmul.bf16.gmra.mxu0 %v1575_v4  ;;  %8476 = vst [vmem:[#allocation41_spill] sm:$0xff] %v6390_v53  ;;  %v6394_v25 = vpack.i.bf16 %v6390_v53, %v6387_v33  ;;  %v4770_v4 = vpop.permute.xlu2 %4769  ;;  %v4682_v51 = vunpack.i.h.bf16 %v6130_v45  ;;  %v1464_v62 = vsel %vm280_vm0, %v8477_v30, %v4762_v27  ;;  %v1378_v59 = vsel %vm280_vm0, %v5296_v22, %v4672_v42  ;;  %v8495_v33 = vld [vmem:[#allocation15_spill] sm:$0xff]  ;;  %v8496_v53 = vld [vmem:[#allocation16_spill] sm:$0xff] }
 0x126   : > { %1898 = vmatmul.bf16.vlgmr.msrb.gmra.mxu1 %v1558_v9  ;;  %v5297_v9 = vld [vmem:[#allocation2 + $0xa8] sm:$0xff]  ;;  %v4681_v56 = vunpack.i.l.bf16 %v6130_v45  ;;  %v4772_v63 = vunpack.i.h.bf16 %v4770_v4  ;;  %v4771_v28 = vunpack.i.l.bf16 %v4770_v4  ;;  %v692_v42 = vrot.slane %v6361_v29, 2  ;;  %4939 = vrot.lane.b32.xlu0 %v5920_v13, %s5340_s26 }
 0x127   : > { %v4765_v60 = vpop.permute.xlu1 %4764  ;;  %v1377_v36 = vsel %vm280_vm0, %v5297_v9, %v4671_v1  ;;  %4944 = vrot.lane.b32.xlu1 %v6394_v25, %s5340_s26  ;;  %v693_v30 = vrot.slane %v6370_v0, 2  ;;  %v695_v1 = vrot.slane %v480_v15, 2  ;;  %v1411_v22 = vsel %vm1395_vm4, %v1378_v59, %v4677_v61  ;;  %v5298_v9 = vld [vmem:[#allocation2 + $0x108] sm:$0xff] }
 0x128   : > { %v4767_v24 = vunpack.i.h.bf16 %v4765_v60  ;;  %v4766_v19 = vunpack.i.l.bf16 %v4765_v60  ;;  %v6411_v60 = vpack.i.bf16 %v6311_v43, %v6306_v8  ;;  %v1410_v45 = vsel %vm1395_vm4, %v1377_v36, %v4676_v11  ;;  %v5299_v36 = vld [vmem:[#allocation2 + $0x110] sm:$0xff] }
 0x129   : > { %v1443_v4 = vsel %vm1428_vm5, %v1410_v45, %v4681_v56  ;;  %v1444_v61 = vsel %vm1428_vm5, %v1411_v22, %v4682_v51  ;;  %v4697_v51 = vunpack.i.h.bf16 %v6160_v17  ;;  %v4696_v56 = vunpack.i.l.bf16 %v6160_v17  ;;  %v8480_v22 = vld [vmem:[#allocation6_spill] sm:$0xff]  ;;  %v5300_v17 = vld [vmem:[#allocation2 + $0xc8] sm:$0xff] }
 0x12a   : > { %v1495_v47 = vsel %vm1395_vm4, %v1463_v48, %v4766_v19  ;;  %v1496_v27 = vsel %vm1395_vm4, %v1464_v62, %v4767_v24  ;;  %4904 = vrot.lane.b32.xlu2 %v6411_v60, %s5342_s9  ;;  %v6423_v48 = vsel %vm616_vm3, %v692_v42, %v693_v30  ;;  %v6426_v24 = vsel %vm616_vm3, %v693_v30, %v695_v1  ;;  %v4775_v62 = vpop.permute.xlu0 %4774 }
 0x12b   : > { %8478 = vst [vmem:[#allocation4_spill] sm:$0xff] %v6423_v48  ;;  %v1527_v19 = vsel %vm1428_vm5, %v1495_v47, %v4771_v28  ;;  %v1528_v15 = vsel %vm1428_vm5, %v1496_v27, %v4772_v63  ;;  %v6434_v13 = vpack.i.bf16 %v6426_v24, %v6423_v48  ;;  %v1578_v59 = vpack.c.bf16 %v1444_v61, %v1443_v4 }
 0x12c   : > { %8479 = vst [vmem:[#allocation42_spill] sm:$0xff] %v6426_v24  ;;  %v1561_v11 = vpack.c.bf16 %v1528_v15, %v1527_v19  ;;  %v4918_v42 = vpack.i.bf16 %v5299_v36, %v5298_v9  ;;  %v4777_v28 = vunpack.i.h.bf16 %v4775_v62  ;;  %v4776_v63 = vunpack.i.l.bf16 %v4775_v62  ;;  %v8481_v15 = vld [vmem:[#allocation5_spill] sm:$0xff] }
 0x12d   : > { %v4785_v1 = vpop.permute.xlu2 %4784  ;;  %v4706_v45 = vunpack.i.l.bf16 %v6254_v18  ;;  %v1380_v61 = vsel %vm280_vm0, %v5300_v17, %v4697_v51  ;;  %v6457_v9 = vpack.i.bf16 %v6370_v0, %v6361_v29  ;;  %v4712_v36 = vunpack.i.h.bf16 %v6205_v55 }
 0x12e   : > { %4954 = vrot.lane.b32.xlu0 %v6434_v13, %s5341_s27  ;;  %v1466_v19 = vsel %vm280_vm0, %v8480_v22, %v4777_v28  ;;  %v1465_v4 = vsel %vm280_vm0, %v8481_v15, %v4776_v63 }
 0x12f   : > { %4959 = vrot.lane.b32.xlu1 %v6171_v46, %s5342_s9  ;;  %v4780_v47 = vpop.permute.xlu1 %4779  ;;  %v4707_v46 = vunpack.i.h.bf16 %v6254_v18  ;;  %v4786_v18 = vunpack.i.l.bf16 %v4785_v1 }
 0x130   : > { %v4782_v27 = vunpack.i.h.bf16 %v4780_v47  ;;  %v4781_v30 = vunpack.i.l.bf16 %v4780_v47 }
 0x131   : > { %v1413_v51 = vsel %vm1395_vm4, %v1380_v61, %v4707_v46  ;;  %v2188_v46 = vld [vmem:[#allocation3] sm:$0xff]  ;;  %v6493_v61 = vld [vmem:[#allocation2 + $0x120] sm:$0xff] }
 0x132   : > { %4919 = vrot.lane.b32.xlu2 %v4918_v42, %s5341_s27  ;;  %v4711_v42 = vunpack.i.l.bf16 %v6205_v55  ;;  %v1497_v28 = vsel %vm1395_vm4, %v1465_v4, %v4781_v30  ;;  %v1498_v63 = vsel %vm1395_vm4, %v1466_v19, %v4782_v27  ;;  %v2189_v27 = vld [vmem:[#allocation3 + $0x8] sm:$0xff]  ;;  %v2190_v30 = vld [vmem:[#allocation3 + $0x10] sm:$0x3]  ;;  %v4790_v4 = vpop.permute.xlu0 %4789 }
 0x133   : > { %v1529_v55 = vsel %vm1428_vm5, %v1497_v28, %v4786_v18  ;;  %v2293_v22 = vrot.slane %v2190_v30, 1  ;;  %v4792_v28 = vunpack.i.h.bf16 %v4790_v4  ;;  %v4736_v30 = vunpack.i.l.bf16 %v6324_v35 }
 0x135   : > { %1844 = vmatmul.bf16.gmra.mxu0 %v1578_v59  ;;  %v4787_v59 = vunpack.i.h.bf16 %v4785_v1  ;;  %v2290_v1 = vrot.slane %v2188_v46, 1  ;;  %v4800_v46 = vpop.permute.xlu2 %4799 }
 0x136   : > { %1903 = vmatmul.bf16.gmra.mxu1 %v1561_v11  ;;  %v5301_v11 = vld [vmem:[#allocation2 + $0xc0] sm:$0xff]  ;;  %4969 = vrot.lane.b32.xlu0 %v6234_v23, %s5340_s26 }
 0x137   : > { %v1379_v62 = vsel %vm280_vm0, %v5301_v11, %v4696_v56  ;;  %4974 = vrot.lane.b32.xlu1 %v6318_v40, %s5341_s27  ;;  %v1530_v56 = vsel %vm1428_vm5, %v1498_v63, %v4787_v59  ;;  %v1446_v40 = vsel %vm1428_vm5, %v1413_v51, %v4712_v36  ;;  %v6495_v11 = vld [vmem:[#allocation2 + $0x128] sm:$0xff]  ;;  %v4791_v63 = vunpack.i.l.bf16 %v4790_v4  ;;  %v5304_v4 = vld [vmem:[#allocation2 + $0xe0] sm:$0xff] }
 0x138   : > { %v1412_v47 = vsel %vm1395_vm4, %v1379_v62, %v4706_v45  ;;  %v2291_v45 = vrot.slane %v2189_v27, 1  ;;  %v1564_v15 = vpack.c.bf16 %v1530_v56, %v1529_v55  ;;  %v4948_v62 = vpack.i.bf16 %v6495_v11, %v6493_v61 }
 0x139   : > { %v1445_v23 = vsel %vm1428_vm5, %v1412_v47, %v4711_v42  ;;  %v4532_v42 = vld [vmem:[%s5505_s8 + $0x78] sm:$0xff]   ;;  %v4795_v47 = vpop.permute.xlu1 %4794  ;;  %v4727_v51 = vunpack.i.h.bf16 %v6256_v41  ;;  %v4726_v55 = vunpack.i.l.bf16 %v6256_v41  ;;  %v4737_v27 = vunpack.i.h.bf16 %v6324_v35 }
 0x13a   : > { %4934 = vrot.lane.b32.xlu2 %v6457_v9, %s5342_s9  ;;  %v1581_v17 = vpack.c.bf16 %v1446_v40, %v1445_v23  ;;  %v2292_v59 = vsel %vm535_vm2, %v2290_v1, %v2291_v45  ;;  %v2294_v18 = vsel %vm535_vm2, %v2291_v45, %v2293_v22  ;;  %v4516_v56 = vunpack.c.l.bf16 %v4532_v42  ;;  %v8482_v1 = vld [vmem:[#allocation10_spill] sm:$0xff]  ;;  %v8483_v22 = vld [vmem:[#allocation9_spill] sm:$0xff] }
 0x13b   : > { %v4983_v36 = vpack.i.bf16 %v2294_v18, %v2292_v59  ;;  %v4797_v23 = vunpack.i.h.bf16 %v4795_v47  ;;  %v4796_v40 = vunpack.i.l.bf16 %v4795_v47  ;;  %v4517_v41 = vunpack.c.h.bf16 %v4532_v42 }
 0x13c   : > { %v1468_v45 = vsel %vm280_vm0, %v8482_v1, %v4792_v28  ;;  %v4802_v35 = vunpack.i.h.bf16 %v4800_v46  ;;  %v4801_v18 = vunpack.i.l.bf16 %v4800_v46  ;;  %431 = vst.msk [vmem:[#allocation2 + $0x181] sm:$0xff] %vm280_vm0, %v4516_v56  ;;  %v4741_v42 = vunpack.i.l.bf16 %v6297_v44  ;;  %v4805_v46 = vpop.permute.xlu0 %4804 }
 0x13d   : > { %432 = vst.msk [vmem:[#allocation2 + $0x189] sm:$0xff] %vm280_vm0, %v4517_v41 }
 0x13e   : > { %4984 = vrot.lane.b32.xlu0 %v4983_v36, %s5341_s27  ;;  %v4742_v36 = vunpack.i.h.bf16 %v6297_v44 }
 0x13f   : > { %4989 = vrot.lane.b32.xlu1 %v6295_v37, %s5340_s26 }
 0x142   : > { %v6489_v19 = vpop.f32.mrf.mxu0  ;;  %4949 = vrot.lane.b32.xlu2 %v4948_v62, %s5341_s27  ;;  %v5305_v62 = vld [vmem:[#allocation2 + $0xd8] sm:$0xff] }
 0x143   : > { %v1381_v37 = vsel %vm280_vm0, %v5305_v62, %v4726_v55  ;;  %v6550_v41 = vld [vmem:[#allocation2 + $0x180] sm:$0xff]  ;;  %v8484_v62 = vld [vmem:[#allocation14_spill] sm:$0xff] }
 0x144   : > { %v1414_v47 = vsel %vm1395_vm4, %v1381_v37, %v4736_v30  ;;  %v6552_v1 = vld [vmem:[#allocation2 + $0x188] sm:$0xff] }
 0x145   : > { %1849 = vmatmul.bf16.gmra.mxu0 %v1581_v17  ;;  %v1382_v17 = vsel %vm280_vm0, %v5304_v4, %v4727_v51  ;;  %v1447_v56 = vsel %vm1428_vm5, %v1414_v47, %v4741_v42 }
 0x146   : > { %1908 = vmatmul.bf16.gmra.mxu1 %v1564_v15  ;;  %v1467_v15 = vsel %vm280_vm0, %v8483_v22, %v4791_v63  ;;  %v1500_v63 = vsel %vm1395_vm4, %v1468_v45, %v4797_v23  ;;  %v1415_v51 = vsel %vm1395_vm4, %v1382_v17, %v4737_v27  ;;  %4999 = vrot.lane.b32.xlu0 %v6336_v5, %s5342_s9  ;;  %v4807_v45 = vunpack.i.h.bf16 %v4805_v46  ;;  %v4810_v22 = vpop.permute.xlu1 %4809  ;;  %v4815_v17 = vpop.permute.xlu2 %4814 }
 0x147   : > { %v1499_v28 = vsel %vm1395_vm4, %v1467_v15, %v4796_v40  ;;  %v1532_v55 = vsel %vm1428_vm5, %v1500_v63, %v4802_v35  ;;  %v1448_v44 = vsel %vm1428_vm5, %v1415_v51, %v4742_v36  ;;  %v6556_v27 = vpack.i.bf16 %v6552_v1, %v6550_v41  ;;  %v8485_v35 = vld [vmem:[#allocation13_spill] sm:$0xff] }
 0x148   : > { %v1531_v38 = vsel %vm1428_vm5, %v1499_v28, %v4801_v18  ;;  %v1584_v30 = vpack.c.bf16 %v1448_v44, %v1447_v56  ;;  %v4806_v5 = vunpack.i.l.bf16 %v4805_v46  ;;  %v4812_v15 = vunpack.i.h.bf16 %v4810_v22  ;;  %v8486_v56 = vld [vmem:[#allocation7_spill] sm:$0xff]  ;;  %v8487_v44 = vld [vmem:[#allocation8_spill] sm:$0xff] }
 0x149   : > { %v1567_v23 = vpack.c.bf16 %v1532_v55, %v1531_v38  ;;  %v4811_v4 = vunpack.i.l.bf16 %v4810_v22  ;;  %v1470_v37 = vsel %vm280_vm0, %v8484_v62, %v4807_v45  ;;  %v4817_v42 = vunpack.i.h.bf16 %v4815_v17  ;;  %v4820_v45 = vpop.permute.xlu0 %4819  ;;  %v8488_v62 = vld [vmem:[#allocation18_spill] sm:$0xff] }
 0x14a   : > { %v6530_v59 = vpop.f32.mrf.mxu0  ;;  %4964 = vrot.lane.b32.xlu2 %v6556_v27, %s5342_s9  ;;  %v1469_v18 = vsel %vm280_vm0, %v8485_v35, %v4806_v5  ;;  %v4816_v28 = vunpack.i.l.bf16 %v4815_v17  ;;  %v1502_v47 = vsel %vm1395_vm4, %v1470_v37, %v4812_v15  ;;  %v4822_v5 = vunpack.i.h.bf16 %v4820_v45  ;;  %v8489_v35 = vld [vmem:[#allocation17_spill] sm:$0xff] }
 0x14b   : > { %v1501_v63 = vsel %vm1395_vm4, %v1469_v18, %v4811_v4  ;;  %v1534_v38 = vsel %vm1428_vm5, %v1502_v47, %v4817_v42  ;;  %v4821_v22 = vunpack.i.l.bf16 %v4820_v45 }
 0x14c   : > { %v1533_v51 = vsel %vm1428_vm5, %v1501_v63, %v4816_v28  ;;  %v1472_v37 = vsel %vm280_vm0, %v8488_v62, %v4822_v5 }
 0x14d   : > { %v1471_v18 = vsel %vm280_vm0, %v8489_v35, %v4821_v22 }
 0x14e   : > { %v4825_v55 = vpop.permute.xlu1 %4824  ;;  %v4830_v17 = vpop.permute.xlu2 %4829  ;;  %5014 = vrot.lane.b32.xlu0 %v6457_v9, %s5341_s27 }
 0x14f   : > { %v4827_v15 = vunpack.i.h.bf16 %v4825_v55  ;;  %v4826_v4 = vunpack.i.l.bf16 %v4825_v55  ;;  %v4832_v63 = vunpack.i.h.bf16 %v4830_v17  ;;  %v4831_v47 = vunpack.i.l.bf16 %v4830_v17 }
 0x151   : > { %v4835_v28 = vpop.permute.xlu0 %4834 }
 0x152   : > { %v6548_v40 = vpop.f32.mrf.mxu0  ;;  %4979 = vrot.lane.b32.xlu2 %v6260_v52, %s5342_s9  ;;  %v4837_v17 = vunpack.i.h.bf16 %v4835_v28  ;;  %v4836_v35 = vunpack.i.l.bf16 %v4835_v28 }
 0x155   : > { %1854 = vmatmul.bf16.gmra.mxu0 %v1584_v30  ;;  %v1570_v30 = vpack.c.bf16 %v1534_v38, %v1533_v51  ;;  %v1503_v51 = vsel %vm1395_vm4, %v1471_v18, %v4826_v4  ;;  %v1504_v38 = vsel %vm1395_vm4, %v1472_v37, %v4827_v15  ;;  %v8492_v18 = vld [vmem:[#allocation22_spill] sm:$0xff] }
 0x156   : > { %1913 = vmatmul.bf16.gmra.mxu1 %v1567_v23  ;;  %v1559_v23 = vpack.c.bf16 %v8487_v44, %v8486_v56  ;;  %v4840_v52 = vpop.permute.xlu1 %4839  ;;  %v1536_v55 = vsel %vm1428_vm5, %v1504_v38, %v4832_v63  ;;  %v4845_v56 = vpop.permute.xlu2 %4844  ;;  %v8490_v44 = vld [vmem:[#allocation11_spill] sm:$0xff]  ;;  %v1474_v63 = vsel %vm280_vm0, %v8492_v18, %v4837_v17  ;;  %v1565_v17 = vpack.c.bf16 %v8496_v53, %v8495_v33 }
 0x157   : > { %v4842_v4 = vunpack.i.h.bf16 %v4840_v52  ;;  %v4841_v15 = vunpack.i.l.bf16 %v4840_v52  ;;  %v8500_v33 = vld [vmem:[#allocation35_spill] sm:$0xff]  ;;  %5029 = vrot.lane.b32.xlu0 %v6434_v13, %s5340_s26 }
 0x159   : > { %v4850_v62 = vpop.permute.xlu0 %4849 }
 0x15a   : > { %v6564_v36 = vpop.f32.mrf.mxu0  ;;  %4994 = vrot.lane.b32.xlu2 %v6411_v60, %s5341_s27  ;;  %v1535_v60 = vsel %vm1428_vm5, %v1503_v51, %v4831_v47  ;;  %v8493_v47 = vld [vmem:[#allocation21_spill] sm:$0xff] }
 0x15b   : > { %v1573_v22 = vpack.c.bf16 %v1536_v55, %v1535_v60  ;;  %v1473_v51 = vsel %vm280_vm0, %v8493_v47, %v4836_v35 }
 0x15c   : > { %v1505_v55 = vsel %vm1395_vm4, %v1473_v51, %v4841_v15  ;;  %v4851_v15 = vunpack.i.l.bf16 %v4850_v62 }
 0x15e   : > { %v4855_v45 = vpop.permute.xlu1 %4854  ;;  %v4860_v37 = vpop.permute.xlu2 %4859  ;;  %v1475_v53 = vsel %vm280_vm0, %v8500_v33, %v4851_v15  ;;  %v8503_v15 = vld [vmem:[#allocation19_spill] sm:$0xff]  ;;  %v8504_v33 = vld [vmem:[#allocation20_spill] sm:$0xff] }
 0x15f   : > { %v4857_v24 = vunpack.i.h.bf16 %v4855_v45  ;;  %v4856_v48 = vunpack.i.l.bf16 %v4855_v45 }
 0x161   : > { %v1387_v45 = vsel %vm280_vm0, %v6493_v61, %v4856_v48 }
 0x162   : > { %v6574_v46 = vpop.f32.mrf.mxu0  ;;  %5009 = vrot.lane.b32.xlu2 %v6377_v3, %s5340_s26  ;;  %v8517_v3 = vld [vmem:[#allocation37_spill] sm:$0xff] }
 0x165   : > { %4184 = vmatmul.msk.bf16.vlgmr.msrb.gmra.mxu0 %vm280_vm0, %v1559_v23  ;;  %v8491_v23 = vld [vmem:[#allocation12_spill] sm:$0xff] }
 0x166   : > { %1918 = vmatmul.bf16.gmra.mxu1 %v1570_v30  ;;  %v1562_v30 = vpack.c.bf16 %v8491_v23, %v8490_v44  ;;  %v4847_v44 = vunpack.i.h.bf16 %v4845_v56  ;;  %v4846_v23 = vunpack.i.l.bf16 %v4845_v56  ;;  %v4870_v60 = vpop.permute.xlu1 %4869  ;;  %v4875_v47 = vpop.permute.xlu2 %4874  ;;  %v4852_v56 = vunpack.i.h.bf16 %v4850_v62 }
 0x16a   : > { %v6583_v42 = vpop.f32.mrf.mxu0 }
 0x16b   : > { %v4865_v28 = vpop.permute.xlu0 %4864 }
 0x172   : > { %v6591_v5 = vpop.f32.mrf.mxu0 }
 0x175   : > { %4185 = vmatmul.msk.bf16.gmra.mxu0 %vm280_vm0, %v1562_v30  ;;  %v1506_v30 = vsel %vm1395_vm4, %v1474_v63, %v4842_v4  ;;  %v4880_v4 = vpop.permute.xlu0 %4879  ;;  %v4862_v63 = vunpack.i.h.bf16 %v4860_v37 }
 0x176   : > { %1923 = vmatmul.bf16.gmra.mxu1 %v1573_v22  ;;  %v1537_v22 = vsel %vm1428_vm5, %v1505_v55, %v4846_v23  ;;  %v1538_v52 = vsel %vm1428_vm5, %v1506_v30, %v4847_v44  ;;  %v4861_v23 = vunpack.i.l.bf16 %v4860_v37  ;;  %v8499_v44 = vld [vmem:[#allocation36_spill] sm:$0xff] }
 0x177   : > { %v1576_v35 = vpack.c.bf16 %v1538_v52, %v1537_v22  ;;  %v1476_v55 = vsel %vm280_vm0, %v8499_v44, %v4852_v56  ;;  %v4872_v52 = vunpack.i.h.bf16 %v4870_v60 }
 0x178   : > { %v1507_v62 = vsel %vm1395_vm4, %v1475_v53, %v4861_v23  ;;  %v1508_v2 = vsel %vm1395_vm4, %v1476_v55, %v4862_v63  ;;  %v1388_v63 = vsel %vm280_vm0, %v6495_v11, %v4857_v24  ;;  %v4877_v55 = vunpack.i.h.bf16 %v4875_v47 }
 0x179   : > { %v6611_v51 = vpop.permute.xlu1 %4884  ;;  %v1540_v56 = vsel %vm1428_vm5, %v1508_v2, %v4872_v52  ;;  %v4876_v2 = vunpack.i.l.bf16 %v4875_v47  ;;  %v4882_v53 = vunpack.i.h.bf16 %v4880_v4  ;;  %v4881_v52 = vunpack.i.l.bf16 %v4880_v4 }
 0x17a   : > { %v6598_v38 = vpop.f32.mrf.mxu0 }
 0x17b   : > { %8494 = vst [vmem:[#allocation6_spill] sm:$0xff] %v6598_v38  ;;  %v1478_v47 = vsel %vm280_vm0, %v5942_v16, %v4882_v53  ;;  %v1589_v16 = vpack.c.bf16 %v6226_v26, %v6223_v57  ;;  %v8505_v53 = vld [vmem:[#allocation23_spill] sm:$0xff] }
 0x17d   : > { %4194 = vmatmul.msk.bf16.vlgmr.msra.gmra.mxu2 %vm280_vm0, %v1589_v16 }
 0x181   : > { %v4900_v44 = vpop.permute.xlu1 %4899 }
 0x182   : > { %v6606_v18 = vpop.f32.mrf.mxu0 }
 0x183   : > { %8497 = vst [vmem:[#allocation5_spill] sm:$0xff] %v6606_v18  ;;  %v6608_v12 = vpop.f32.mrf.mxu1 }
 0x184   : > { %8498 = vst [vmem:[#allocation10_spill] sm:$0xff] %v6608_v12  ;;  %v4895_v12 = vpop.permute.xlu0 %4894 }
 0x185   : > { %4186 = vmatmul.msk.bf16.gmra.mxu0 %vm280_vm0, %v1565_v17  ;;  %v4871_v17 = vunpack.i.l.bf16 %v4870_v60  ;;  %v4866_v60 = vunpack.i.l.bf16 %v4865_v28 }
 0x186   : > { %1928 = vmatmul.bf16.gmra.mxu1 %v1576_v35  ;;  %v4890_v35 = vpop.permute.xlu2 %4889 }
 0x187   : > { %v1539_v37 = vsel %vm1428_vm5, %v1507_v62, %v4871_v17  ;;  %v1420_v62 = vsel %vm1395_vm4, %v1387_v45, %v4866_v60  ;;  %v4892_v11 = vunpack.i.h.bf16 %v4890_v35  ;;  %v4891_v48 = vunpack.i.l.bf16 %v4890_v35 }
 0x188   : > { %v1579_v38 = vpack.c.bf16 %v1540_v56, %v1539_v37  ;;  %v1453_v37 = vsel %vm1428_vm5, %v1420_v62, %v4876_v2 }
 0x189   : > { %v6644_v4 = vpop.permute.xlu1 %4914  ;;  %v1510_v35 = vsel %vm1395_vm4, %v1478_v47, %v4892_v11 }
 0x18a   : > { %v6617_v30 = vpop.f32.mrf.mxu0 }
 0x18b   : > { %8501 = vst [vmem:[#allocation9_spill] sm:$0xff] %v6617_v30  ;;  %v6619_v22 = vpop.f32.mrf.mxu1  ;;  %v1568_v30 = vpack.c.bf16 %v8504_v33, %v8503_v15  ;;  %v4902_v15 = vunpack.i.h.bf16 %v4900_v44  ;;  %v4901_v33 = vunpack.i.l.bf16 %v4900_v44  ;;  %v8506_v44 = vld [vmem:[#allocation24_spill] sm:$0xff] }
 0x18c   : > { %8502 = vst [vmem:[#allocation14_spill] sm:$0xff] %v6619_v22  ;;  %v4867_v22 = vunpack.i.h.bf16 %v4865_v28  ;;  %v4910_v56 = vpop.permute.xlu0 %4909 }
 0x18e   : > { %v4905_v17 = vpop.permute.xlu2 %4904  ;;  %v1421_v28 = vsel %vm1395_vm4, %v1388_v63, %v4867_v22  ;;  %v4886_v63 = vunpack.i.l.bf16 %v6611_v51 }
 0x18f   : > { %v1454_v24 = vsel %vm1428_vm5, %v1421_v28, %v4877_v55  ;;  %v1542_v55 = vsel %vm1428_vm5, %v1510_v35, %v4902_v15  ;;  %v4897_v28 = vunpack.i.h.bf16 %v4895_v12  ;;  %v4907_v11 = vunpack.i.h.bf16 %v4905_v17 }
 0x190   : > { %v1593_v61 = vpack.c.bf16 %v1454_v24, %v1453_v37  ;;  %v4896_v37 = vunpack.i.l.bf16 %v4895_v12  ;;  %v1389_v26 = vsel %vm280_vm0, %v6217_v21, %v4886_v63  ;;  %v4911_v15 = vunpack.i.l.bf16 %v4910_v56  ;;  %v8508_v63 = vld [vmem:[#allocation25_spill] sm:$0xff] }
 0x192   : > { %v6627_v18 = vpop.f32.mrf.mxu0  ;;  %1869 = vmatmul.bf16.vlgmr.msra.gmra.mxu3 %v1593_v61  ;;  %v4930_v61 = vpop.permute.xlu1 %4929  ;;  %v1422_v12 = vsel %vm1395_vm4, %v1389_v26, %v4896_v37  ;;  %v4917_v26 = vunpack.i.h.bf16 %v6644_v4 }
 0x193   : > { %v6633_v23 = vpop.f32.mrf.mxu1 }
 0x194   : > { %v4925_v47 = vpop.permute.xlu0 %4924 }
 0x195   : > { %4187 = vmatmul.msk.bf16.gmra.mxu0 %vm280_vm0, %v1568_v30  ;;  %v1477_v30 = vsel %vm280_vm0, %v5939_v58, %v4881_v52  ;;  %v4887_v58 = vunpack.i.h.bf16 %v6611_v51  ;;  %v1571_v52 = vpack.c.bf16 %v8506_v44, %v8505_v53  ;;  %v4932_v44 = vunpack.i.h.bf16 %v4930_v61 }
 0x196   : > { %1933 = vmatmul.bf16.gmra.mxu1 %v1579_v38  ;;  %v1509_v60 = vsel %vm1395_vm4, %v1477_v30, %v4891_v48  ;;  %v4920_v2 = vpop.permute.xlu2 %4919  ;;  %v4906_v48 = vunpack.i.l.bf16 %v4905_v17  ;;  %v4912_v30 = vunpack.i.h.bf16 %v4910_v56 }
 0x197   : > { %v1541_v45 = vsel %vm1428_vm5, %v1509_v60, %v4901_v33  ;;  %v1390_v57 = vsel %vm280_vm0, %v6228_v7, %v4887_v58  ;;  %v4922_v21 = vunpack.i.h.bf16 %v4920_v2  ;;  %v4921_v35 = vunpack.i.l.bf16 %v4920_v2  ;;  %v8507_v58 = vld [vmem:[#allocation26_spill] sm:$0xff] }
 0x198   : > { %v1582_v24 = vpack.c.bf16 %v1542_v55, %v1541_v45  ;;  %v1423_v33 = vsel %vm1395_vm4, %v1390_v57, %v4897_v28  ;;  %v1455_v7 = vsel %vm1428_vm5, %v1422_v12, %v4906_v48  ;;  %v1480_v17 = vsel %vm280_vm0, %v8507_v58, %v4912_v30 }
 0x199   : > { %v1456_v60 = vsel %vm1428_vm5, %v1423_v33, %v4907_v11  ;;  %v1479_v45 = vsel %vm280_vm0, %v8508_v63, %v4911_v15  ;;  %v1512_v37 = vsel %vm1395_vm4, %v1480_v17, %v4922_v21  ;;  %v1592_v2 = vpack.c.bf16 %v6284_v31, %v6281_v6  ;;  %v8510_v15 = vld [vmem:[#allocation28_spill] sm:$0xff] }
 0x19a   : > { %v6646_v38 = vpop.f32.mrf.mxu0  ;;  %v1596_v16 = vpack.c.bf16 %v1456_v60, %v1455_v7  ;;  %v1511_v28 = vsel %vm1395_vm4, %v1479_v45, %v4921_v35  ;;  %v4916_v11 = vunpack.i.l.bf16 %v6644_v4  ;;  %v1544_v30 = vsel %vm1428_vm5, %v1512_v37, %v4932_v44 }
 0x19b   : > { %v6648_v22 = vpop.f32.mrf.mxu1  ;;  %4195 = vmatmul.msk.bf16.gmra.mxu2 %vm280_vm0, %v1592_v2  ;;  %v4927_v7 = vunpack.i.h.bf16 %v4925_v47  ;;  %v4926_v60 = vunpack.i.l.bf16 %v4925_v47  ;;  %v1392_v31 = vsel %vm280_vm0, %v6311_v43, %v4917_v26 }
 0x19c   : > { %v4940_v57 = vpop.permute.xlu0 %4939  ;;  %v1391_v21 = vsel %vm280_vm0, %v6306_v8, %v4916_v11  ;;  %v8512_v11 = vld [vmem:[#allocation31_spill] sm:$0xff] }
 0x19d   : > { %v4942_v17 = vunpack.i.h.bf16 %v4940_v57  ;;  %v4941_v63 = vunpack.i.l.bf16 %v4940_v57  ;;  %v1424_v45 = vsel %vm1395_vm4, %v1391_v21, %v4926_v60  ;;  %v1425_v47 = vsel %vm1395_vm4, %v1392_v31, %v4927_v7 }
 0x19e   : > { %v4935_v56 = vpop.permute.xlu2 %4934  ;;  %v1595_v60 = vpack.c.bf16 %v6368_v50, %v6359_v10 }
 0x19f   : > { %v4937_v4 = vunpack.i.h.bf16 %v4935_v56  ;;  %v1481_v57 = vsel %vm280_vm0, %v8512_v11, %v4941_v63 }
 0x1a1   : > { %v1458_v43 = vsel %vm1428_vm5, %v1425_v47, %v4937_v4 }
 0x1a2   : > { %v6661_v62 = vpop.f32.mrf.mxu0  ;;  %1874 = vmatmul.bf16.gmra.mxu3 %v1596_v16  ;;  %v4936_v16 = vunpack.i.l.bf16 %v4935_v56  ;;  %v8511_v56 = vld [vmem:[#allocation32_spill] sm:$0xff] }
 0x1a3   : > { %v6667_v51 = vpop.f32.mrf.mxu1  ;;  %v1482_v26 = vsel %vm280_vm0, %v8511_v56, %v4942_v17  ;;  %v8514_v17 = vld [vmem:[#allocation34_spill] sm:$0xff] }
 0x1a4   : > { %v1457_v44 = vsel %vm1428_vm5, %v1424_v45, %v4936_v16  ;;  %v4955_v37 = vpop.permute.xlu0 %4954 }
 0x1a5   : > { %4188 = vmatmul.msk.bf16.gmra.mxu0 %vm280_vm0, %v1571_v52  ;;  %v4931_v52 = vunpack.i.l.bf16 %v4930_v61  ;;  %v8509_v61 = vld [vmem:[#allocation27_spill] sm:$0xff]  ;;  %v1599_v2 = vpack.c.bf16 %v1458_v43, %v1457_v44  ;;  %v4956_v10 = vunpack.i.l.bf16 %v4955_v37 }
 0x1a6   : > { %1938 = vmatmul.bf16.gmra.mxu1 %v1582_v24  ;;  %v4945_v24 = vpop.permute.xlu1 %4944  ;;  %v1574_v12 = vpack.c.bf16 %v8510_v15, %v8509_v61  ;;  %v4950_v58 = vpop.permute.xlu2 %4949 }
 0x1a7   : > { %v1543_v48 = vsel %vm1428_vm5, %v1511_v28, %v4931_v52  ;;  %v4952_v52 = vunpack.i.h.bf16 %v4950_v58  ;;  %v4951_v8 = vunpack.i.l.bf16 %v4950_v58  ;;  %v4947_v4 = vunpack.i.h.bf16 %v4945_v24  ;;  %v8513_v58 = vld [vmem:[#allocation33_spill] sm:$0xff] }
 0x1a8   : > { %v1585_v6 = vpack.c.bf16 %v1544_v30, %v1543_v48  ;;  %v4946_v16 = vunpack.i.l.bf16 %v4945_v24  ;;  %v1577_v63 = vpack.c.bf16 %v8514_v17, %v8513_v58 }
 0x1a9   : > { %v1513_v7 = vsel %vm1395_vm4, %v1481_v57, %v4951_v8  ;;  %v1394_v50 = vsel %vm280_vm0, %v6370_v0, %v4947_v4 }
 0x1aa   : > { %v6678_v55 = vpop.f32.mrf.mxu0  ;;  %v1393_v8 = vsel %vm280_vm0, %v6361_v29, %v4946_v16 }
 0x1ab   : > { %v6680_v53 = vpop.f32.mrf.mxu1  ;;  %4196 = vmatmul.msk.bf16.gmra.mxu2 %vm280_vm0, %v1595_v60  ;;  %v1426_v11 = vsel %vm1395_vm4, %v1393_v8, %v4956_v10 }
 0x1ac   : > { %v4970_v44 = vpop.permute.xlu0 %4969 }
 0x1ad   : > { %v4972_v24 = vunpack.i.h.bf16 %v4970_v44  ;;  %v4971_v56 = vunpack.i.l.bf16 %v4970_v44 }
 0x1ae   : > { %v4960_v28 = vpop.permute.xlu1 %4959 }
 0x1af   : > { %v4962_v61 = vunpack.i.h.bf16 %v4960_v28  ;;  %v4961_v15 = vunpack.i.l.bf16 %v4960_v28  ;;  %v1484_v29 = vsel %vm280_vm0, %v6166_v32, %v4972_v24 }
 0x1b1   : > { %v1545_v31 = vsel %vm1428_vm5, %v1513_v7, %v4961_v15  ;;  %v1483_v7 = vsel %vm280_vm0, %v6163_v34, %v4971_v56  ;;  %v1580_v34 = vpack.c.bf16 %v5931_v39, %v5928_v20 }
 0x1b2   : > { %v6693_v33 = vpop.f32.mrf.mxu0  ;;  %1879 = vmatmul.bf16.gmra.mxu3 %v1599_v2 }
 0x1b3   : > { %v6699_v35 = vpop.f32.mrf.mxu1 }
 0x1b4   : > { %v6746_v17 = vpop.permute.xlu0 %4984 }
 0x1b5   : > { %4189 = vmatmul.msk.bf16.gmra.mxu0 %vm280_vm0, %v1574_v12  ;;  %v1514_v12 = vsel %vm1395_vm4, %v1482_v26, %v4952_v52  ;;  %v4957_v52 = vunpack.i.h.bf16 %v4955_v37 }
 0x1b6   : > { %1943 = vmatmul.bf16.gmra.mxu1 %v1585_v6  ;;  %v4965_v6 = vpop.permute.xlu2 %4964  ;;  %v1546_v21 = vsel %vm1428_vm5, %v1514_v12, %v4962_v61  ;;  %v4975_v26 = vpop.permute.xlu1 %4974 }
 0x1b7   : > { %v1588_v47 = vpack.c.bf16 %v1546_v21, %v1545_v31  ;;  %v4967_v28 = vunpack.i.h.bf16 %v4965_v6  ;;  %v4966_v2 = vunpack.i.l.bf16 %v4965_v6  ;;  %v1427_v57 = vsel %vm1395_vm4, %v1394_v50, %v4957_v52 }
 0x1b8   : > { %v4977_v61 = vunpack.i.h.bf16 %v4975_v26  ;;  %v4976_v37 = vunpack.i.l.bf16 %v4975_v26 }
 0x1b9   : > { %v1459_v0 = vsel %vm1428_vm5, %v1426_v11, %v4966_v2  ;;  %v1460_v12 = vsel %vm1428_vm5, %v1427_v57, %v4967_v28  ;;  %v6766_v11 = vld [vmem:[%s8356_s2] ss:$0 sm:$0xff] }
 0x1ba   : > { %v6710_v48 = vpop.f32.mrf.mxu0  ;;  %v1602_v60 = vpack.c.bf16 %v1460_v12, %v1459_v0  ;;  %v1516_v16 = vsel %vm1395_vm4, %v1484_v29, %v4977_v61  ;;  %v1515_v58 = vsel %vm1395_vm4, %v1483_v7, %v4976_v37  ;;  %v8515_v7 = vld [vmem:[#allocation29_spill] sm:$0xff] }
 0x1bb   : > { %v6712_v30 = vpop.f32.mrf.mxu1 }
 0x1bc   : > { %v5000_v56 = vpop.permute.xlu0 %4999 }
 0x1bd   : > { %v5002_v61 = vunpack.i.h.bf16 %v5000_v56  ;;  %v5001_v37 = vunpack.i.l.bf16 %v5000_v56 }
 0x1be   : > { %v4980_v15 = vpop.permute.xlu2 %4979  ;;  %v4990_v52 = vpop.permute.xlu1 %4989 }
 0x1bf   : > { %v4982_v21 = vunpack.i.h.bf16 %v4980_v15  ;;  %v4981_v4 = vunpack.i.l.bf16 %v4980_v15  ;;  %v4992_v50 = vunpack.i.h.bf16 %v4990_v52  ;;  %v4991_v8 = vunpack.i.l.bf16 %v4990_v52 }
 0x1c1   : > { %v1548_v32 = vsel %vm1428_vm5, %v1516_v16, %v4982_v21  ;;  %v1486_v26 = vsel %vm280_vm0, %v6250_v49, %v4992_v50  ;;  %v1485_v39 = vsel %vm280_vm0, %v6247_v14, %v4991_v8  ;;  %v1811_v49 = vadd.f32 %v6766_v11, %v6489_v19 }
 0x1c2   : > { %v6723_v45 = vpop.f32.mrf.mxu0  ;;  %1884 = vmatmul.bf16.gmra.mxu3 %v1602_v60  ;;  %v8516_v60 = vld [vmem:[#allocation30_spill] sm:$0xff]  ;;  %v1813_v19 = vadd.f32 %v6766_v11, %v6530_v59  ;;  %v1816_v8 = vadd.f32 %v6766_v11, %v6548_v40 }
 0x1c3   : > { %v6725_v43 = vpop.f32.mrf.mxu1  ;;  %v1900_v29 = vadd.f32 %v6667_v51, %v1811_v49  ;;  %v1583_v21 = vpack.c.bf16 %v8516_v60, %v8515_v7 }
 0x1c4   : > { %v1902_v51 = vadd.f32 %v6680_v53, %v1813_v19  ;;  %v1905_v9 = vadd.f32 %v6699_v35, %v1816_v8  ;;  %v1818_v35 = vadd.f32 %v6766_v11, %v6564_v36  ;;  %v701_v8 = vrot.slane %v6552_v1, 1 }
 0x1c5   : > { %4190 = vmatmul.msk.bf16.gmra.mxu0 %vm280_vm0, %v1577_v63  ;;  %v1547_v63 = vsel %vm1428_vm5, %v1515_v58, %v4981_v4  ;;  %v1826_v1 = vadd.f32 %v6766_v11, %v6591_v5  ;;  %v8521_v5 = vld [vmem:[#allocation6_spill] sm:$0xff] }
 0x1c6   : > { %1948 = vmatmul.bf16.gmra.mxu1 %v1588_v47  ;;  %v1591_v44 = vpack.c.bf16 %v1548_v32, %v1547_v63  ;;  %v4995_v28 = vpop.permute.xlu2 %4994 }
 0x1c7   : > { %v4997_v2 = vunpack.i.h.bf16 %v4995_v28  ;;  %v4996_v24 = vunpack.i.l.bf16 %v4995_v28  ;;  %v1586_v28 = vpack.c.bf16 %v8517_v3, %v5906_v54 }
 0x1c9   : > { %v1517_v15 = vsel %vm1395_vm4, %v1485_v39, %v4996_v24  ;;  %v1518_v0 = vsel %vm1395_vm4, %v1486_v26, %v4997_v2 }
 0x1ca   : > { %v6740_v6 = vpop.f32.mrf.mxu0  ;;  %v1549_v14 = vsel %vm1428_vm5, %v1517_v15, %v5001_v37  ;;  %v1550_v12 = vsel %vm1428_vm5, %v1518_v0, %v5002_v61  ;;  %v1907_v37 = vadd.f32 %v6712_v30, %v1818_v35 }
 0x1cb   : > { %v6742_v31 = vpop.f32.mrf.mxu1  ;;  %v1594_v16 = vpack.c.bf16 %v1550_v12, %v1549_v14 }
 0x1d2   : > { %v6752_v47 = vpop.f32.mrf.mxu0 }
 0x1d3   : > { %v6754_v10 = vpop.f32.mrf.mxu1 }
 0x1d4   : > { %v1915_v35 = vadd.f32 %v6754_v10, %v1826_v1 }
 0x1d5   : > { %4191 = vmatmul.msk.bf16.gmra.mxu0 %vm280_vm0, %v1580_v34 }
 0x1d6   : > { %1953 = vmatmul.bf16.gmra.mxu1 %v1591_v44 }
 0x1da   : > { %v6761_v20 = vpop.f32.mrf.mxu0 }
 0x1db   : > { %v6768_v57 = vpop.f32.mrf.mxu1 }
 0x1e2   : > { %v1988_v4 = vpop.f32.mrf.mxu0 }
 0x1e3   : > { %v6779_v58 = vpop.f32.mrf.mxu1  ;;  %v1989_v63 = vadd.f32 %v1988_v4, %v1900_v29  ;;  %v1821_v29 = vadd.f32 %v6766_v11, %v6574_v46 }
 0x1e5   : > { %v2068_v32 = vmax.f32 %v1989_v63, 0.0  ;;  %4192 = vmatmul.msk.bf16.gmra.mxu0 %vm280_vm0, %v1583_v21  ;;  %v1910_v30 = vadd.f32 %v6725_v43, %v1821_v29  ;;  %v1823_v63 = vadd.f32 %v6766_v11, %v6583_v42 }
 0x1e6   : > { %1958 = vmatmul.bf16.gmra.mxu1 %v1594_v16 }
 0x1e7   : > { %2156 = vst.msk [vmem:[#allocation3 + $0x19] sm:$0xff] %vm1395_vm4, %v2068_v32 }
 0x1ea   : > { %v1990_v34 = vpop.f32.mrf.mxu0 }
 0x1eb   : > { %v6790_v44 = vpop.f32.mrf.mxu1  ;;  %v1991_v52 = vadd.f32 %v1990_v34, %v1902_v51  ;;  %v6845_v34 = vld [vmem:[#allocation2 + $0x190] sm:$0x3] }
 0x1ed   : > { %v2069_v50 = vmax.f32 %v1991_v52, 0.0 }
 0x1ee   : > { %v6800_v53 = vld [vmem:[#allocation3 + $0x18] sm:$0xff] }
 0x1ef   : > { %2157 = vst.msk [vmem:[#allocation3 + $0x21] sm:$0xff] %vm1395_vm4, %v2069_v50  ;;  %v2295_v54 = vrot.slane %v6800_v53, 1  ;;  %v700_v50 = vrot.slane %v6550_v41, 1 }
 0x1f2   : > { %v1993_v59 = vpop.f32.mrf.mxu0 }
 0x1f3   : > { %v6798_v2 = vpop.f32.mrf.mxu1  ;;  %v1994_v24 = vadd.f32 %v1993_v59, %v1905_v9 }
 0x1f5   : > { %v2070_v56 = vmax.f32 %v1994_v24, 0.0  ;;  %4193 = vmatmul.msk.bf16.gmra.mxu0 %vm280_vm0, %v1586_v28  ;;  %v703_v28 = vrot.slane %v6845_v34, 1 }
 0x1f6   : > { %v6805_v40 = vld [vmem:[#allocation3 + $0x20] sm:$0xff]  ;;  %v2193_v26 = vld [vmem:[#allocation3 + $0x28] sm:$0x3] }
 0x1f7   : > { %2158 = vst.msk [vmem:[#allocation3 + $0x31] sm:$0xff] %vm1395_vm4, %v2070_v56  ;;  %v2296_v39 = vrot.slane %v6805_v40, 1  ;;  %v2298_v61 = vrot.slane %v2193_v26, 1  ;;  %v6864_v56 = vsel %vm535_vm2, %v700_v50, %v701_v8  ;;  %v6867_v41 = vsel %vm535_vm2, %v701_v8, %v703_v28 }
 0x1f8   : > { %v5038_v26 = vpack.i.bf16 %v6867_v41, %v6864_v56 }
 0x1f9   : > { %v6814_v13 = vsel %vm535_vm2, %v2295_v54, %v2296_v39  ;;  %v6817_v15 = vsel %vm535_vm2, %v2296_v39, %v2298_v61 }
 0x1fa   : > { %8518 = vst [vmem:[#allocation13_spill] sm:$0xff] %v6814_v13  ;;  %v1995_v0 = vpop.f32.mrf.mxu0  ;;  %v5003_v49 = vpack.i.bf16 %v6817_v15, %v6814_v13 }
 0x1fb   : > { %v6821_v36 = vpop.f32.mrf.mxu1  ;;  %v1996_v14 = vadd.f32 %v1995_v0, %v1907_v37 }
 0x1fc   : > { %5004 = vrot.lane.b32.xlu1 %v5003_v49, %s5341_s27 }
 0x1fd   : > { %v2071_v12 = vmax.f32 %v1996_v14, 0.0  ;;  %v1828_v14 = vadd.f32 %v6766_v11, %v8521_v5 }
 0x1fe   : > { %v6832_v4 = vld [vmem:[#allocation3 + $0x30] sm:$0xff] }
 0x1ff   : > { %2159 = vst.msk [vmem:[#allocation3 + $0x39] sm:$0xff] %vm1395_vm4, %v2071_v12  ;;  %v2300_v43 = vrot.slane %v6832_v4, 1 }
 0x202   : > { %v1998_v7 = vpop.f32.mrf.mxu0 }
 0x203   : > { %v6828_v60 = vpop.f32.mrf.mxu1  ;;  %v1999_v21 = vadd.f32 %v1998_v7, %v1910_v30  ;;  %v1917_v30 = vadd.f32 %v6768_v57, %v1828_v14  ;;  %v4421_v57 = vld [vmem:[%s8357_s3 + $0x38] sm:$0xff] }
 0x204   : > { %5019 = vrot.lane.b32.xlu1 %v6394_v25, %s5342_s9  ;;  %v1912_v25 = vadd.f32 %v6742_v31, %v1823_v63  ;;  %3350 = vmatpush.bf16.msrb.mxu3 %v4421_v57  ;;  %v1836_v57 = vadd.f32 %v6766_v11, %v6627_v18  ;;  %v4415_v18 = vld [vmem:[%s8357_s3 + $0x8] sm:$0xff] }
 0x205   : > { %v2072_v16 = vmax.f32 %v1999_v21, 0.0 }
 0x206   : > { %v6836_v32 = vld [vmem:[#allocation3 + $0x38] sm:$0xff]  ;;  %v6838_v46 = vld [vmem:[#allocation3 + $0x40] sm:$0x3] }
 0x207   : > { %2160 = vst.msk [vmem:[#allocation3 + $0x49] sm:$0xff] %vm1395_vm4, %v2072_v16  ;;  %v2301_v19 = vrot.slane %v6836_v32, 1  ;;  %v2303_v51 = vrot.slane %v6838_v46, 1 }
 0x209   : > { %v6848_v52 = vsel %vm535_vm2, %v2300_v43, %v2301_v19  ;;  %v6851_v42 = vsel %vm535_vm2, %v2301_v19, %v2303_v51 }
 0x20a   : > { %8519 = vst [vmem:[#allocation7_spill] sm:$0xff] %v6848_v52  ;;  %v2000_v9 = vpop.f32.mrf.mxu0  ;;  %v5023_v3 = vpack.i.bf16 %v6851_v42, %v6848_v52 }
 0x20b   : > { %8520 = vst [vmem:[#allocation8_spill] sm:$0xff] %v6851_v42  ;;  %v6858_v59 = vpop.f32.mrf.mxu1  ;;  %v2001_v31 = vadd.f32 %v2000_v9, %v1912_v25  ;;  %v8524_v25 = vld [vmem:[#allocation5_spill] sm:$0xff]  ;;  %v4420_v9 = vld [vmem:[%s8357_s3 + $0x30] sm:$0xff] }
 0x20c   : > { %5024 = vrot.lane.b32.xlu2 %v5023_v3, %s5341_s27  ;;  %5034 = vrot.lane.b32.xlu1 %v6556_v27, %s5341_s27  ;;  %v1831_v50 = vadd.f32 %v6766_v11, %v8524_v25  ;;  %v1925_v25 = vadd.f32 %v6798_v2, %v1836_v57  ;;  %v4987_v2 = vunpack.i.h.bf16 %v6746_v17 }
 0x20d   : > { %v2073_v24 = vmax.f32 %v2001_v31, 0.0  ;;  %3351 = vmatpush.bf16.msrb.mxu3 %v4420_v9 }
 0x20e   : > { %v6877_v61 = vld [vmem:[#allocation3 + $0x48] sm:$0xff]  ;;  %v1920_v8 = vadd.f32 %v6779_v58, %v1831_v50  ;;  %v8525_v58 = vld [vmem:[#allocation9_spill] sm:$0xff]  ;;  %v4416_v50 = vld [vmem:[%s8357_s3 + $0x10] sm:$0xff] }
 0x20f   : > { %2161 = vst.msk [vmem:[#allocation3 + $0x51] sm:$0xff] %vm1395_vm4, %v2073_v24  ;;  %v2305_v12 = vrot.slane %v6877_v61, 1 }
 0x212   : > { %v2003_v54 = vpop.f32.mrf.mxu0 }
 0x213   : > { %v6875_v39 = vpop.f32.mrf.mxu1  ;;  %v2004_v27 = vadd.f32 %v2003_v54, %v1915_v35 }
 0x214   : > { %5039 = vrot.lane.b32.xlu2 %v5038_v26, %s5342_s9  ;;  %v4419_v26 = vld [vmem:[%s8357_s3 + $0x28] sm:$0xff] }
 0x215   : > { %v2074_v37 = vmax.f32 %v2004_v27, 0.0  ;;  %v1833_v27 = vadd.f32 %v6766_v11, %v8525_v58  ;;  %3352 = vmatpush.bf16.msrb.mxu3 %v4419_v26  ;;  %v1838_v26 = vadd.f32 %v6766_v11, %v6646_v38 }
 0x216   : > { %v6880_v0 = vld [vmem:[#allocation3 + $0x50] sm:$0xff]  ;;  %v2199_v49 = vld [vmem:[#allocation3 + $0x58] sm:$0x3] }
 0x217   : > { %2162 = vst.msk [vmem:[#allocation3 + $0x61] sm:$0xff] %vm1395_vm4, %v2074_v37  ;;  %v2306_v10 = vrot.slane %v6880_v0, 1  ;;  %v2308_v29 = vrot.slane %v2199_v49, 1  ;;  %v1922_v14 = vadd.f32 %v6790_v44, %v1833_v27  ;;  %v4986_v27 = vunpack.i.l.bf16 %v6746_v17  ;;  %v4414_v17 = vld [vmem:[%s8357_s3] sm:$0xff] }
 0x219   : > { %v6889_v7 = vsel %vm535_vm2, %v2305_v12, %v2306_v10  ;;  %v6892_v21 = vsel %vm535_vm2, %v2306_v10, %v2308_v29  ;;  %v4418_v29 = vld [vmem:[%s8357_s3 + $0x20] sm:$0xff] }
 0x21a   : > { %8522 = vst [vmem:[#allocation18_spill] sm:$0xff] %v6889_v7  ;;  %v2005_v16 = vpop.f32.mrf.mxu0  ;;  %v5043_v63 = vpack.i.bf16 %v6892_v21, %v6889_v7  ;;  %3353 = vmatpush.bf16.msrb.mxu3 %v4418_v29 }
 0x21b   : > { %8523 = vst [vmem:[#allocation17_spill] sm:$0xff] %v6892_v21  ;;  %v6896_v43 = vpop.f32.mrf.mxu1  ;;  %v2006_v19 = vadd.f32 %v2005_v16, %v1917_v30 }
 0x21c   : > { %5044 = vrot.lane.b32.xlu0 %v5043_v63, %s5341_s27 }
 0x21d   : > { %v2075_v51 = vmax.f32 %v2006_v19, 0.0 }
 0x21e   : > { %v6911_v24 = vld [vmem:[#allocation3 + $0x60] sm:$0xff] }
 0x21f   : > { %2163 = vst.msk [vmem:[#allocation3 + $0x69] sm:$0xff] %vm1395_vm4, %v2075_v51  ;;  %v2310_v37 = vrot.slane %v6911_v24, 1  ;;  %v4417_v51 = vld [vmem:[%s8357_s3 + $0x18] sm:$0xff] }
 0x220   : > { %3354 = vmatpush.bf16.msrb.mxu3 %v4417_v51 }
 0x222   : > { %v2008_v3 = vpop.f32.mrf.mxu0 }
 0x223   : > { %v6909_v28 = vpop.f32.mrf.mxu1  ;;  %v2009_v31 = vadd.f32 %v2008_v3, %v1920_v8 }
 0x224   : > { %3355 = vmatpush.bf16.msrb.mxu3 %v4416_v50 }
 0x225   : > { %v2076_v1 = vmax.f32 %v2009_v31, 0.0 }
 0x226   : > { %v6916_v35 = vld [vmem:[#allocation3 + $0x68] sm:$0xff]  ;;  %v2202_v54 = vld [vmem:[#allocation3 + $0x70] sm:$0x3] }
 0x227   : > { %2164 = vst.msk [vmem:[#allocation3 + $0x79] sm:$0xff] %vm1395_vm4, %v2076_v1  ;;  %v2311_v49 = vrot.slane %v6916_v35, 1  ;;  %v2313_v5 = vrot.slane %v2202_v54, 1 }
 0x228   : > { %3356 = vmatpush.bf16.msrb.mxu3 %v4415_v18 }
 0x229   : > { %v6925_v12 = vsel %vm535_vm2, %v2310_v37, %v2311_v49  ;;  %v6928_v10 = vsel %vm535_vm2, %v2311_v49, %v2313_v5 }
 0x22a   : > { %8526 = vst [vmem:[#allocation11_spill] sm:$0xff] %v6925_v12  ;;  %v2010_v30 = vpop.f32.mrf.mxu0  ;;  %v5048_v16 = vpack.i.bf16 %v6928_v10, %v6925_v12 }
 0x22b   : > { %8527 = vst [vmem:[#allocation12_spill] sm:$0xff] %v6928_v10  ;;  %v6935_v63 = vpop.f32.mrf.mxu1  ;;  %v2011_v19 = vadd.f32 %v2010_v30, %v1922_v14  ;;  %v1927_v14 = vadd.f32 %v6821_v36, %v1838_v26  ;;  %v2038_v30 = vpop.f32.mrf.mxu2  ;;  %v6981_v36 = vld [vmem:[#allocation3] sm:$0xff]  ;;  %v4438_v10 = vld [vmem:[%s8357_s3 + $0xc0] sm:$0xff] }
 0x22c   : > { %5049 = vrot.lane.b32.xlu1 %v5048_v16, %s5341_s27  ;;  %3357 = vmatpush.bf16.msrb.mxu3 %v4414_v17  ;;  %v2844_v57 = vsel %vm1395_vm4, %v6981_v36, %v4986_v27  ;;  %v8530_v26 = vld [vmem:[#allocation10_spill] sm:$0xff] }
 0x22d   : > { %v2077_v44 = vmax.f32 %v2011_v19, 0.0  ;;  %v1861_v27 = vadd.f32 %v6766_v11, %v8530_v26  ;;  %v8533_v26 = vld [vmem:[#allocation14_spill] sm:$0xff] }
 0x22e   : > { %v6950_v31 = vld [vmem:[#allocation3 + $0x78] sm:$0xff] }
 0x22f   : > { %2165 = vst.msk [vmem:[#allocation3 + $0x81] sm:$0xff] %vm1395_vm4, %v2077_v44  ;;  %v2315_v37 = vrot.slane %v6950_v31, 1 }
 0x232   : > { %v2013_v8 = vpop.f32.mrf.mxu0 }
 0x233   : > { %v6948_v9 = vpop.f32.mrf.mxu1  ;;  %v2014_v3 = vadd.f32 %v2013_v8, %v1925_v25  ;;  %v6985_v25 = vld [vmem:[#allocation3 + $0x8] sm:$0xff] }
 0x234   : > { %v2845_v50 = vsel %vm1395_vm4, %v6985_v25, %v4987_v2 }
 0x235   : > { %v2078_v1 = vmax.f32 %v2014_v3, 0.0  ;;  %v2944_v8 = vpack.c.bf16 %v2845_v50, %v2844_v57 }
 0x236   : > { %v6958_v54 = vld [vmem:[#allocation3 + $0x80] sm:$0xff]  ;;  %v6960_v58 = vld [vmem:[#allocation3 + $0x88] sm:$0x3] }
 0x237   : > { %2166 = vst.msk [vmem:[#allocation3 + $0x91] sm:$0xff] %vm1395_vm4, %v2078_v1  ;;  %v2316_v49 = vrot.slane %v6958_v54, 1  ;;  %v2318_v5 = vrot.slane %v6960_v58, 1  ;;  %3358 = vmatmul.bf16.vlgmr.msrb.gmra.mxu3 %v2944_v8  ;;  %v1841_v1 = vadd.f32 %v6766_v11, %v6661_v62  ;;  %v1843_v62 = vadd.f32 %v6766_v11, %v6678_v55 }
 0x239   : > { %v6969_v38 = vsel %vm535_vm2, %v2315_v37, %v2316_v49  ;;  %v6972_v29 = vsel %vm535_vm2, %v2316_v49, %v2318_v5  ;;  %v1930_v18 = vadd.f32 %v6828_v60, %v1841_v1  ;;  %v1932_v1 = vadd.f32 %v6858_v59, %v1843_v62 }
 0x23a   : > { %8528 = vst [vmem:[#allocation22_spill] sm:$0xff] %v6969_v38  ;;  %v2015_v16 = vpop.f32.mrf.mxu0  ;;  %v5053_v19 = vpack.i.bf16 %v6972_v29, %v6969_v38 }
 0x23b   : > { %8529 = vst [vmem:[#allocation21_spill] sm:$0xff] %v6972_v29  ;;  %v6979_v44 = vpop.f32.mrf.mxu1  ;;  %v2016_v51 = vadd.f32 %v2015_v16, %v1927_v14  ;;  %v2040_v14 = vpop.f32.mrf.mxu2 }
 0x23c   : > { %5054 = vrot.lane.b32.xlu2 %v5053_v19, %s5341_s27 }
 0x23d   : > { %v2079_v3 = vmax.f32 %v2016_v51, 0.0 }
 0x23e   : > { %v6996_v17 = vld [vmem:[#allocation3 + $0x90] sm:$0xff] }
 0x23f   : > { %2167 = vst.msk [vmem:[#allocation3 + $0x99] sm:$0xff] %vm1395_vm4, %v2079_v3  ;;  %v2320_v60 = vrot.slane %v6996_v17, 1 }
 0x242   : > { %v2018_v37 = vpop.f32.mrf.mxu0 }
 0x243   : > { %v1949_v49 = vpop.f32.mrf.mxu1  ;;  %v2019_v5 = vadd.f32 %v2018_v37, %v1930_v18 }
 0x244   : > { %v1950_v2 = vadd.f32 %v1949_v49, %v1861_v27  ;;  %v1863_v27 = vadd.f32 %v6766_v11, %v8533_v26 }
 0x245   : > { %v2080_v16 = vmax.f32 %v2019_v5, 0.0 }
 0x246   : > { %v2039_v19 = vadd.f32 %v2038_v30, %v1950_v2  ;;  %v6998_v51 = vld [vmem:[#allocation3 + $0x98] sm:$0xff]  ;;  %v2208_v57 = vld [vmem:[#allocation3 + $0xa0] sm:$0x3] }
 0x247   : > { %2168 = vst.msk [vmem:[#allocation3 + $0xa9] sm:$0xff] %vm1395_vm4, %v2080_v16  ;;  %v2321_v50 = vrot.slane %v6998_v51, 1  ;;  %v2323_v8 = vrot.slane %v2208_v57, 1  ;;  %v2043_v16 = vpop.f32.mrf.mxu2  ;;  %v1846_v57 = vadd.f32 %v6766_v11, %v6693_v33 }
 0x248   : > { %v2088_v3 = vmax.f32 %v2039_v19, 0.0 }
 0x249   : > { %v7007_v18 = vsel %vm535_vm2, %v2320_v60, %v2321_v50  ;;  %v7010_v30 = vsel %vm535_vm2, %v2321_v50, %v2323_v8  ;;  %v8534_v60 = vld [vmem:[#allocation4_spill] sm:$0xff]  ;;  %v8535_v50 = vld [vmem:[#allocation42_spill] sm:$0xff] }
 0x24a   : > { %8531 = vst [vmem:[#allocation15_spill] sm:$0xff] %v7007_v18  ;;  %v2020_v55 = vpop.f32.mrf.mxu0  ;;  %v5058_v37 = vpack.i.bf16 %v7010_v30, %v7007_v18  ;;  %v1598_v8 = vpack.c.bf16 %v8535_v50, %v8534_v60 }
 0x24b   : > { %8532 = vst [vmem:[#allocation16_spill] sm:$0xff] %v7010_v30  ;;  %v1951_v49 = vpop.f32.mrf.mxu1  ;;  %v2021_v5 = vadd.f32 %v2020_v55, %v1932_v1  ;;  %v1866_v1 = vadd.f32 %v6766_v11, %v6633_v23 }
 0x24c   : > { %2176 = vst.msk [vmem:[#allocation3 + $0x109] sm:$0xff] %vm1395_vm4, %v2088_v3  ;;  %v1952_v2 = vadd.f32 %v1951_v49, %v1863_v27  ;;  %5059 = vrot.lane.b32.xlu0 %v5058_v37, %s5341_s27  ;;  %v1935_v3 = vadd.f32 %v6875_v39, %v1846_v57  ;;  %4197 = vmatmul.msk.bf16.gmra.mxu2 %vm280_vm0, %v1598_v8 }
 0x24d   : > { %v2081_v59 = vmax.f32 %v2021_v5, 0.0  ;;  %v1848_v39 = vadd.f32 %v6766_v11, %v6710_v48  ;;  %v1868_v48 = vadd.f32 %v6766_v11, %v6648_v22  ;;  %v740_v22 = vrot.slane %v6845_v34, 2 }
 0x24e   : > { %v2041_v19 = vadd.f32 %v2040_v14, %v1952_v2  ;;  %v7028_v33 = vld [vmem:[#allocation3 + $0xa8] sm:$0xff] }
 0x24f   : > { %2169 = vst.msk [vmem:[#allocation3 + $0xb1] sm:$0xff] %vm1395_vm4, %v2081_v59  ;;  %v2045_v23 = vpop.f32.mrf.mxu2  ;;  %v2325_v59 = vrot.slane %v7028_v33, 1  ;;  %v1937_v60 = vadd.f32 %v6896_v43, %v1848_v39  ;;  %v1870_v43 = vpop.f32.mrf.mxu3 }
 0x250   : > { %v2089_v62 = vmax.f32 %v2041_v19, 0.0  ;;  %v1871_v34 = vadd.f32 %v6766_v11, %v1870_v43 }
 0x252   : > { %2177 = vst.msk [vmem:[#allocation3 + $0x111] sm:$0xff] %vm1395_vm4, %v2089_v62  ;;  %v2023_v26 = vpop.f32.mrf.mxu0 }
 0x253   : > { %v1954_v14 = vpop.f32.mrf.mxu1  ;;  %v2024_v27 = vadd.f32 %v2023_v26, %v1935_v3 }
 0x254   : > { %v1955_v55 = vadd.f32 %v1954_v14, %v1866_v1 }
 0x255   : > { %v2082_v37 = vmax.f32 %v2024_v27, 0.0 }
 0x256   : > { %v2044_v49 = vadd.f32 %v2043_v16, %v1955_v55  ;;  %v7030_v5 = vld [vmem:[#allocation3 + $0xb0] sm:$0xff]  ;;  %v2211_v2 = vld [vmem:[#allocation3 + $0xb8] sm:$0x3] }
 0x257   : > { %2170 = vst.msk [vmem:[#allocation3 + $0xc1] sm:$0xff] %vm1395_vm4, %v2082_v37  ;;  %v2326_v19 = vrot.slane %v7030_v5, 1  ;;  %v2328_v57 = vrot.slane %v2211_v2, 1  ;;  %v5308_v55 = vld [vmem:[#allocation2 + $0x180] sm:$0xff] }
 0x258   : > { %v2090_v62 = vmax.f32 %v2044_v49, 0.0  ;;  %v737_v37 = vrot.slane %v5308_v55, 2  ;;  %v5309_v49 = vld [vmem:[#allocation2 + $0x188] sm:$0xff] }
 0x259   : > { %v7039_v50 = vsel %vm535_vm2, %v2325_v59, %v2326_v19  ;;  %v7042_v16 = vsel %vm535_vm2, %v2326_v19, %v2328_v57  ;;  %v738_v2 = vrot.slane %v5309_v49, 2  ;;  %v1851_v59 = vadd.f32 %v6766_v11, %v6723_v45  ;;  %v7054_v19 = vld [vmem:[#allocation3 + $0x110] sm:$0xff] }
 0x25a   : > { %8536 = vst [vmem:[#allocation36_spill] sm:$0xff] %v7039_v50  ;;  %v2025_v8 = vpop.f32.mrf.mxu0  ;;  %v5063_v3 = vpack.i.bf16 %v7042_v16, %v7039_v50 }
 0x25b   : > { %8537 = vst [vmem:[#allocation35_spill] sm:$0xff] %v7042_v16  ;;  %v1956_v1 = vpop.f32.mrf.mxu1  ;;  %v2026_v26 = vadd.f32 %v2025_v8, %v1937_v60  ;;  %v7057_v57 = vsel %vm616_vm3, %v737_v37, %v738_v2  ;;  %v2223_v60 = vld [vmem:[#allocation3 + $0x118] sm:$0x3]  ;;  %v1940_v8 = vadd.f32 %v6909_v28, %v1851_v59 }
 0x25c   : > { %2178 = vst.msk [vmem:[#allocation3 + $0x121] sm:$0xff] %vm1395_vm4, %v2090_v62  ;;  %v1957_v14 = vadd.f32 %v1956_v1, %v1868_v48  ;;  %5064 = vrot.lane.b32.xlu1 %v5063_v3, %s5341_s27  ;;  %v7060_v48 = vsel %vm616_vm3, %v738_v2, %v740_v22  ;;  %v7063_v3 = vld [vmem:[#allocation3 + $0x108] sm:$0xff]  ;;  %v2348_v37 = vrot.slane %v2223_v60, 1 }
 0x25d   : > { %v2083_v27 = vmax.f32 %v2026_v26, 0.0  ;;  %v1601_v45 = vpack.c.bf16 %v7060_v48, %v7057_v57  ;;  %v5078_v26 = vpack.i.bf16 %v6805_v40, %v6800_v53  ;;  %v2345_v43 = vrot.slane %v7063_v3, 1 }
 0x25e   : > { %v2046_v39 = vadd.f32 %v2045_v23, %v1957_v14  ;;  %v2048_v23 = vpop.f32.mrf.mxu2  ;;  %v2346_v14 = vrot.slane %v7054_v19, 1  ;;  %v7074_v49 = vld [vmem:[#allocation3 + $0xc0] sm:$0xff] }
 0x25f   : > { %2171 = vst.msk [vmem:[#allocation3 + $0xc9] sm:$0xff] %vm1395_vm4, %v2083_v27  ;;  %4198 = vmatmul.msk.bf16.gmra.mxu2 %vm280_vm0, %v1601_v45  ;;  %v2330_v45 = vrot.slane %v7074_v49, 1 }
 0x260   : > { %v2091_v62 = vmax.f32 %v2046_v39, 0.0  ;;  %v1853_v39 = vadd.f32 %v6766_v11, %v6740_v6  ;;  %v7084_v60 = vsel %vm535_vm2, %v2345_v43, %v2346_v14 }
 0x261   : > { %8538 = vst [vmem:[#allocation19_spill] sm:$0xff] %v7084_v60 }
 0x262   : > { %2179 = vst.msk [vmem:[#allocation3 + $0x129] sm:$0xff] %vm1395_vm4, %v2091_v62  ;;  %v2028_v1 = vpop.f32.mrf.mxu0 }
 0x263   : > { %v1959_v27 = vpop.f32.mrf.mxu1  ;;  %v2029_v55 = vadd.f32 %v2028_v1, %v1940_v8  ;;  %v1872_v8 = vpop.f32.mrf.mxu3 }
 0x264   : > { %v1960_v28 = vadd.f32 %v1959_v27, %v1871_v34  ;;  %5079 = vrot.lane.b32.xlu1 %v5078_v26, %s5341_s27  ;;  %v7091_v26 = vsel %vm535_vm2, %v2346_v14, %v2348_v37 }
 0x265   : > { %v2084_v2 = vmax.f32 %v2029_v55, 0.0  ;;  %8539 = vst [vmem:[#allocation20_spill] sm:$0xff] %v7091_v26  ;;  %v5093_v14 = vpack.i.bf16 %v7091_v26, %v7084_v60 }
 0x266   : > { %v2049_v22 = vadd.f32 %v2048_v23, %v1960_v28  ;;  %v7079_v59 = vld [vmem:[#allocation3 + $0xc8] sm:$0xff]  ;;  %v7081_v62 = vld [vmem:[#allocation3 + $0xd0] sm:$0x3]  ;;  %v1942_v23 = vadd.f32 %v6935_v63, %v1853_v39  ;;  %v1873_v28 = vadd.f32 %v6766_v11, %v1872_v8  ;;  %v2050_v63 = vpop.f32.mrf.mxu2  ;;  %v1856_v8 = vadd.f32 %v6766_v11, %v6752_v47 }
 0x267   : > { %2172 = vst.msk [vmem:[#allocation3 + $0xd9] sm:$0xff] %vm1395_vm4, %v2084_v2  ;;  %v2331_v34 = vrot.slane %v7079_v59, 1  ;;  %v2333_v1 = vrot.slane %v7081_v62, 1 }
 0x268   : > { %v2092_v6 = vmax.f32 %v2049_v22, 0.0 }
 0x269   : > { %v7095_v27 = vsel %vm535_vm2, %v2330_v45, %v2331_v34  ;;  %v7098_v55 = vsel %vm535_vm2, %v2331_v34, %v2333_v1  ;;  %v5010_v45 = vpop.permute.xlu2 %5009 }
 0x26a   : > { %8540 = vst [vmem:[#allocation23_spill] sm:$0xff] %v7095_v27  ;;  %v2030_v43 = vpop.f32.mrf.mxu0  ;;  %v5068_v2 = vpack.i.bf16 %v7098_v55, %v7095_v27  ;;  %v5012_v16 = vunpack.i.h.bf16 %v5010_v45 }
 0x26b   : > { %8541 = vst [vmem:[#allocation24_spill] sm:$0xff] %v7098_v55  ;;  %v1961_v37 = vpop.f32.mrf.mxu1  ;;  %v2031_v22 = vadd.f32 %v2030_v43, %v1942_v23  ;;  %v5011_v55 = vunpack.i.l.bf16 %v5010_v45  ;;  %v5015_v23 = vpop.permute.xlu0 %5014  ;;  %v7111_v43 = vld [vmem:[#allocation2 + $0x198] sm:$0xff] }
 0x26c   : > { %2180 = vst.msk [vmem:[#allocation3 + $0x139] sm:$0xff] %vm1395_vm4, %v2092_v6  ;;  %v1962_v39 = vadd.f32 %v1961_v37, %v1873_v28  ;;  %5069 = vrot.lane.b32.xlu2 %v5068_v2, %s5341_s27  ;;  %5094 = vrot.lane.b32.xlu1 %v5093_v14, %s5341_s27  ;;  %v7113_v28 = vld [vmem:[#allocation2 + $0x1a0] sm:$0xff]  ;;  %v1945_v2 = vadd.f32 %v6948_v9, %v1856_v8  ;;  %v5016_v9 = vunpack.i.l.bf16 %v5015_v23  ;;  %v7125_v8 = vld [vmem:[#allocation2 + $0x1a8] sm:$0x3] }
 0x26d   : > { %v2085_v34 = vmax.f32 %v2031_v22, 0.0  ;;  %v5108_v37 = vpack.i.bf16 %v7060_v48, %v7057_v57  ;;  %v8543_v48 = vld [vmem:[#allocation38_spill] sm:$0xff] }
 0x26e   : > { %v2051_v1 = vadd.f32 %v2050_v63, %v1962_v39  ;;  %v5005_v6 = vpop.permute.xlu1 %5004  ;;  %v746_v63 = vrot.slane %v7113_v28, 1  ;;  %v745_v39 = vrot.slane %v7111_v43, 1 }
 0x26f   : > { %2173 = vst.msk [vmem:[#allocation3 + $0xe1] sm:$0xff] %vm1395_vm4, %v2085_v34  ;;  %v5007_v26 = vunpack.i.h.bf16 %v5005_v6  ;;  %v5006_v60 = vunpack.i.l.bf16 %v5005_v6  ;;  %v5017_v6 = vunpack.i.h.bf16 %v5015_v23 }
 0x270   : > { %v2093_v14 = vmax.f32 %v2051_v1, 0.0  ;;  %v8542_v1 = vld [vmem:[#allocation39_spill] sm:$0xff] }
 0x271   : > { %v2846_v47 = vsel %vm1395_vm4, %v6800_v53, %v5006_v60  ;;  %v2847_v22 = vsel %vm1395_vm4, %v6805_v40, %v5007_v26  ;;  %v1488_v57 = vsel %vm280_vm0, %v8542_v1, %v5012_v16  ;;  %v1487_v53 = vsel %vm280_vm0, %v8543_v48, %v5011_v55  ;;  %v7131_v40 = vld [vmem:[#allocation3 + $0xd8] sm:$0xff] }
 0x272   : > { %2181 = vst.msk [vmem:[#allocation3 + $0x141] sm:$0xff] %vm1395_vm4, %v2093_v14  ;;  %v2033_v45 = vpop.f32.mrf.mxu0  ;;  %v2949_v34 = vpack.c.bf16 %v2847_v22, %v2846_v47  ;;  %v748_v26 = vrot.slane %v7125_v8, 1  ;;  %v747_v47 = vsel %vm535_vm2, %v745_v39, %v746_v63  ;;  %v1858_v22 = vadd.f32 %v6766_v11, %v6761_v20 }
 0x273   : > { %v2034_v60 = vadd.f32 %v2033_v45, %v1945_v2  ;;  %v1519_v16 = vsel %vm1395_vm4, %v1487_v53, %v5016_v9  ;;  %v1520_v55 = vsel %vm1395_vm4, %v1488_v57, %v5017_v6 }
 0x274   : > { %3363 = vmatmul.bf16.gmra.mxu3 %v2949_v34  ;;  %5109 = vrot.lane.b32.xlu1 %v5108_v37, %s5340_s26  ;;  %v749_v23 = vsel %vm535_vm2, %v746_v63, %v748_v26  ;;  %v2335_v34 = vrot.slane %v7131_v40, 1  ;;  %v5025_v37 = vpop.permute.xlu2 %5024  ;;  %v1947_v11 = vadd.f32 %v6979_v44, %v1858_v22  ;;  %v5030_v26 = vpop.permute.xlu0 %5029 }
 0x275   : > { %v2086_v14 = vmax.f32 %v2034_v60, 0.0  ;;  %v5123_v9 = vpack.i.bf16 %v749_v23, %v747_v47  ;;  %v5027_v50 = vunpack.i.h.bf16 %v5025_v37  ;;  %v5026_v30 = vunpack.i.l.bf16 %v5025_v37 }
 0x276   : > { %v5020_v2 = vpop.permute.xlu1 %5019  ;;  %v7141_v45 = vld [vmem:[#allocation3 + $0xe0] sm:$0xff]  ;;  %v7143_v1 = vld [vmem:[#allocation3 + $0xe8] sm:$0x3]  ;;  %v5032_v47 = vunpack.i.h.bf16 %v5030_v26  ;;  %v5031_v23 = vunpack.i.l.bf16 %v5030_v26 }
 0x277   : > { %2174 = vst.msk [vmem:[#allocation3 + $0xf1] sm:$0xff] %vm1395_vm4, %v2086_v14  ;;  %v5022_v39 = vunpack.i.h.bf16 %v5020_v2  ;;  %v5021_v48 = vunpack.i.l.bf16 %v5020_v2  ;;  %v2336_v63 = vrot.slane %v7141_v45, 1  ;;  %v2338_v20 = vrot.slane %v7143_v1, 1 }
 0x279   : > { %v7151_v6 = vsel %vm535_vm2, %v2335_v34, %v2336_v63  ;;  %v7154_v57 = vsel %vm535_vm2, %v2336_v63, %v2338_v20  ;;  %v1551_v53 = vsel %vm1428_vm5, %v1519_v16, %v5021_v48  ;;  %v1552_v60 = vsel %vm1428_vm5, %v1520_v55, %v5022_v39  ;;  %v7167_v63 = vld [vmem:[#allocation3 + $0x128] sm:$0xff] }
 0x27a   : > { %8544 = vst [vmem:[#allocation26_spill] sm:$0xff] %v7151_v6  ;;  %v2035_v14 = vpop.f32.mrf.mxu0  ;;  %v5073_v2 = vpack.i.bf16 %v7154_v57, %v7151_v6  ;;  %v1597_v27 = vpack.c.bf16 %v1552_v60, %v1551_v53  ;;  %v2848_v55 = vsel %vm1395_vm4, %v6832_v4, %v5026_v30  ;;  %v2849_v34 = vsel %vm1395_vm4, %v6836_v32, %v5027_v50  ;;  %v7173_v53 = vld [vmem:[#allocation3 + $0x130] sm:$0x3]  ;;  %v7177_v30 = vld [vmem:[#allocation3 + $0x120] sm:$0xff]  ;;  %v4439_v6 = vld [vmem:[%s8357_s3 + $0xc8] sm:$0xff] }
 0x27b   : > { %8545 = vst [vmem:[#allocation25_spill] sm:$0xff] %v7154_v57  ;;  %v2036_v44 = vadd.f32 %v2035_v14, %v1947_v11  ;;  %v8547_v11 = vld [vmem:[#allocation40_spill] sm:$0xff]  ;;  %v5088_v60 = vpack.i.bf16 %v6836_v32, %v6832_v4  ;;  %v7179_v26 = vpack.c.bf16 %v2849_v34, %v2848_v55 }
 0x27c   : > { %5074 = vrot.lane.b32.xlu0 %v5073_v2, %s5341_s27  ;;  %1963 = vmatmul.bf16.gmra.mxu1 %v1597_v27  ;;  %v5040_v48 = vpop.permute.xlu2 %5039  ;;  %v8546_v27 = vld [vmem:[#allocation41_spill] sm:$0xff]  ;;  %v2351_v2 = vrot.slane %v7167_v63, 1 }
 0x27d   : > { %v2087_v22 = vmax.f32 %v2036_v44, 0.0  ;;  %5124 = vrot.lane.b32.xlu1 %v5123_v9, %s5342_s9  ;;  %v1490_v20 = vsel %vm280_vm0, %v8546_v27, %v5032_v47  ;;  %v1489_v9 = vsel %vm280_vm0, %v8547_v11, %v5031_v23  ;;  %v5042_v50 = vunpack.i.h.bf16 %v5040_v48 }
 0x27e   : > { %v5035_v16 = vpop.permute.xlu1 %5034  ;;  %v5041_v14 = vunpack.i.l.bf16 %v5040_v48  ;;  %v2350_v23 = vrot.slane %v7177_v30, 1 }
 0x27f   : > { %2175 = vst.msk [vmem:[#allocation3 + $0xf9] sm:$0xff] %vm1395_vm4, %v2087_v22  ;;  %v5037_v39 = vunpack.i.h.bf16 %v5035_v16  ;;  %v5036_v37 = vunpack.i.l.bf16 %v5035_v16  ;;  %v2353_v22 = vrot.slane %v7173_v53, 1  ;;  %v7188_v16 = vld [vmem:[#allocation3 + $0xf0] sm:$0xff] }
 0x280   : > { %v7191_v55 = vsel %vm535_vm2, %v2350_v23, %v2351_v2 }
 0x281   : > { %v1522_v44 = vsel %vm1395_vm4, %v1490_v20, %v5037_v39  ;;  %v1521_v47 = vsel %vm1395_vm4, %v1489_v9, %v5036_v37  ;;  %8548 = vst [vmem:[#allocation27_spill] sm:$0xff] %v7191_v55  ;;  %v7200_v27 = vsel %vm535_vm2, %v2351_v2, %v2353_v22  ;;  %v2340_v20 = vrot.slane %v7188_v16, 1  ;;  %v4449_v2 = vld [vmem:[%s8357_s3 + $0x118] sm:$0xff] }
 0x282   : > { %v1553_v39 = vsel %vm1428_vm5, %v1521_v47, %v5041_v14  ;;  %v1554_v37 = vsel %vm1428_vm5, %v1522_v44, %v5042_v50  ;;  %8549 = vst [vmem:[#allocation28_spill] sm:$0xff] %v7200_v27  ;;  %v5103_v14 = vpack.i.bf16 %v7200_v27, %v7191_v55  ;;  %v4445_v44 = vld [vmem:[%s8357_s3 + $0xf8] sm:$0xff]  ;;  %3710 = vmatpush.bf16.msra.mxu3 %v4449_v2 }
 0x283   : > { %v1600_v57 = vpack.c.bf16 %v1554_v37, %v1553_v39  ;;  %3617 = vmatpush.bf16.msra.mxu1 %v4445_v44  ;;  %v5118_v37 = vpack.i.bf16 %v7113_v28, %v7111_v43  ;;  %v5133_v2 = vpack.i.bf16 %v6958_v54, %v6950_v31  ;;  %v5113_v44 = vpack.i.bf16 %v6916_v35, %v6911_v24 }
 0x284   : > { %5089 = vrot.lane.b32.xlu0 %v5088_v60, %s5341_s27  ;;  %3368 = vmatmul.bf16.gmra.mxu3 %v7179_v26 }
 0x286   : > { %v7193_v34 = vld [vmem:[#allocation3 + $0xf8] sm:$0xff]  ;;  %v7195_v48 = vld [vmem:[#allocation3 + $0x100] sm:$0x3] }
 0x287   : > { %v2341_v11 = vrot.slane %v7193_v34, 1  ;;  %v2343_v9 = vrot.slane %v7195_v48, 1 }
 0x289   : > { %v7206_v60 = vsel %vm535_vm2, %v2340_v20, %v2341_v11  ;;  %v7209_v23 = vsel %vm535_vm2, %v2341_v11, %v2343_v9  ;;  %v5098_v9 = vpack.i.bf16 %v6880_v0, %v6877_v61 }
 0x28a   : > { %8550 = vst [vmem:[#allocation32_spill] sm:$0xff] %v7206_v60  ;;  %v5083_v50 = vpack.i.bf16 %v7209_v23, %v7206_v60  ;;  %v5313_v60 = vld [vmem:[#allocation3 + $0x18] sm:$0xff] }
 0x28b   : > { %8551 = vst [vmem:[#allocation31_spill] sm:$0xff] %v7209_v23 }
 0x28c   : > { %5104 = vrot.lane.b32.xlu0 %v5103_v14, %s5341_s27  ;;  %5084 = vrot.lane.b32.xlu2 %v5083_v50, %s5341_s27  ;;  %v7238_v50 = vld [vmem:[#allocation3 + $0x148] sm:$0x3] }
 0x28d   : > { %1968 = vmatmul.bf16.gmra.mxu1 %v1600_v57  ;;  %v7236_v57 = vld [vmem:[#allocation3 + $0x140] sm:$0xff] }
 0x28e   : > { %v5045_v47 = vpop.permute.xlu0 %5044 }
 0x28f   : > { %v5047_v22 = vunpack.i.h.bf16 %v5045_v47  ;;  %v5046_v39 = vunpack.i.l.bf16 %v5045_v47  ;;  %v7244_v47 = vld [vmem:[#allocation3 + $0x138] sm:$0xff] }
 0x291   : > { %v2850_v20 = vsel %vm1395_vm4, %v6877_v61, %v5046_v39  ;;  %v2851_v11 = vsel %vm1395_vm4, %v6880_v0, %v5047_v22  ;;  %v2356_v61 = vrot.slane %v7236_v57, 1  ;;  %v2358_v0 = vrot.slane %v7238_v50, 1  ;;  %v4429_v22 = vld [vmem:[%s8357_s3 + $0x78] sm:$0xff] }
 0x292   : > { %v7231_v14 = vpack.c.bf16 %v2851_v11, %v2850_v20  ;;  %v2355_v39 = vrot.slane %v7244_v47, 1  ;;  %3439 = vmatpush.bf16.msrb.mxu2 %v4429_v22 }
 0x293   : > { %v7258_v27 = vsel %vm535_vm2, %v2356_v61, %v2358_v0  ;;  %v753_v0 = vrot.slane %v7125_v8, 2  ;;  %v4424_v8 = vld [vmem:[%s8357_s3 + $0x50] sm:$0xff] }
 0x294   : > { %5119 = vrot.lane.b32.xlu0 %v5118_v37, %s5341_s27  ;;  %5099 = vrot.lane.b32.xlu2 %v5098_v9, %s5341_s27  ;;  %v7255_v9 = vsel %vm535_vm2, %v2355_v39, %v2356_v61  ;;  %8553 = vst [vmem:[#allocation34_spill] sm:$0xff] %v7258_v27  ;;  %v751_v39 = vrot.slane %v7113_v28, 2  ;;  %v750_v61 = vrot.slane %v7111_v43, 2 }
 0x295   : > { %3373 = vmatmul.bf16.gmra.mxu3 %v7231_v14  ;;  %8552 = vst [vmem:[#allocation33_spill] sm:$0xff] %v7255_v9  ;;  %v5128_v22 = vpack.i.bf16 %v7258_v27, %v7255_v9 }
 0x296   : > { %v5055_v28 = vpop.permute.xlu2 %5054  ;;  %v754_v43 = vsel %vm616_vm3, %v751_v39, %v753_v0  ;;  %v2381_v0 = vrot.slane %v6836_v32, 2  ;;  %v4422_v32 = vld [vmem:[%s8357_s3 + $0x40] sm:$0xff] }
 0x29c   : > { %5134 = vrot.lane.b32.xlu0 %v5133_v2, %s5341_s27  ;;  %5114 = vrot.lane.b32.xlu2 %v5113_v44, %s5341_s27  ;;  %v4428_v2 = vld [vmem:[%s8357_s3 + $0x70] sm:$0xff] }
 0x29d   : > { %3440 = vmatpush.bf16.msrb.mxu2 %v4428_v2  ;;  %v5057_v2 = vunpack.i.h.bf16 %v5055_v28 }
 0x29e   : > { %v5050_v37 = vpop.permute.xlu1 %5049 }
 0x29f   : > { %v5052_v20 = vunpack.i.h.bf16 %v5050_v37  ;;  %v5051_v11 = vunpack.i.l.bf16 %v5050_v37 }
 0x2a1   : > { %v2852_v44 = vsel %vm1395_vm4, %v6911_v24, %v5051_v11  ;;  %v2853_v55 = vsel %vm1395_vm4, %v6916_v35, %v5052_v20  ;;  %v4427_v24 = vld [vmem:[%s8357_s3 + $0x68] sm:$0xff]  ;;  %v4426_v35 = vld [vmem:[%s8357_s3 + $0x60] sm:$0xff]  ;;  %v5143_v20 = vpack.i.bf16 %v6998_v51, %v6996_v17 }
 0x2a2   : > { %v7269_v37 = vpack.c.bf16 %v2853_v55, %v2852_v44  ;;  %3441 = vmatpush.bf16.msrb.mxu2 %v4427_v24  ;;  %v752_v55 = vsel %vm616_vm3, %v750_v61, %v751_v39  ;;  %v5056_v44 = vunpack.i.l.bf16 %v5055_v28  ;;  %v4444_v39 = vld [vmem:[%s8357_s3 + $0xf0] sm:$0xff]  ;;  %v2855_v24 = vsel %vm1395_vm4, %v6958_v54, %v5057_v2 }
 0x2a3   : > { %v1604_v11 = vpack.c.bf16 %v754_v43, %v752_v55  ;;  %3618 = vmatpush.bf16.msra.mxu1 %v4444_v39  ;;  %v2383_v28 = vrot.slane %v6838_v46, 2  ;;  %v2380_v43 = vrot.slane %v6832_v4, 2 }
 0x2a4   : > { %5129 = vrot.lane.b32.xlu2 %v5128_v22, %s5341_s27  ;;  %v4425_v22 = vld [vmem:[%s8357_s3 + $0x58] sm:$0xff]  ;;  %v2854_v61 = vsel %vm1395_vm4, %v6950_v31, %v5056_v44 }
 0x2a5   : > { %3378 = vmatmul.bf16.gmra.mxu3 %v7269_v37  ;;  %4199 = vmatmul.msk.bf16.gmra.mxu2 %vm280_vm0, %v1604_v11  ;;  %v7303_v55 = vpack.c.bf16 %v2855_v24, %v2854_v61  ;;  %v7314_v11 = vsel %vm616_vm3, %v2380_v43, %v2381_v0  ;;  %v7317_v2 = vsel %vm616_vm3, %v2381_v0, %v2383_v28  ;;  %v2396_v0 = vrot.slane %v6958_v54, 2 }
 0x2a6   : > { %3442 = vmatpush.bf16.msrb.mxu2 %v4426_v35  ;;  %v5158_v35 = vpack.i.bf16 %v7079_v59, %v7074_v49  ;;  %v5173_v46 = vpack.i.bf16 %v7317_v2, %v7314_v11  ;;  %v5188_v61 = vpack.i.bf16 %v7054_v19, %v7063_v3  ;;  %v2398_v28 = vrot.slane %v6960_v58, 2 }
 0x2aa   : > { %3443 = vmatpush.bf16.msrb.mxu2 %v4425_v22 }
 0x2ac   : > { %5144 = vrot.lane.b32.xlu2 %v5143_v20, %s5341_s27  ;;  %v4423_v20 = vld [vmem:[%s8357_s3 + $0x48] sm:$0xff] }
 0x2ae   : > { %3444 = vmatpush.bf16.msrb.mxu2 %v4424_v8 }
 0x2b2   : > { %3445 = vmatpush.bf16.msrb.mxu2 %v4423_v20  ;;  %v4448_v20 = vld [vmem:[%s8357_s3 + $0x110] sm:$0xff] }
 0x2b3   : > { %3711 = vmatpush.bf16.msra.mxu3 %v4448_v20 }
 0x2b4   : > { %5159 = vrot.lane.b32.xlu2 %v5158_v35, %s5341_s27  ;;  %v7333_v35 = vpop.f32.mrf.mxu3 }
 0x2b5   : > { %3383 = vmatmul.bf16.gmra.mxu3 %v7303_v55 }
 0x2b6   : > { %3446 = vmatpush.bf16.msrb.mxu2 %v4422_v32 }
 0x2bc   : > { %5174 = vrot.lane.b32.xlu2 %v5173_v46, %s5341_s27  ;;  %v7352_v58 = vpop.f32.mrf.mxu3 }
 0x2be   : > { %v5060_v4 = vpop.permute.xlu0 %5059 }
 0x2bf   : > { %v5062_v44 = vunpack.i.h.bf16 %v5060_v4  ;;  %v5061_v22 = vunpack.i.l.bf16 %v5060_v4  ;;  %v4443_v4 = vld [vmem:[%s8357_s3 + $0xe8] sm:$0xff] }
 0x2c0   : > { %3619 = vmatpush.bf16.msra.mxu1 %v4443_v4 }
 0x2c1   : > { %v2856_v8 = vsel %vm1395_vm4, %v6996_v17, %v5061_v22  ;;  %v2857_v39 = vsel %vm1395_vm4, %v6998_v51, %v5062_v44  ;;  %v2395_v17 = vrot.slane %v6950_v31, 2  ;;  %v7344_v51 = vsel %vm616_vm3, %v2396_v0, %v2398_v28 }
 0x2c2   : > { %v7331_v24 = vpack.c.bf16 %v2857_v39, %v2856_v8  ;;  %v5310_v8 = vld [vmem:[#allocation3 + $0x10] sm:$0x3]  ;;  %v2371_v28 = vrot.slane %v6985_v25, 2 }
 0x2c3   : > { %v7341_v43 = vsel %vm616_vm3, %v2395_v17, %v2396_v0  ;;  %v2373_v39 = vrot.slane %v5310_v8, 2  ;;  %v2370_v0 = vrot.slane %v6981_v36, 2 }
 0x2c4   : > { %5189 = vrot.lane.b32.xlu2 %v5188_v61, %s5341_s27  ;;  %v5203_v54 = vpack.i.bf16 %v7344_v51, %v7341_v43 }
 0x2c5   : > { %3388 = vmatmul.bf16.gmra.mxu3 %v7331_v24  ;;  %v2372_v20 = vsel %vm616_vm3, %v2370_v0, %v2371_v28 }
 0x2c6   : > { %v5070_v4 = vpop.permute.xlu2 %5069 }
 0x2c7   : > { %v5072_v36 = vunpack.i.h.bf16 %v5070_v4  ;;  %v5071_v27 = vunpack.i.l.bf16 %v5070_v4 }
 0x2c9   : > { %v2860_v25 = vsel %vm1395_vm4, %v7074_v49, %v5071_v27  ;;  %v2861_v0 = vsel %vm1395_vm4, %v7079_v59, %v5072_v36  ;;  %v4441_v27 = vld [vmem:[%s8357_s3 + $0xd8] sm:$0xff] }
 0x2cc   : > { %5204 = vrot.lane.b32.xlu2 %v5203_v54, %s5341_s27  ;;  %v2374_v54 = vsel %vm616_vm3, %v2371_v28, %v2373_v39  ;;  %v7378_v28 = vpack.c.bf16 %v2861_v0, %v2860_v25  ;;  %v4440_v25 = vld [vmem:[%s8357_s3 + $0xd0] sm:$0xff] }
 0x2cd   : > { %v5311_v0 = vld [vmem:[#allocation3 + $0x20] sm:$0xff] }
 0x2ce   : > { %v5065_v32 = vpop.permute.xlu1 %5064 }
 0x2cf   : > { %v5067_v31 = vunpack.i.h.bf16 %v5065_v32  ;;  %v5066_v46 = vunpack.i.l.bf16 %v5065_v32  ;;  %v7368_v32 = vpop.f32.mrf.mxu3  ;;  %v2053_v23 = vpop.f32.mrf.mxu2 }
 0x2d1   : > { %v2858_v44 = vsel %vm1395_vm4, %v7028_v33, %v5066_v46  ;;  %v2859_v22 = vsel %vm1395_vm4, %v7030_v5, %v5067_v31 }
 0x2d2   : > { %v7361_v61 = vpack.c.bf16 %v2859_v22, %v2858_v44 }
 0x2d5   : > { %3393 = vmatmul.bf16.gmra.mxu3 %v7361_v61 }
 0x2d6   : > { %v5080_v17 = vpop.permute.xlu1 %5079 }
 0x2d7   : > { %v5082_v46 = vunpack.i.h.bf16 %v5080_v17  ;;  %v5081_v31 = vunpack.i.l.bf16 %v5080_v17  ;;  %v7376_v39 = vpop.f32.mrf.mxu3  ;;  %v2055_v42 = vpop.f32.mrf.mxu2 }
 0x2d9   : > { %v2876_v8 = vsel %vm1395_vm4, %v2372_v20, %v5081_v31  ;;  %v2877_v44 = vsel %vm1395_vm4, %v2374_v54, %v5082_v46  ;;  %v4442_v20 = vld [vmem:[%s8357_s3 + $0xe0] sm:$0xff] }
 0x2da   : > { %v2945_v22 = vpack.c.bf16 %v2877_v44, %v2876_v8  ;;  %3620 = vmatpush.bf16.msra.mxu1 %v4442_v20  ;;  %v2376_v20 = vrot.slane %v5311_v0, 2  ;;  %v7412_v0 = vld [vmem:[%s8356_s2] ss:$0 sm:$0xff] }
 0x2dc   : > { %3447 = vmatmul.bf16.vlgmr.msrb.gmra.mxu2 %v2945_v22  ;;  %v4437_v22 = vld [vmem:[%s8357_s3 + $0xb8] sm:$0xff] }
 0x2dd   : > { %3528 = vmatpush.bf16.msra.mxu0 %v4437_v22 }
 0x2de   : > { %v7389_v4 = vpop.permute.xlu1 %5094  ;;  %3621 = vmatpush.bf16.msra.mxu1 %v4441_v27 }
 0x2df   : > { %v7381_v17 = vpop.f32.mrf.mxu3 }
 0x2e2   : > { %3622 = vmatpush.bf16.msra.mxu1 %v4440_v25 }
 0x2e5   : > { %3398 = vmatmul.bf16.gmra.mxu3 %v7378_v28 }
 0x2e6   : > { %v5110_v38 = vpop.permute.xlu1 %5109  ;;  %3623 = vmatpush.bf16.msra.mxu1 %v4439_v6 }
 0x2ea   : > { %3624 = vmatpush.bf16.msra.mxu1 %v4438_v10 }
 0x2ee   : > { %v5075_v54 = vpop.permute.xlu0 %5074 }
 0x2ef   : > { %v5077_v46 = vunpack.i.h.bf16 %v5075_v54  ;;  %v5076_v31 = vunpack.i.l.bf16 %v5075_v54  ;;  %v5312_v54 = vld [vmem:[#allocation3 + $0x28] sm:$0x3] }
 0x2f0   : > { %v2378_v9 = vrot.slane %v5312_v54, 2  ;;  %v1876_v54 = vadd.f32 %v7412_v0, %v7333_v35 }
 0x2f1   : > { %v2862_v8 = vsel %vm1395_vm4, %v7131_v40, %v5076_v31  ;;  %v2863_v44 = vsel %vm1395_vm4, %v7141_v45, %v5077_v46  ;;  %v7403_v31 = vpop.f32.mrf.mxu3  ;;  %v5085_v46 = vpop.permute.xlu2 %5084 }
 0x2f2   : > { %v7398_v36 = vpack.c.bf16 %v2863_v44, %v2862_v8  ;;  %v2375_v8 = vrot.slane %v5313_v60, 2  ;;  %v7420_v18 = vsel %vm616_vm3, %v2376_v20, %v2378_v9  ;;  %v5086_v21 = vunpack.i.l.bf16 %v5085_v46 }
 0x2f4   : > { %v7417_v25 = vsel %vm616_vm3, %v2375_v8, %v2376_v20  ;;  %v5087_v8 = vunpack.i.h.bf16 %v5085_v46 }
 0x2f5   : > { %3403 = vmatmul.bf16.gmra.mxu3 %v7398_v36 }
 0x2f6   : > { %v5090_v27 = vpop.permute.xlu0 %5089 }
 0x2f7   : > { %v5092_v44 = vunpack.i.h.bf16 %v5090_v27  ;;  %v5091_v22 = vunpack.i.l.bf16 %v5090_v27 }
 0x2f9   : > { %v1964_v60 = vpop.f32.mrf.mxu1  ;;  %v2878_v27 = vsel %vm1395_vm4, %v7417_v25, %v5091_v22  ;;  %v2879_v29 = vsel %vm1395_vm4, %v7420_v18, %v5092_v44  ;;  %v7429_v9 = vpop.f32.mrf.mxu3  ;;  %v1878_v44 = vadd.f32 %v7412_v0, %v7352_v58 }
 0x2fa   : > { %v1965_v35 = vadd.f32 %v1964_v60, %v1876_v54  ;;  %v2950_v12 = vpack.c.bf16 %v2879_v29, %v2878_v27  ;;  %v5100_v6 = vpop.permute.xlu2 %5099  ;;  %v2864_v29 = vsel %vm1395_vm4, %v7188_v16, %v5086_v21  ;;  %v5111_v54 = vunpack.i.l.bf16 %v5110_v38 }
 0x2fb   : > { %v5102_v60 = vunpack.i.h.bf16 %v5100_v6  ;;  %v5101_v58 = vunpack.i.l.bf16 %v5100_v6 }
 0x2fc   : > { %v2054_v7 = vadd.f32 %v2053_v23, %v1965_v35  ;;  %3452 = vmatmul.bf16.gmra.mxu2 %v2950_v12  ;;  %v2865_v23 = vsel %vm1395_vm4, %v7193_v34, %v5087_v8  ;;  %v5112_v12 = vunpack.i.h.bf16 %v5110_v38  ;;  %v5125_v35 = vpop.permute.xlu1 %5124  ;;  %v1491_v38 = vsel %vm280_vm0, %v6864_v56, %v5111_v54  ;;  %v2058_v54 = vpop.f32.mrf.mxu2 }
 0x2fd   : > { %v7443_v27 = vpack.c.bf16 %v2865_v23, %v2864_v29  ;;  %v5126_v52 = vunpack.i.l.bf16 %v5125_v35  ;;  %v2881_v23 = vsel %vm1395_vm4, %v7317_v2, %v5102_v60  ;;  %v5096_v60 = vunpack.i.l.bf16 %v7389_v4 }
 0x2fe   : > { %v2094_v20 = vmax.f32 %v2054_v7, 0.0  ;;  %v7431_v22 = vpop.permute.xlu0 %5104  ;;  %v4436_v7 = vld [vmem:[%s8357_s3 + $0xb0] sm:$0xff]  ;;  %v1492_v21 = vsel %vm280_vm0, %v6867_v41, %v5112_v12  ;;  %v1881_v41 = vadd.f32 %v7412_v0, %v7368_v32 }
 0x2ff   : > { %3529 = vmatpush.bf16.msra.mxu0 %v4436_v7 }
 0x300   : > { %2182 = vst.msk [vmem:[#allocation3 + $0x151] sm:$0xff] %vm1395_vm4, %v2094_v20 }
 0x301   : > { %v1966_v46 = vpop.f32.mrf.mxu1  ;;  %v7450_v13 = vpop.f32.mrf.mxu3 }
 0x302   : > { %v1967_v10 = vadd.f32 %v1966_v46, %v1878_v44  ;;  %v5127_v46 = vunpack.i.h.bf16 %v5125_v35  ;;  %8554 = vst [vmem:[#allocation29_spill] sm:$0xff] %v7450_v13 }
 0x304   : > { %v2056_v20 = vadd.f32 %v2055_v42, %v1967_v10  ;;  %v2880_v42 = vsel %vm1395_vm4, %v7314_v11, %v5101_v58  ;;  %v5097_v58 = vunpack.i.h.bf16 %v7389_v4 }
 0x305   : > { %3408 = vmatmul.bf16.gmra.mxu3 %v7443_v27  ;;  %v2954_v7 = vpack.c.bf16 %v2881_v23, %v2880_v42  ;;  %v5115_v42 = vpop.permute.xlu2 %5114 }
 0x306   : > { %v2095_v8 = vmax.f32 %v2056_v20, 0.0  ;;  %v5120_v44 = vpop.permute.xlu0 %5119  ;;  %v2867_v4 = vsel %vm1395_vm4, %v7054_v19, %v5097_v58  ;;  %v2410_v58 = vrot.slane %v7074_v49, 2 }
 0x307   : > { %v5122_v6 = vunpack.i.h.bf16 %v5120_v44  ;;  %v5121_v29 = vunpack.i.l.bf16 %v5120_v44  ;;  %v7465_v32 = vld [vmem:[#allocation3 + $0x150] sm:$0xff] }
 0x308   : > { %2183 = vst.msk [vmem:[#allocation3 + $0x159] sm:$0xff] %vm1395_vm4, %v2095_v8 }
 0x309   : > { %v1523_v56 = vsel %vm1395_vm4, %v1491_v38, %v5121_v29  ;;  %v1524_v12 = vsel %vm1395_vm4, %v1492_v21, %v5122_v6  ;;  %v4447_v21 = vld [vmem:[%s8357_s3 + $0x108] sm:$0xff]  ;;  %v7470_v38 = vpop.f32.mrf.mxu3 }
 0x30a   : > { %v1969_v10 = vpop.f32.mrf.mxu1  ;;  %v1555_v35 = vsel %vm1428_vm5, %v1523_v56, %v5126_v52  ;;  %v1556_v20 = vsel %vm1428_vm5, %v1524_v12, %v5127_v46  ;;  %v2866_v46 = vsel %vm1395_vm4, %v7063_v3, %v5096_v60  ;;  %3712 = vmatpush.bf16.msra.mxu3 %v4447_v21  ;;  %v2411_v3 = vrot.slane %v7079_v59, 2  ;;  %v5316_v60 = vld [vmem:[#allocation3 + $0x58] sm:$0x3]  ;;  %v2060_v59 = vpop.f32.mrf.mxu2 }
 0x30b   : > { %v1970_v44 = vadd.f32 %v1969_v10, %v1881_v41  ;;  %v1603_v8 = vpack.c.bf16 %v1556_v20, %v1555_v35  ;;  %v2360_v41 = vrot.slane %v7465_v32, 1  ;;  %v2413_v10 = vrot.slane %v7081_v62, 2 }
 0x30c   : > { %3457 = vmatmul.bf16.gmra.mxu2 %v2954_v7  ;;  %v7491_v35 = vpack.c.bf16 %v2867_v4, %v2866_v46 }
 0x30d   : > { %v2059_v13 = vadd.f32 %v2058_v54, %v1970_v44  ;;  %1973 = vmatmul.bf16.gmra.mxu1 %v1603_v8  ;;  %v1883_v54 = vadd.f32 %v7412_v0, %v7376_v39  ;;  %v2388_v39 = vrot.slane %v5316_v60, 2  ;;  %v5117_v44 = vunpack.i.h.bf16 %v5115_v42 }
 0x30e   : > { %v5116_v8 = vunpack.i.l.bf16 %v5115_v42  ;;  %v7507_v49 = vsel %vm616_vm3, %v2411_v3, %v2413_v10  ;;  %v2421_v10 = vrot.slane %v7193_v34, 2 }
 0x30f   : > { %v2096_v52 = vmax.f32 %v2059_v13, 0.0  ;;  %v7472_v6 = vld [vmem:[#allocation3 + $0x158] sm:$0xff]  ;;  %v7478_v29 = vld [vmem:[#allocation3 + $0x160] sm:$0x3]  ;;  %v5315_v13 = vld [vmem:[#allocation3 + $0x50] sm:$0xff] }
 0x310   : > { %v5218_v23 = vpack.i.bf16 %v7472_v6, %v7465_v32  ;;  %v2361_v56 = vrot.slane %v7472_v6, 1  ;;  %v2386_v12 = vrot.slane %v5315_v13, 2  ;;  %v2363_v19 = vrot.slane %v7478_v29, 1 }
 0x311   : > { %2184 = vst.msk [vmem:[#allocation3 + $0x169] sm:$0xff] %vm1395_vm4, %v2096_v52 }
 0x312   : > { %v1971_v7 = vpop.f32.mrf.mxu1  ;;  %5219 = vrot.lane.b32.xlu2 %v5218_v23, %s5341_s27  ;;  %v7494_v20 = vsel %vm535_vm2, %v2360_v41, %v2361_v56  ;;  %v7498_v52 = vsel %vm535_vm2, %v2361_v56, %v2363_v19  ;;  %v5317_v23 = vld [vmem:[#allocation3 + $0x48] sm:$0xff]  ;;  %v7504_v41 = vsel %vm616_vm3, %v2410_v58, %v2411_v3  ;;  %v7514_v56 = vsel %vm616_vm3, %v2386_v12, %v2388_v39  ;;  %v7522_v3 = vpop.f32.mrf.mxu3 }
 0x313   : > { %8555 = vst [vmem:[#allocation30_spill] sm:$0xff] %v7494_v20  ;;  %v1972_v21 = vadd.f32 %v1971_v7, %v1883_v54  ;;  %v5138_v62 = vpack.i.bf16 %v7498_v52, %v7494_v20  ;;  %v2385_v46 = vrot.slane %v5317_v23, 2  ;;  %v2883_v19 = vsel %vm1395_vm4, %v7514_v56, %v5117_v44 }
 0x314   : > { %8556 = vst [vmem:[#allocation37_spill] sm:$0xff] %v7498_v52  ;;  %v5233_v7 = vpack.i.bf16 %v7507_v49, %v7504_v41  ;;  %v2423_v58 = vrot.slane %v7195_v48, 2  ;;  %v5107_v39 = vunpack.i.h.bf16 %v7431_v22  ;;  %v5106_v44 = vunpack.i.l.bf16 %v7431_v22 }
 0x315   : > { %v2061_v4 = vadd.f32 %v2060_v59, %v1972_v21  ;;  %3413 = vmatmul.bf16.gmra.mxu3 %v7491_v35  ;;  %5139 = vrot.lane.b32.xlu1 %v5138_v62, %s5341_s27  ;;  %v7511_v42 = vsel %vm616_vm3, %v2385_v46, %v2386_v12  ;;  %8557 = vst [vmem:[#allocation6_spill] sm:$0xff] %v7522_v3  ;;  %v4435_v12 = vld [vmem:[%s8357_s3 + $0xa8] sm:$0xff]  ;;  %v5135_v46 = vpop.permute.xlu0 %5134 }
 0x316   : > { %v2882_v54 = vsel %vm1395_vm4, %v7511_v42, %v5116_v8  ;;  %v2420_v8 = vrot.slane %v7188_v16, 2  ;;  %3530 = vmatpush.bf16.msra.mxu0 %v4435_v12  ;;  %v5153_v21 = vpack.i.bf16 %v7030_v5, %v7028_v33  ;;  %v7541_v59 = vsel %vm616_vm3, %v2421_v10, %v2423_v58 }
 0x317   : > { %v2097_v13 = vmax.f32 %v2061_v4, 0.0  ;;  %v2958_v60 = vpack.c.bf16 %v2883_v19, %v2882_v54  ;;  %v2868_v22 = vsel %vm1395_vm4, %v7177_v30, %v5106_v44  ;;  %v2869_v23 = vsel %vm1395_vm4, %v7167_v63, %v5107_v39  ;;  %v5319_v44 = vld [vmem:[#allocation3 + $0x70] sm:$0x3] }
 0x318   : > { %v7538_v48 = vsel %vm616_vm3, %v2420_v8, %v2421_v10  ;;  %v7544_v62 = vld [vmem:[#allocation3 + $0x168] sm:$0xff]  ;;  %v2436_v4 = vrot.slane %v7236_v57, 2  ;;  %v7565_v58 = vpack.c.bf16 %v2869_v23, %v2868_v22  ;;  %v2435_v12 = vrot.slane %v7244_v47, 2 }
 0x319   : > { %2185 = vst.msk [vmem:[#allocation3 + $0x171] sm:$0xff] %vm1395_vm4, %v2097_v13  ;;  %v5248_v33 = vpack.i.bf16 %v7541_v59, %v7538_v48  ;;  %v2365_v13 = vrot.slane %v7544_v62, 1  ;;  %v4453_v10 = vld [vmem:[%s8359_s5 + $0x18] sm:$0xff]  ;;  %v2393_v8 = vrot.slane %v5319_v44, 2  ;;  %v5137_v52 = vunpack.i.h.bf16 %v5135_v46 }
 0x31a   : > { %5234 = vrot.lane.b32.xlu2 %v5233_v7, %s5341_s27  ;;  %v2438_v7 = vrot.slane %v7238_v50, 2  ;;  %v5136_v20 = vunpack.i.l.bf16 %v5135_v46  ;;  %3931 = vmatpush.bf16.msra.mxu2 %v4453_v10  ;;  %v5168_v23 = vpack.i.bf16 %v7141_v45, %v7131_v40  ;;  %v7582_v44 = vsel %vm616_vm3, %v2435_v12, %v2436_v4 }
 0x31c   : > { %3462 = vmatmul.bf16.gmra.mxu2 %v2958_v60  ;;  %v5318_v60 = vld [vmem:[#allocation3 + $0x68] sm:$0xff]  ;;  %v7585_v46 = vsel %vm616_vm3, %v2436_v4, %v2438_v7  ;;  %v4434_v7 = vld [vmem:[%s8357_s3 + $0xa0] sm:$0xff] }
 0x31d   : > { %3625 = vmatmul.bf16.vlgmr.msra.gmra.mxu1 %v7179_v26  ;;  %5154 = vrot.lane.b32.xlu1 %v5153_v21, %s5341_s27  ;;  %v2391_v39 = vrot.slane %v5318_v60, 2  ;;  %v7568_v21 = vpop.f32.mrf.mxu3  ;;  %v5263_v4 = vpack.i.bf16 %v7585_v46, %v7582_v44 }
 0x31e   : > { %3531 = vmatpush.bf16.msra.mxu0 %v4434_v7 }
 0x320   : > { %v7552_v5 = vld [vmem:[#allocation3 + $0x170] sm:$0xff]  ;;  %v7554_v26 = vld [vmem:[#allocation3 + $0x178] sm:$0x3] }
 0x321   : > { %v2366_v54 = vrot.slane %v7552_v5, 1  ;;  %v2368_v19 = vrot.slane %v7554_v26, 1 }
 0x322   : > { %5249 = vrot.lane.b32.xlu2 %v5248_v33, %s5341_s27  ;;  %v5320_v33 = vld [vmem:[#allocation3 + $0x60] sm:$0xff] }
 0x323   : > { %v7571_v50 = vsel %vm535_vm2, %v2365_v13, %v2366_v54  ;;  %v7574_v3 = vsel %vm535_vm2, %v2366_v54, %v2368_v19  ;;  %v2390_v60 = vrot.slane %v5320_v33, 2  ;;  %v5130_v13 = vpop.permute.xlu2 %5129  ;;  %v7593_v19 = vsel %vm616_vm3, %v2391_v39, %v2393_v8 }
 0x324   : > { %8558 = vst [vmem:[#allocation5_spill] sm:$0xff] %v7571_v50  ;;  %v5148_v22 = vpack.i.bf16 %v7574_v3, %v7571_v50  ;;  %v2885_v12 = vsel %vm1395_vm4, %v7593_v19, %v5137_v52  ;;  %v5183_v52 = vpack.i.bf16 %v7514_v56, %v7511_v42 }
 0x325   : > { %8559 = vst [vmem:[#allocation9_spill] sm:$0xff] %v7574_v3  ;;  %3418 = vmatmul.bf16.gmra.mxu3 %v7565_v58  ;;  %5169 = vrot.lane.b32.xlu1 %v5168_v23, %s5341_s27  ;;  %v7590_v54 = vsel %vm616_vm3, %v2390_v60, %v2391_v39  ;;  %v5132_v23 = vunpack.i.h.bf16 %v5130_v13  ;;  %v5131_v39 = vunpack.i.l.bf16 %v5130_v13  ;;  %v7609_v8 = vpop.f32.mrf.mxu3  ;;  %v1886_v3 = vadd.f32 %v7412_v0, %v7381_v17 }
 0x326   : > { %5149 = vrot.lane.b32.xlu0 %v5148_v22, %s5341_s27  ;;  %v2884_v10 = vsel %vm1395_vm4, %v7590_v54, %v5136_v20  ;;  %v5163_v20 = vpack.i.bf16 %v7420_v18, %v7417_v25  ;;  %8560 = vst [vmem:[#allocation10_spill] sm:$0xff] %v7609_v8 }
 0x327   : > { %v2962_v22 = vpack.c.bf16 %v2885_v12, %v2884_v10  ;;  %v2870_v60 = vsel %vm1395_vm4, %v7244_v47, %v5131_v39  ;;  %v2871_v13 = vsel %vm1395_vm4, %v7236_v57, %v5132_v23  ;;  %v5178_v12 = vpack.i.bf16 %v7193_v34, %v7188_v16  ;;  %v5323_v34 = vld [vmem:[#allocation3 + $0x90] sm:$0xff] }
 0x328   : > { %v7618_v25 = vpack.c.bf16 %v2871_v13, %v2870_v60 }
 0x32a   : > { %5264 = vrot.lane.b32.xlu2 %v5263_v4, %s5341_s27  ;;  %v5321_v4 = vld [vmem:[#allocation3 + $0x98] sm:$0xff] }
 0x32b   : > { %v5145_v33 = vpop.permute.xlu2 %5144  ;;  %v2401_v7 = vrot.slane %v5321_v4, 2  ;;  %v5208_v4 = vpack.i.bf16 %v7236_v57, %v7244_v47 }
 0x32c   : > { %3467 = vmatmul.bf16.gmra.mxu2 %v2962_v22  ;;  %v5147_v10 = vunpack.i.h.bf16 %v5145_v33  ;;  %v5146_v18 = vunpack.i.l.bf16 %v5145_v33  ;;  %v5322_v22 = vld [vmem:[#allocation3 + $0xa0] sm:$0x3] }
 0x32d   : > { %3630 = vmatmul.bf16.gmra.mxu1 %v7231_v14  ;;  %5184 = vrot.lane.b32.xlu1 %v5183_v52, %s5341_s27  ;;  %v5198_v14 = vpack.i.bf16 %v7167_v63, %v7177_v30  ;;  %v7627_v23 = vpop.f32.mrf.mxu3  ;;  %v2400_v52 = vrot.slane %v5323_v34, 2  ;;  %v2418_v34 = vrot.slane %v7143_v1, 2 }
 0x32e   : > { %5164 = vrot.lane.b32.xlu0 %v5163_v20, %s5341_s27  ;;  %v2403_v20 = vrot.slane %v5322_v22, 2  ;;  %v2886_v39 = vsel %vm1395_vm4, %v7341_v43, %v5146_v18  ;;  %v2887_v16 = vsel %vm1395_vm4, %v7344_v51, %v5147_v10  ;;  %v4433_v18 = vld [vmem:[%s8357_s3 + $0x98] sm:$0xff]  ;;  %v5324_v22 = vld [vmem:[#allocation3 + $0xb0] sm:$0xff] }
 0x32f   : > { %v7634_v33 = vsel %vm616_vm3, %v2400_v52, %v2401_v7  ;;  %v2966_v13 = vpack.c.bf16 %v2887_v16, %v2886_v39  ;;  %3532 = vmatpush.bf16.msra.mxu0 %v4433_v18  ;;  %v2416_v16 = vrot.slane %v7141_v45, 2  ;;  %v5326_v52 = vld [vmem:[#allocation3 + $0xa8] sm:$0xff]  ;;  %v2063_v18 = vpop.f32.mrf.mxu2 }
 0x330   : > { %v7637_v60 = vsel %vm616_vm3, %v2401_v7, %v2403_v20  ;;  %v5228_v7 = vpack.i.bf16 %v7552_v5, %v7544_v62  ;;  %v2406_v20 = vrot.slane %v5324_v22, 2  ;;  %v2433_v22 = vrot.slane %v7173_v53, 2 }
 0x331   : > { %v7670_v45 = vsel %vm616_vm3, %v2416_v16, %v2418_v34 }
 0x335   : > { %3423 = vmatmul.bf16.gmra.mxu3 %v7618_v25  ;;  %5199 = vrot.lane.b32.xlu1 %v5198_v14, %s5341_s27  ;;  %v5213_v14 = vpack.i.bf16 %v7637_v60, %v7634_v33  ;;  %v7646_v10 = vpop.f32.mrf.mxu3 }
 0x336   : > { %5179 = vrot.lane.b32.xlu0 %v5178_v12, %s5341_s27  ;;  %v5193_v12 = vpack.i.bf16 %v7593_v19, %v7590_v54  ;;  %8561 = vst [vmem:[#allocation14_spill] sm:$0xff] %v7646_v10 }
 0x337   : > { %v2065_v34 = vpop.f32.mrf.mxu2 }
 0x33c   : > { %3472 = vmatmul.bf16.gmra.mxu2 %v2966_v13  ;;  %v2405_v13 = vrot.slane %v5326_v52, 2  ;;  %v2448_v52 = vrot.slane %v7554_v26, 2 }
 0x33d   : > { %3635 = vmatmul.bf16.gmra.mxu1 %v7269_v37  ;;  %5214 = vrot.lane.b32.xlu1 %v5213_v14, %s5341_s27  ;;  %v5325_v37 = vld [vmem:[#allocation3 + $0xb8] sm:$0x3]  ;;  %v7672_v1 = vpop.f32.mrf.mxu3 }
 0x33e   : > { %5194 = vrot.lane.b32.xlu0 %v5193_v12, %s5341_s27  ;;  %v2408_v39 = vrot.slane %v5325_v37, 2  ;;  %v2415_v12 = vrot.slane %v7131_v40, 2  ;;  %v7661_v57 = vsel %vm616_vm3, %v2405_v13, %v2406_v20  ;;  %v2430_v37 = vrot.slane %v7177_v30, 2 }
 0x33f   : > { %v2446_v30 = vrot.slane %v7552_v5, 2  ;;  %v2445_v13 = vrot.slane %v7544_v62, 2 }
 0x340   : > { %v7664_v47 = vsel %vm616_vm3, %v2406_v20, %v2408_v39  ;;  %v7667_v14 = vsel %vm616_vm3, %v2415_v12, %v2416_v16  ;;  %v4446_v20 = vld [vmem:[%s8357_s3 + $0x100] sm:$0xff] }
 0x341   : > { %v5243_v40 = vpack.i.bf16 %v7670_v45, %v7667_v14  ;;  %3713 = vmatpush.bf16.msra.mxu3 %v4446_v20  ;;  %v7705_v12 = vsel %vm616_vm3, %v2445_v13, %v2446_v30 }
 0x345   : > { %5229 = vrot.lane.b32.xlu1 %v5228_v7, %s5341_s27  ;;  %v2431_v7 = vrot.slane %v7167_v63, 2  ;;  %v4432_v63 = vld [vmem:[%s8357_s3 + $0x90] sm:$0xff]  ;;  %v7698_v16 = vpop.f32.mrf.mxu3 }
 0x346   : > { %5209 = vrot.lane.b32.xlu0 %v5208_v4, %s5341_s27  ;;  %v5223_v4 = vpack.i.bf16 %v7664_v47, %v7661_v57  ;;  %3533 = vmatpush.bf16.msra.mxu0 %v4432_v63  ;;  %8562 = vst [vmem:[#allocation4_spill] sm:$0xff] %v7698_v16  ;;  %v4452_v63 = vld [vmem:[%s8359_s5 + $0x10] sm:$0xff] }
 0x347   : > { %v7688_v39 = vsel %vm616_vm3, %v2430_v37, %v2431_v7  ;;  %3932 = vmatpush.bf16.msra.mxu2 %v4452_v63 }
 0x34d   : > { %3640 = vmatmul.bf16.gmra.mxu1 %v7303_v55  ;;  %5244 = vrot.lane.b32.xlu1 %v5243_v40, %s5341_s27  ;;  %v7691_v55 = vsel %vm616_vm3, %v2431_v7, %v2433_v22  ;;  %v7713_v40 = vld [vmem:[%s8358_s4] ss:$0 sm:$0xff]  ;;  %v7721_v22 = vpop.f32.mrf.mxu3 }
 0x34e   : > { %5224 = vrot.lane.b32.xlu0 %v5223_v4, %s5341_s27  ;;  %v5258_v53 = vpack.i.bf16 %v7691_v55, %v7688_v39  ;;  %v7708_v4 = vsel %vm616_vm3, %v2446_v30, %v2448_v52  ;;  %v3360_v26 = vadd.f32 %v7713_v40, %v7429_v9  ;;  %v4430_v52 = vld [vmem:[%s8357_s3 + $0x80] sm:$0xff]  ;;  %v3370_v16 = vadd.f32 %v7713_v40, %v7568_v21 }
 0x34f   : > { %v5273_v7 = vpack.i.bf16 %v7708_v4, %v7705_v12 }
 0x355   : > { %5259 = vrot.lane.b32.xlu1 %v5258_v53, %s5341_s27  ;;  %v4431_v53 = vld [vmem:[%s8357_s3 + $0x88] sm:$0xff] }
 0x356   : > { %3534 = vmatpush.bf16.msra.mxu0 %v4431_v53 }
 0x35a   : > { %3535 = vmatpush.bf16.msra.mxu0 %v4430_v52 }
 0x35d   : > { %3645 = vmatmul.bf16.gmra.mxu1 %v7331_v24  ;;  %5274 = vrot.lane.b32.xlu1 %v5273_v7, %s5341_s27  ;;  %v7731_v24 = vpop.f32.mrf.mxu3  ;;  %v3365_v7 = vadd.f32 %v7713_v40, %v7470_v38 }
 0x35e   : > { %8563 = vst [vmem:[#allocation42_spill] sm:$0xff] %v7731_v24 }
 0x35f   : > { %v3448_v20 = vpop.f32.mrf.mxu2 }
 0x360   : > { %v7723_v37 = vadd.f32 %v3448_v20, %v3360_v26 }
 0x365   : > { %v7734_v9 = vpop.f32.mrf.mxu3 }
 0x367   : > { %v7736_v30 = vpop.f32.mrf.mxu2 }
 0x36d   : > { %3650 = vmatmul.bf16.gmra.mxu1 %v7361_v61  ;;  %v7741_v13 = vpop.f32.mrf.mxu3 }
 0x36e   : > { %8564 = vst [vmem:[#allocation39_spill] sm:$0xff] %v7741_v13 }
 0x375   : > { %v7748_v61 = vpop.f32.mrf.mxu3 }
 0x37d   : > { %3655 = vmatmul.bf16.gmra.mxu1 %v7378_v28 }
 0x37f   : > { %v3453_v26 = vpop.f32.mrf.mxu2 }
 0x380   : > { %v7746_v20 = vadd.f32 %v3453_v26, %v3365_v7 }
 0x382   : > { %8565 = vst [vmem:[#allocation38_spill] sm:$0xff] %v7746_v20 }
 0x387   : > { %v7750_v63 = vpop.f32.mrf.mxu2  ;;  %v5140_v53 = vpop.permute.xlu1 %5139 }
 0x388   : > { %8566 = vst [vmem:[#allocation41_spill] sm:$0xff] %v7750_v63  ;;  %v5142_v50 = vunpack.i.h.bf16 %v5140_v53  ;;  %v5141_v52 = vunpack.i.l.bf16 %v5140_v53 }
 0x38a   : > { %v1974_v24 = vpop.f32.mrf.mxu1  ;;  %v2872_v28 = vsel %vm1395_vm4, %v7465_v32, %v5141_v52  ;;  %v2873_v38 = vsel %vm1395_vm4, %v7472_v6, %v5142_v50  ;;  %v7768_v52 = vpop.f32.mrf.mxu3 }
 0x38b   : > { %v1975_v13 = vadd.f32 %v1974_v24, %v1886_v3  ;;  %v7758_v7 = vpack.c.bf16 %v2873_v38, %v2872_v28  ;;  %v1888_v24 = vadd.f32 %v7412_v0, %v7403_v31  ;;  %8568 = vst [vmem:[#allocation43_spill] sm:$0xff] %v7768_v52  ;;  %v5160_v0 = vpop.permute.xlu2 %5159 }
 0x38d   : > { %v2064_v26 = vadd.f32 %v2063_v18, %v1975_v13  ;;  %3660 = vmatmul.bf16.gmra.mxu1 %v7398_v36  ;;  %3428 = vmatmul.bf16.gmra.mxu3 %v7758_v7 }
 0x38f   : > { %v2098_v17 = vmax.f32 %v2064_v26, 0.0  ;;  %v3458_v53 = vpop.f32.mrf.mxu2  ;;  %v5155_v3 = vpop.permute.xlu1 %5154 }
 0x390   : > { %v7764_v10 = vadd.f32 %v3458_v53, %v3370_v16  ;;  %v5157_v50 = vunpack.i.h.bf16 %v5155_v3  ;;  %v5156_v18 = vunpack.i.l.bf16 %v5155_v3 }
 0x391   : > { %2186 = vst.msk [vmem:[#allocation3 + $0x181] sm:$0xff] %vm1395_vm4, %v2098_v17 }
 0x392   : > { %8567 = vst [vmem:[#allocation40_spill] sm:$0xff] %v7764_v10  ;;  %v1976_v36 = vpop.f32.mrf.mxu1  ;;  %v2888_v21 = vsel %vm1395_vm4, %v7634_v33, %v5156_v18  ;;  %v2889_v28 = vsel %vm1395_vm4, %v7637_v60, %v5157_v50  ;;  %v7778_v52 = vpop.f32.mrf.mxu3  ;;  %v5162_v18 = vunpack.i.h.bf16 %v5160_v0  ;;  %v8572_v10 = vld [vmem:[#allocation13_spill] sm:$0xff] }
 0x393   : > { %v1977_v13 = vadd.f32 %v1976_v36, %v1888_v24  ;;  %v2970_v16 = vpack.c.bf16 %v2889_v28, %v2888_v21  ;;  %8570 = vst [vmem:[#allocation45_spill] sm:$0xff] %v7778_v52  ;;  %v5161_v36 = vunpack.i.l.bf16 %v5160_v0 }
 0x395   : > { %v2066_v38 = vadd.f32 %v2065_v34, %v1977_v13  ;;  %3477 = vmatmul.bf16.gmra.mxu2 %v2970_v16  ;;  %v3375_v13 = vadd.f32 %v7713_v40, %v7627_v23  ;;  %v4451_v23 = vld [vmem:[%s8359_s5 + $0x8] sm:$0xff] }
 0x396   : > { %3933 = vmatpush.bf16.msra.mxu2 %v4451_v23 }
 0x397   : > { %v2099_v26 = vmax.f32 %v2066_v38, 0.0  ;;  %v7775_v53 = vpop.f32.mrf.mxu2 }
 0x398   : > { %8569 = vst [vmem:[#allocation44_spill] sm:$0xff] %v7775_v53  ;;  %v5150_v31 = vpop.permute.xlu0 %5149  ;;  %v7790_v21 = vld [vmem:[#allocation3 + $0x180] sm:$0xff] }
 0x399   : > { %2187 = vst.msk [vmem:[#allocation3 + $0x189] sm:$0xff] %vm1395_vm4, %v2099_v26  ;;  %v5152_v17 = vunpack.i.h.bf16 %v5150_v31  ;;  %v5151_v3 = vunpack.i.l.bf16 %v5150_v31  ;;  %v5327_v31 = vld [vmem:[#allocation3 + $0x110] sm:$0xff] }
 0x39a   : > { %v2426_v0 = vrot.slane %v5327_v31, 2  ;;  %v2522_v31 = vrot.slane %v7790_v21, 2  ;;  %v7820_v23 = vpop.f32.mrf.mxu3 }
 0x39b   : > { %v2874_v24 = vsel %vm1395_vm4, %v7544_v62, %v5151_v3  ;;  %v2875_v50 = vsel %vm1395_vm4, %v7552_v5, %v5152_v17  ;;  %v2891_v5 = vsel %vm1395_vm4, %v7664_v47, %v5162_v18  ;;  %8575 = vst [vmem:[#allocation48_spill] sm:$0xff] %v7820_v23 }
 0x39c   : > { %v7784_v34 = vpack.c.bf16 %v2875_v50, %v2874_v24  ;;  %v2890_v50 = vsel %vm1395_vm4, %v7661_v57, %v5161_v36 }
 0x39d   : > { %3665 = vmatmul.bf16.gmra.mxu1 %v7443_v27  ;;  %v5328_v27 = vld [vmem:[#allocation3 + $0x118] sm:$0x3]  ;;  %v2974_v20 = vpack.c.bf16 %v2891_v5, %v2890_v50 }
 0x39e   : > { %3433 = vmatmul.bf16.gmra.mxu3 %v7784_v34  ;;  %v2428_v17 = vrot.slane %v5328_v27, 2 }
 0x39f   : > { %v3463_v28 = vpop.f32.mrf.mxu2 }
 0x3a0   : > { %v7792_v16 = vadd.f32 %v3463_v28, %v3375_v13  ;;  %v5165_v62 = vpop.permute.xlu0 %5164  ;;  %v7794_v38 = vld [vmem:[#allocation3 + $0x188] sm:$0xff]  ;;  %v2238_v26 = vld [vmem:[#allocation3 + $0x190] sm:$0x3]  ;;  %v2485_v13 = vrot.slane %v7790_v21, 1 }
 0x3a1   : > { %v5167_v3 = vunpack.i.h.bf16 %v5165_v62  ;;  %v5166_v24 = vunpack.i.l.bf16 %v5165_v62  ;;  %v5238_v28 = vpack.i.bf16 %v7794_v38, %v7790_v21  ;;  %v2486_v18 = vrot.slane %v7794_v38, 1 }
 0x3a2   : > { %8571 = vst [vmem:[#allocation46_spill] sm:$0xff] %v7792_v16  ;;  %v2488_v16 = vrot.slane %v2238_v26, 1  ;;  %v2523_v53 = vrot.slane %v7794_v38, 2  ;;  %v2525_v36 = vrot.slane %v2238_v26, 2 }
 0x3a3   : > { %v2909_v27 = vsel %vm1395_vm4, %v6817_v15, %v5167_v3  ;;  %v2908_v62 = vsel %vm1395_vm4, %v8572_v10, %v5166_v24  ;;  %5239 = vrot.lane.b32.xlu0 %v5238_v28, %s5341_s27  ;;  %v7815_v63 = vsel %vm535_vm2, %v2485_v13, %v2486_v18  ;;  %v5329_v3 = vld [vmem:[#allocation3 + $0x108] sm:$0xff]  ;;  %v7839_v13 = vsel %vm616_vm3, %v2426_v0, %v2428_v17  ;;  %v5175_v28 = vpop.permute.xlu2 %5174 }
 0x3a4   : > { %v2946_v8 = vpack.c.bf16 %v2909_v27, %v2908_v62  ;;  %8573 = vst [vmem:[#allocation13_spill] sm:$0xff] %v7815_v63  ;;  %v7818_v52 = vsel %vm535_vm2, %v2486_v18, %v2488_v16  ;;  %v2425_v10 = vrot.slane %v5329_v3, 2  ;;  %v7825_v24 = vsel %vm616_vm3, %v2522_v31, %v2523_v53  ;;  %v5170_v18 = vpop.permute.xlu1 %5169 }
 0x3a5   : > { %8574 = vst [vmem:[#allocation47_spill] sm:$0xff] %v7818_v52  ;;  %v5278_v15 = vpack.i.bf16 %v7818_v52, %v7815_v63  ;;  %v7828_v26 = vsel %vm616_vm3, %v2523_v53, %v2525_v36  ;;  %3482 = vmatmul.bf16.gmra.mxu2 %v2974_v20  ;;  %v2443_v20 = vrot.slane %v7478_v29, 2  ;;  %v2948_v31 = vpack.c.bf16 %v7317_v2, %v7314_v11 }
 0x3a6   : > { %8576 = vst [vmem:[#allocation49_spill] sm:$0xff] %v7825_v24  ;;  %3536 = vmatmul.bf16.vlgmr.msra.gmra.mxu0 %v2946_v8  ;;  %v7836_v50 = vsel %vm616_vm3, %v2425_v10, %v2426_v0  ;;  %v2441_v8 = vrot.slane %v7472_v6, 2  ;;  %v2440_v27 = vrot.slane %v7465_v32, 2  ;;  %v5177_v62 = vunpack.i.h.bf16 %v5175_v28  ;;  %v7853_v6 = vpop.f32.mrf.mxu3 }
 0x3a7   : > { %8577 = vst [vmem:[#allocation50_spill] sm:$0xff] %v7828_v26  ;;  %5279 = vrot.lane.b32.xlu2 %v5278_v15, %s5341_s27  ;;  %v7833_v16 = vpop.f32.mrf.mxu2  ;;  %v5253_v53 = vpack.i.bf16 %v7839_v13, %v7836_v50  ;;  %v5176_v36 = vunpack.i.l.bf16 %v5175_v28  ;;  %v5172_v0 = vunpack.i.h.bf16 %v5170_v18  ;;  %v5171_v17 = vunpack.i.l.bf16 %v5170_v18  ;;  %v8579_v28 = vld [vmem:[#allocation8_spill] sm:$0xff] }
 0x3a8   : > { %v3380_v15 = vadd.f32 %v7713_v40, %v7672_v1  ;;  %v7856_v11 = vsel %vm616_vm3, %v2440_v27, %v2441_v8  ;;  %v7859_v2 = vsel %vm616_vm3, %v2441_v8, %v2443_v20  ;;  %v8578_v1 = vld [vmem:[#allocation7_spill] sm:$0xff]  ;;  %v2911_v18 = vsel %vm1395_vm4, %v8579_v28, %v5177_v62 }
 0x3a9   : > { %v2892_v3 = vsel %vm1395_vm4, %v7504_v41, %v5171_v17  ;;  %v2910_v10 = vsel %vm1395_vm4, %v8578_v1, %v5176_v36  ;;  %v5180_v17 = vpop.permute.xlu0 %5179  ;;  %v5283_v36 = vpack.i.bf16 %v7828_v26, %v7825_v24  ;;  %v2953_v62 = vpack.c.bf16 %v7514_v56, %v7511_v42  ;;  %v8581_v56 = vld [vmem:[#allocation18_spill] sm:$0xff] }
 0x3aa   : > { %v2951_v20 = vpack.c.bf16 %v2911_v18, %v2910_v10  ;;  %v3385_v1 = vadd.f32 %v7713_v40, %v7721_v22 }
 0x3ab   : > { %5254 = vrot.lane.b32.xlu0 %v5253_v53, %s5341_s27  ;;  %v5268_v53 = vpack.i.bf16 %v7859_v2, %v7856_v11 }
 0x3ad   : > { %3670 = vmatmul.bf16.gmra.mxu1 %v7491_v35  ;;  %v2893_v35 = vsel %vm1395_vm4, %v7507_v49, %v5172_v0  ;;  %v5185_v0 = vpop.permute.xlu1 %5184 }
 0x3ae   : > { %4344 = vmatmul.msk.bf16.vlgmr.msra.gmra.mxu3 %vm1395_vm4, %v2948_v31  ;;  %v2978_v8 = vpack.c.bf16 %v2893_v35, %v2892_v3  ;;  %v7876_v27 = vpop.f32.mrf.mxu3  ;;  %v5182_v3 = vunpack.i.h.bf16 %v5180_v17  ;;  %v5181_v35 = vunpack.i.l.bf16 %v5180_v17  ;;  %v5190_v17 = vpop.permute.xlu2 %5189 }
 0x3af   : > { %v3468_v29 = vpop.f32.mrf.mxu2  ;;  %8580 = vst [vmem:[#allocation7_spill] sm:$0xff] %v7876_v27 }
 0x3b0   : > { %v7861_v32 = vadd.f32 %v3468_v29, %v3380_v15  ;;  %v5187_v15 = vunpack.i.h.bf16 %v5185_v0  ;;  %v5186_v29 = vunpack.i.l.bf16 %v5185_v0  ;;  %v2894_v18 = vsel %vm1395_vm4, %v7667_v14, %v5181_v35 }
 0x3b1   : > { %v2895_v42 = vsel %vm1395_vm4, %v7670_v45, %v5182_v3  ;;  %v5192_v35 = vunpack.i.h.bf16 %v5190_v17 }
 0x3b2   : > { %v2982_v22 = vpack.c.bf16 %v2895_v42, %v2894_v18 }
 0x3b3   : > { %5269 = vrot.lane.b32.xlu0 %v5268_v53, %s5341_s27  ;;  %v2912_v53 = vsel %vm1395_vm4, %v8581_v56, %v5186_v29  ;;  %v2897_v42 = vsel %vm1395_vm4, %v7541_v59, %v5192_v35  ;;  %v8584_v56 = vld [vmem:[#allocation11_spill] sm:$0xff] }
 0x3b5   : > { %3487 = vmatmul.bf16.gmra.mxu2 %v2978_v8  ;;  %v8582_v8 = vld [vmem:[#allocation17_spill] sm:$0xff] }
 0x3b6   : > { %3541 = vmatmul.bf16.gmra.mxu0 %v2951_v20  ;;  %v7897_v20 = vpop.f32.mrf.mxu3 }
 0x3b7   : > { %v7874_v31 = vpop.f32.mrf.mxu2 }
 0x3bb   : > { %5284 = vrot.lane.b32.xlu0 %v5283_v36, %s5341_s27  ;;  %v5195_v36 = vpop.permute.xlu0 %5194 }
 0x3bc   : > { %v5196_v29 = vunpack.i.l.bf16 %v5195_v36 }
 0x3bd   : > { %3675 = vmatmul.bf16.gmra.mxu1 %v7565_v58  ;;  %v2913_v58 = vsel %vm1395_vm4, %v8582_v8, %v5187_v15  ;;  %v7905_v15 = vpop.f32.mrf.mxu1  ;;  %v5205_v8 = vpop.permute.xlu2 %5204 }
 0x3be   : > { %4345 = vmatmul.msk.bf16.gmra.mxu3 %vm1395_vm4, %v2953_v62  ;;  %v2955_v0 = vpack.c.bf16 %v2913_v58, %v2912_v53  ;;  %v2957_v62 = vpack.c.bf16 %v7593_v19, %v7590_v54  ;;  %v7901_v3 = vpop.f32.mrf.mxu3  ;;  %v2914_v54 = vsel %vm1395_vm4, %v8584_v56, %v5196_v29  ;;  %v8585_v19 = vld [vmem:[#allocation12_spill] sm:$0xff]  ;;  %v5207_v35 = vunpack.i.h.bf16 %v5205_v8 }
 0x3bf   : > { %v3473_v10 = vpop.f32.mrf.mxu2  ;;  %8583 = vst [vmem:[#allocation8_spill] sm:$0xff] %v7901_v3 }
 0x3c0   : > { %v7887_v28 = vadd.f32 %v3473_v10, %v3385_v1  ;;  %v5191_v1 = vunpack.i.l.bf16 %v5190_v17  ;;  %v5197_v10 = vunpack.i.h.bf16 %v5195_v36  ;;  %v5200_v17 = vpop.permute.xlu1 %5199 }
 0x3c1   : > { %v5202_v29 = vunpack.i.h.bf16 %v5200_v17  ;;  %v5201_v56 = vunpack.i.l.bf16 %v5200_v17 }
 0x3c2   : > { %v2896_v18 = vsel %vm1395_vm4, %v7538_v48, %v5191_v1  ;;  %v2915_v53 = vsel %vm1395_vm4, %v8585_v19, %v5197_v10  ;;  %v5206_v1 = vunpack.i.l.bf16 %v5205_v8  ;;  %v4450_v10 = vld [vmem:[%s8359_s5] sm:$0xff]  ;;  %v8588_v19 = vld [vmem:[#allocation21_spill] sm:$0xff] }
 0x3c3   : > { %v2986_v58 = vpack.c.bf16 %v2897_v42, %v2896_v18  ;;  %3934 = vmatpush.bf16.msra.mxu2 %v4450_v10  ;;  %v2898_v42 = vsel %vm1395_vm4, %v7836_v50, %v5201_v56 }
 0x3c5   : > { %3492 = vmatmul.bf16.gmra.mxu2 %v2982_v22  ;;  %v2959_v22 = vpack.c.bf16 %v2915_v53, %v2914_v54  ;;  %v5220_v36 = vpop.permute.xlu2 %5219 }
 0x3c6   : > { %3546 = vmatmul.bf16.gmra.mxu0 %v2955_v0  ;;  %v7917_v0 = vpop.f32.mrf.mxu1  ;;  %v5222_v5 = vunpack.i.h.bf16 %v5220_v36 }
 0x3c8   : > { %v5215_v17 = vpop.permute.xlu1 %5214 }
 0x3c9   : > { %v5217_v10 = vunpack.i.h.bf16 %v5215_v17 }
 0x3cd   : > { %3680 = vmatmul.bf16.gmra.mxu1 %v7618_v25  ;;  %v7915_v25 = vpop.f32.mrf.mxu3 }
 0x3ce   : > { %4346 = vmatmul.msk.bf16.gmra.mxu3 %vm1395_vm4, %v2957_v62  ;;  %v2961_v62 = vpack.c.bf16 %v7344_v51, %v7341_v43  ;;  %v2899_v43 = vsel %vm1395_vm4, %v7839_v13, %v5202_v29  ;;  %v8587_v51 = vld [vmem:[#allocation22_spill] sm:$0xff]  ;;  %v7936_v53 = vpop.f32.mrf.mxu1  ;;  %v2965_v29 = vpack.c.bf16 %v7637_v60, %v7634_v33  ;;  %v8590_v60 = vld [vmem:[#allocation16_spill] sm:$0xff] }
 0x3cf   : > { %v2916_v54 = vsel %vm1395_vm4, %v8587_v51, %v5206_v1  ;;  %v2990_v8 = vpack.c.bf16 %v2899_v43, %v2898_v42  ;;  %v5216_v1 = vunpack.i.l.bf16 %v5215_v17 }
 0x3d5   : > { %3497 = vmatmul.bf16.gmra.mxu2 %v2986_v58  ;;  %v7926_v18 = vpop.f32.mrf.mxu3 }
 0x3d6   : > { %3551 = vmatmul.bf16.gmra.mxu0 %v2959_v22  ;;  %8586 = vst [vmem:[#allocation18_spill] sm:$0xff] %v7926_v18  ;;  %v7938_v22 = vpop.permute.xlu2 %5234  ;;  %v7944_v51 = vpop.f32.mrf.mxu1 }
 0x3dd   : > { %3685 = vmatmul.bf16.gmra.mxu1 %v7758_v7  ;;  %v2917_v7 = vsel %vm1395_vm4, %v8588_v19, %v5207_v35  ;;  %v7940_v56 = vpop.f32.mrf.mxu3 }
 0x3de   : > { %4347 = vmatmul.msk.bf16.gmra.mxu3 %vm1395_vm4, %v2961_v62  ;;  %v2963_v58 = vpack.c.bf16 %v2917_v7, %v2916_v54  ;;  %v5210_v62 = vpop.permute.xlu0 %5209  ;;  %v7948_v42 = vpop.permute.xlu2 %5249  ;;  %v8589_v7 = vld [vmem:[#allocation15_spill] sm:$0xff] }
 0x3df   : > { %v5212_v35 = vunpack.i.h.bf16 %v5210_v62  ;;  %v5211_v19 = vunpack.i.l.bf16 %v5210_v62  ;;  %v2918_v33 = vsel %vm1395_vm4, %v8589_v7, %v5216_v1  ;;  %v7964_v18 = vpop.f32.mrf.mxu1 }
 0x3e1   : > { %v2900_v43 = vsel %vm1395_vm4, %v7688_v39, %v5211_v19  ;;  %v2901_v54 = vsel %vm1395_vm4, %v7691_v55, %v5212_v35  ;;  %v2969_v19 = vpack.c.bf16 %v7664_v47, %v7661_v57  ;;  %v5221_v35 = vunpack.i.l.bf16 %v5220_v36 }
 0x3e5   : > { %3502 = vmatmul.bf16.gmra.mxu2 %v2990_v8  ;;  %v2919_v8 = vsel %vm1395_vm4, %v8590_v60, %v5217_v10  ;;  %v7958_v62 = vpop.f32.mrf.mxu3 }
 0x3e6   : > { %3556 = vmatmul.bf16.gmra.mxu0 %v2963_v58  ;;  %v2994_v58 = vpack.c.bf16 %v2901_v54, %v2900_v43  ;;  %v2967_v17 = vpack.c.bf16 %v2919_v8, %v2918_v33  ;;  %8591 = vst [vmem:[#allocation17_spill] sm:$0xff] %v7958_v62  ;;  %v7969_v43 = vld [vmem:[#allocation3 + $0x198] sm:$0xff]  ;;  %v7971_v54 = vld [vmem:[#allocation3 + $0x1a0] sm:$0xff]  ;;  %v7973_v33 = vld [vmem:[#allocation3 + $0x1a8] sm:$0x3]  ;;  %v2902_v8 = vsel %vm1395_vm4, %v7582_v44, %v5221_v35 }
 0x3e7   : > { %8592 = vst [vmem:[#allocation11_spill] sm:$0xff] %v7973_v33  ;;  %v2530_v60 = vrot.slane %v7969_v43, 1  ;;  %v2531_v57 = vrot.slane %v7971_v54, 1  ;;  %v2533_v47 = vrot.slane %v7973_v33, 1 }
 0x3e9   : > { %v2532_v23 = vsel %vm535_vm2, %v2530_v60, %v2531_v57  ;;  %v2534_v52 = vsel %vm535_vm2, %v2531_v57, %v2533_v47  ;;  %v5230_v60 = vpop.permute.xlu1 %5229  ;;  %v3390_v47 = vadd.f32 %v7713_v40, %v7734_v9 }
 0x3ea   : > { %v5288_v33 = vpack.i.bf16 %v2534_v52, %v2532_v23  ;;  %v2973_v52 = vpack.c.bf16 %v7507_v49, %v7504_v41  ;;  %v5237_v23 = vunpack.i.h.bf16 %v7938_v22  ;;  %v8596_v49 = vld [vmem:[#allocation24_spill] sm:$0xff] }
 0x3ec   : > { %5289 = vrot.lane.b32.xlu1 %v5288_v33, %s5341_s27 }
 0x3ed   : > { %3690 = vmatmul.bf16.gmra.mxu1 %v7784_v34  ;;  %v7960_v34 = vpop.permute.xlu2 %5264  ;;  %v7967_v10 = vpop.f32.mrf.mxu3 }
 0x3ee   : > { %4348 = vmatmul.msk.bf16.gmra.mxu3 %vm1395_vm4, %v2965_v29  ;;  %v5225_v29 = vpop.permute.xlu0 %5224 }
 0x3ef   : > { %v5227_v1 = vunpack.i.h.bf16 %v5225_v29  ;;  %v5226_v7 = vunpack.i.l.bf16 %v5225_v29 }
 0x3f5   : > { %3507 = vmatmul.bf16.gmra.mxu2 %v2994_v58  ;;  %v2903_v58 = vsel %vm1395_vm4, %v7585_v46, %v5222_v5 }
 0x3f6   : > { %3561 = vmatmul.bf16.gmra.mxu0 %v2967_v17  ;;  %v8593_v17 = vld [vmem:[#allocation36_spill] sm:$0xff]  ;;  %v2998_v63 = vpack.c.bf16 %v2903_v58, %v2902_v8  ;;  %v5245_v58 = vpop.permute.xlu1 %5244 }
 0x3f7   : > { %v2920_v29 = vsel %vm1395_vm4, %v8593_v17, %v5226_v7  ;;  %v7995_v7 = vpop.f32.mrf.mxu3 }
 0x3fe   : > { %4349 = vmatmul.msk.bf16.gmra.mxu3 %vm1395_vm4, %v2969_v19  ;;  %v8594_v19 = vld [vmem:[#allocation35_spill] sm:$0xff] }
 0x3ff   : > { %v2921_v62 = vsel %vm1395_vm4, %v8594_v19, %v5227_v1  ;;  %v7993_v1 = vpop.f32.mrf.mxu1  ;;  %v2977_v19 = vpack.c.bf16 %v7670_v45, %v7667_v14  ;;  %v8598_v14 = vld [vmem:[#allocation25_spill] sm:$0xff] }
 0x400   : > { %v2971_v24 = vpack.c.bf16 %v2921_v62, %v2920_v29  ;;  %v8595_v62 = vld [vmem:[#allocation23_spill] sm:$0xff] }
 0x401   : > { %v5280_v36 = vpop.permute.xlu2 %5279 }
 0x402   : > { %v5282_v3 = vunpack.i.h.bf16 %v5280_v36  ;;  %v5281_v27 = vunpack.i.l.bf16 %v5280_v36 }
 0x404   : > { %v2940_v35 = vsel %vm1395_vm4, %v7790_v21, %v5281_v27  ;;  %v2941_v5 = vsel %vm1395_vm4, %v7794_v38, %v5282_v3  ;;  %v5236_v21 = vunpack.i.l.bf16 %v7938_v22  ;;  %v5232_v27 = vunpack.i.h.bf16 %v5230_v60  ;;  %v8002_v3 = vpop.f32.mrf.mxu2 }
 0x405   : > { %v3004_v26 = vpack.c.bf16 %v2941_v5, %v2940_v35  ;;  %3512 = vmatmul.bf16.gmra.mxu2 %v2998_v63  ;;  %v5231_v38 = vunpack.i.l.bf16 %v5230_v60  ;;  %v2923_v22 = vsel %vm1395_vm4, %v8596_v49, %v5237_v23  ;;  %v5247_v35 = vunpack.i.h.bf16 %v5245_v58 }
 0x406   : > { %3566 = vmatmul.bf16.gmra.mxu0 %v2971_v24  ;;  %v2922_v41 = vsel %vm1395_vm4, %v8595_v62, %v5236_v21  ;;  %v5246_v5 = vunpack.i.l.bf16 %v5245_v58  ;;  %v3395_v49 = vadd.f32 %v7713_v40, %v7748_v61  ;;  %v5252_v58 = vunpack.i.h.bf16 %v7948_v42 }
 0x407   : > { %3695 = vmatmul.bf16.gmra.mxu1 %v3004_v26  ;;  %v2904_v24 = vsel %vm1395_vm4, %v7856_v11, %v5231_v38  ;;  %v2905_v26 = vsel %vm1395_vm4, %v7859_v2, %v5232_v27  ;;  %v2975_v57 = vpack.c.bf16 %v2923_v22, %v2922_v41  ;;  %v8597_v38 = vld [vmem:[#allocation26_spill] sm:$0xff]  ;;  %v2925_v45 = vsel %vm1395_vm4, %v8598_v14, %v5247_v35  ;;  %v8599_v35 = vld [vmem:[#allocation29_spill] sm:$0xff] }
 0x408   : > { %v3002_v33 = vpack.c.bf16 %v2905_v26, %v2904_v24  ;;  %v2924_v24 = vsel %vm1395_vm4, %v8597_v38, %v5246_v5  ;;  %v3362_v61 = vadd.f32 %v7713_v40, %v8599_v35 }
 0x409   : > { %v2979_v41 = vpack.c.bf16 %v2925_v45, %v2924_v24 }
 0x40e   : > { %4350 = vmatmul.msk.bf16.gmra.mxu3 %vm1395_vm4, %v2973_v52 }
 0x410   : > { %v8004_v63 = vpop.f32.mrf.mxu3 }
 0x415   : > { %3517 = vmatmul.bf16.gmra.mxu2 %v3002_v33  ;;  %v5240_v17 = vpop.permute.xlu0 %5239 }
 0x416   : > { %3571 = vmatmul.bf16.gmra.mxu0 %v2975_v57  ;;  %v5242_v60 = vunpack.i.h.bf16 %v5240_v17  ;;  %v5241_v52 = vunpack.i.l.bf16 %v5240_v17  ;;  %v5251_v17 = vunpack.i.l.bf16 %v7948_v42 }
 0x418   : > { %v8016_v36 = vpop.f32.mrf.mxu3  ;;  %v3478_v8 = vpop.f32.mrf.mxu2  ;;  %v2906_v9 = vsel %vm1395_vm4, %v7705_v12, %v5241_v52  ;;  %v2907_v27 = vsel %vm1395_vm4, %v7708_v4, %v5242_v60  ;;  %v8600_v52 = vld [vmem:[#allocation32_spill] sm:$0xff] }
 0x419   : > { %v8018_v29 = vadd.f32 %v3478_v8, %v3390_v47  ;;  %v3006_v62 = vpack.c.bf16 %v2907_v27, %v2906_v9  ;;  %v2981_v8 = vpack.c.bf16 %v7541_v59, %v7538_v48  ;;  %v2926_v9 = vsel %vm1395_vm4, %v8600_v52, %v5251_v17  ;;  %v8601_v27 = vld [vmem:[#allocation31_spill] sm:$0xff] }
 0x41a   : > { %v2927_v48 = vsel %vm1395_vm4, %v8601_v27, %v5252_v58  ;;  %v3451_v59 = vadd.f32 %v7736_v30, %v3362_v61 }
 0x41b   : > { %v2983_v14 = vpack.c.bf16 %v2927_v48, %v2926_v9 }
 0x41d   : > { %v5255_v35 = vpop.permute.xlu0 %5254 }
 0x41e   : > { %4351 = vmatmul.msk.bf16.gmra.mxu3 %vm1395_vm4, %v2977_v19  ;;  %v8045_v19 = vpop.f32.mrf.mxu1  ;;  %v5257_v52 = vunpack.i.h.bf16 %v5255_v35  ;;  %v5256_v9 = vunpack.i.l.bf16 %v5255_v35 }
 0x420   : > { %v8025_v21 = vpop.f32.mrf.mxu2 }
 0x421   : > { %v8023_v23 = vpop.f32.mrf.mxu3 }
 0x423   : > { %v3537_v26 = vpop.f32.mrf.mxu0 }
 0x424   : > { %v3538_v42 = vadd.f32 %v3537_v26, %v7723_v37 }
 0x425   : > { %3522 = vmatmul.bf16.gmra.mxu2 %v3006_v62  ;;  %v8602_v62 = vld [vmem:[#allocation45_spill] sm:$0xff] }
 0x426   : > { %3576 = vmatmul.bf16.gmra.mxu0 %v2979_v41  ;;  %v3627_v45 = vadd.f32 %v7905_v15, %v3538_v42  ;;  %v3400_v41 = vadd.f32 %v7713_v40, %v8602_v62  ;;  %v2985_v15 = vpack.c.bf16 %v7839_v13, %v7836_v50  ;;  %v8604_v42 = vld [vmem:[#allocation19_spill] sm:$0xff]  ;;  %v8606_v50 = vld [vmem:[#allocation41_spill] sm:$0xff] }
 0x428   : > { %v3483_v33 = vpop.f32.mrf.mxu2 }
 0x429   : > { %v8037_v22 = vpop.f32.mrf.mxu3  ;;  %v8039_v57 = vadd.f32 %v3483_v33, %v3395_v49  ;;  %v8061_v49 = vpop.f32.mrf.mxu1 }
 0x42b   : > { %v3539_v47 = vpop.f32.mrf.mxu0 }
 0x42c   : > { %v3540_v24 = vadd.f32 %v3539_v47, %v3451_v59 }
 0x42e   : > { %4352 = vmatmul.msk.bf16.gmra.mxu3 %vm1395_vm4, %v2981_v8  ;;  %v3629_v8 = vadd.f32 %v7917_v0, %v3540_v24  ;;  %v2928_v24 = vsel %vm1395_vm4, %v8604_v42, %v5256_v9  ;;  %v5260_v9 = vpop.permute.xlu1 %5259 }
 0x430   : > { %v8050_v5 = vpop.f32.mrf.mxu2 }
 0x431   : > { %v3715_v60 = vpop.f32.mrf.mxu3  ;;  %v8079_v62 = vpop.f32.mrf.mxu1 }
 0x432   : > { %v3716_v33 = vadd.f32 %v3715_v60, %v3627_v45  ;;  %v8603_v60 = vld [vmem:[#allocation6_spill] sm:$0xff] }
 0x433   : > { %v3542_v38 = vpop.f32.mrf.mxu0  ;;  %v3367_v0 = vadd.f32 %v7713_v40, %v8603_v60 }
 0x434   : > { %v3795_v47 = vmax.f32 %v3716_v33, 0.0 }
 0x435   : > { %v3456_v13 = vadd.f32 %v8606_v50, %v3367_v0 }
 0x436   : > { %3581 = vmatmul.bf16.gmra.mxu0 %v2983_v14  ;;  %v8605_v14 = vld [vmem:[#allocation20_spill] sm:$0xff] }
 0x437   : > { %v2929_v45 = vsel %vm1395_vm4, %v8605_v14, %v5257_v52  ;;  %v5261_v14 = vunpack.i.l.bf16 %v5260_v9 }
 0x438   : > { %v3488_v17 = vpop.f32.mrf.mxu2 }
 0x439   : > { %v3717_v58 = vpop.f32.mrf.mxu3  ;;  %v8064_v30 = vadd.f32 %v3488_v17, %v3400_v41  ;;  %v8607_v41 = vld [vmem:[#allocation38_spill] sm:$0xff] }
 0x43a   : > { %v3718_v37 = vadd.f32 %v3717_v58, %v3629_v8  ;;  %v3543_v33 = vadd.f32 %v3542_v38, %v8607_v41  ;;  %v2987_v58 = vpack.c.bf16 %v2929_v45, %v2928_v24  ;;  %v8088_v38 = vpop.f32.mrf.mxu1  ;;  %v5262_v24 = vunpack.i.h.bf16 %v5260_v9 }
 0x43b   : > { %v3544_v26 = vpop.f32.mrf.mxu0  ;;  %v3410_v9 = vadd.f32 %v7713_v40, %v7897_v20  ;;  %v8613_v20 = vld [vmem:[#allocation14_spill] sm:$0xff] }
 0x43c   : > { %v3796_v61 = vmax.f32 %v3718_v37, 0.0  ;;  %v3545_v17 = vadd.f32 %v3544_v26, %v3456_v13  ;;  %v3632_v35 = vadd.f32 %v7936_v53, %v3543_v33  ;;  %v3405_v37 = vadd.f32 %v7713_v40, %v7853_v6  ;;  %v8609_v13 = vld [vmem:[#allocation27_spill] sm:$0xff]  ;;  %v8610_v33 = vld [vmem:[#allocation28_spill] sm:$0xff] }
 0x43d   : > { %v2989_v53 = vpack.c.bf16 %v7691_v55, %v7688_v39  ;;  %v2930_v41 = vsel %vm1395_vm4, %v8609_v13, %v5261_v14  ;;  %v8611_v39 = vld [vmem:[#allocation44_spill] sm:$0xff] }
 0x43e   : > { %v3827_v27 = vpack.c.bf16 %v3796_v61, %v3795_v47  ;;  %4353 = vmatmul.msk.bf16.gmra.mxu3 %vm1395_vm4, %v2985_v15  ;;  %v3634_v61 = vadd.f32 %v7944_v51, %v3545_v17  ;;  %v8608_v51 = vld [vmem:[#allocation10_spill] sm:$0xff]  ;;  %v2931_v17 = vsel %vm1395_vm4, %v8610_v33, %v5262_v24 }
 0x440   : > { %4376 = vmatmul.msk.bf16.vlgmr.msra.gmra.mxu2 %vm1395_vm4, %v3827_v27  ;;  %v8072_v48 = vpop.f32.mrf.mxu2 }
 0x441   : > { %v3720_v59 = vpop.f32.mrf.mxu3 }
 0x442   : > { %v3721_v47 = vadd.f32 %v3720_v59, %v3632_v35  ;;  %v3372_v59 = vadd.f32 %v7713_v40, %v8608_v51  ;;  %v2993_v51 = vpack.c.bf16 %v7585_v46, %v7582_v44  ;;  %v8615_v46 = vld [vmem:[#allocation34_spill] sm:$0xff] }
 0x443   : > { %v3547_v8 = vpop.f32.mrf.mxu0 }
 0x444   : > { %v3797_v26 = vmax.f32 %v3721_v47, 0.0  ;;  %v3461_v55 = vadd.f32 %v8611_v39, %v3372_v59  ;;  %v5266_v59 = vunpack.i.l.bf16 %v7960_v34 }
 0x446   : > { %3586 = vmatmul.bf16.gmra.mxu0 %v2987_v58  ;;  %v8612_v58 = vld [vmem:[#allocation40_spill] sm:$0xff] }
 0x447   : > { %v3548_v35 = vadd.f32 %v3547_v8, %v8612_v58 }
 0x448   : > { %v3493_v15 = vpop.f32.mrf.mxu2 }
 0x449   : > { %v3722_v52 = vpop.f32.mrf.mxu3  ;;  %v8086_v27 = vadd.f32 %v3493_v15, %v3405_v37  ;;  %v8104_v15 = vpop.f32.mrf.mxu1 }
 0x44a   : > { %v3723_v60 = vadd.f32 %v3722_v52, %v3634_v61  ;;  %v2991_v61 = vpack.c.bf16 %v2931_v17, %v2930_v41  ;;  %v3637_v52 = vadd.f32 %v7964_v18, %v3548_v35  ;;  %v5267_v18 = vunpack.i.h.bf16 %v7960_v34  ;;  %v8614_v17 = vld [vmem:[#allocation33_spill] sm:$0xff] }
 0x44b   : > { %v3549_v0 = vpop.f32.mrf.mxu0  ;;  %v2932_v44 = vsel %vm1395_vm4, %v8614_v17, %v5266_v59  ;;  %v8618_v17 = vld [vmem:[#allocation30_spill] sm:$0xff] }
 0x44c   : > { %v3798_v42 = vmax.f32 %v3723_v60, 0.0  ;;  %v3550_v47 = vadd.f32 %v3549_v0, %v3461_v55  ;;  %v2933_v39 = vsel %vm1395_vm4, %v8615_v46, %v5267_v18  ;;  %v8616_v55 = vld [vmem:[#allocation46_spill] sm:$0xff]  ;;  %v8619_v46 = vld [vmem:[#allocation37_spill] sm:$0xff] }
 0x44e   : > { %v3828_v6 = vpack.c.bf16 %v3798_v42, %v3797_v26  ;;  %4354 = vmatmul.msk.bf16.gmra.mxu3 %vm1395_vm4, %v2989_v53  ;;  %v3639_v26 = vadd.f32 %v7993_v1, %v3550_v47  ;;  %v3377_v1 = vadd.f32 %v7713_v40, %v8613_v20 }
 0x450   : > { %4377 = vmatmul.msk.bf16.gmra.mxu2 %vm1395_vm4, %v3828_v6  ;;  %v8096_v45 = vpop.f32.mrf.mxu2  ;;  %v3466_v34 = vadd.f32 %v7833_v16, %v3377_v1 }
 0x451   : > { %v3725_v50 = vpop.f32.mrf.mxu3 }
 0x452   : > { %v3726_v60 = vadd.f32 %v3725_v50, %v3637_v52  ;;  %v8119_v50 = vpop.f32.mrf.mxu1 }
 0x453   : > { %v3552_v37 = vpop.f32.mrf.mxu0 }
 0x454   : > { %v3799_v6 = vmax.f32 %v3726_v60, 0.0  ;;  %v3553_v58 = vadd.f32 %v3552_v37, %v8616_v55 }
 0x456   : > { %3591 = vmatmul.bf16.gmra.mxu0 %v2991_v61  ;;  %v2995_v61 = vpack.c.bf16 %v2933_v39, %v2932_v44  ;;  %v3642_v52 = vadd.f32 %v8045_v19, %v3553_v58  ;;  %v2997_v19 = vpack.c.bf16 %v7859_v2, %v7856_v11 }
 0x458   : > { %v3498_v42 = vpop.f32.mrf.mxu2 }
 0x459   : > { %v3727_v53 = vpop.f32.mrf.mxu3  ;;  %v8110_v24 = vadd.f32 %v3498_v42, %v3410_v9  ;;  %v3415_v9 = vadd.f32 %v7713_v40, %v7915_v25 }
 0x45a   : > { %v3728_v14 = vadd.f32 %v3727_v53, %v3639_v26 }
 0x45b   : > { %v3554_v8 = vpop.f32.mrf.mxu0 }
 0x45c   : > { %v3800_v0 = vmax.f32 %v3728_v14, 0.0  ;;  %v3555_v47 = vadd.f32 %v3554_v8, %v3466_v34  ;;  %v8134_v14 = vpop.f32.mrf.mxu1 }
 0x45e   : > { %v3829_v13 = vpack.c.bf16 %v3800_v0, %v3799_v6  ;;  %4355 = vmatmul.msk.bf16.gmra.mxu3 %vm1395_vm4, %v2993_v51  ;;  %v3644_v26 = vadd.f32 %v8061_v49, %v3555_v47  ;;  %v5270_v6 = vpop.permute.xlu0 %5269  ;;  %v5275_v49 = vpop.permute.xlu1 %5274 }
 0x45f   : > { %v5272_v18 = vunpack.i.h.bf16 %v5270_v6  ;;  %v5271_v59 = vunpack.i.l.bf16 %v5270_v6 }
 0x460   : > { %4378 = vmatmul.msk.bf16.gmra.mxu2 %vm1395_vm4, %v3829_v13  ;;  %v8122_v41 = vpop.f32.mrf.mxu2  ;;  %v8617_v13 = vld [vmem:[#allocation4_spill] sm:$0xff] }
 0x461   : > { %v3730_v33 = vpop.f32.mrf.mxu3  ;;  %v3382_v20 = vadd.f32 %v7713_v40, %v8617_v13  ;;  %v2934_v44 = vsel %vm1395_vm4, %v8618_v17, %v5271_v59  ;;  %v2935_v11 = vsel %vm1395_vm4, %v8619_v46, %v5272_v18  ;;  %v5276_v18 = vunpack.i.l.bf16 %v5275_v49  ;;  %v8620_v13 = vld [vmem:[#allocation42_spill] sm:$0xff] }
 0x462   : > { %v3731_v60 = vadd.f32 %v3730_v33, %v3642_v52  ;;  %v2999_v47 = vpack.c.bf16 %v2935_v11, %v2934_v44  ;;  %v3420_v52 = vadd.f32 %v7713_v40, %v7940_v56  ;;  %v8621_v44 = vld [vmem:[#allocation5_spill] sm:$0xff] }
 0x463   : > { %v3557_v35 = vpop.f32.mrf.mxu0  ;;  %v3471_v2 = vadd.f32 %v7874_v31, %v3382_v20  ;;  %v3387_v20 = vadd.f32 %v7713_v40, %v8620_v13  ;;  %v2936_v46 = vsel %vm1395_vm4, %v8621_v44, %v5276_v18  ;;  %v8628_v18 = vld [vmem:[#allocation47_spill] sm:$0xff] }
 0x464   : > { %v3801_v8 = vmax.f32 %v3731_v60, 0.0  ;;  %v3558_v39 = vadd.f32 %v3557_v35, %v7861_v32  ;;  %v8152_v55 = vpop.f32.mrf.mxu1  ;;  %v8629_v44 = vld [vmem:[#allocation11_spill] sm:$0xff] }
 0x466   : > { %3596 = vmatmul.bf16.gmra.mxu0 %v2995_v61  ;;  %v3647_v61 = vadd.f32 %v8079_v62, %v3558_v39 }
 0x468   : > { %v3503_v42 = vpop.f32.mrf.mxu2 }
 0x469   : > { %v3732_v53 = vpop.f32.mrf.mxu3  ;;  %v8136_v16 = vadd.f32 %v3503_v42, %v3415_v9  ;;  %v5290_v9 = vpop.permute.xlu1 %5289 }
 0x46a   : > { %v3733_v37 = vadd.f32 %v3732_v53, %v3644_v26  ;;  %v5292_v42 = vunpack.i.h.bf16 %v5290_v9  ;;  %v5291_v53 = vunpack.i.l.bf16 %v5290_v9 }
 0x46b   : > { %v3559_v0 = vpop.f32.mrf.mxu0 }
 0x46c   : > { %v3802_v51 = vmax.f32 %v3733_v37, 0.0  ;;  %v3560_v58 = vadd.f32 %v3559_v0, %v3471_v2  ;;  %v2942_v37 = vsel %vm1395_vm4, %v7969_v43, %v5291_v53  ;;  %v2943_v62 = vsel %vm1395_vm4, %v7971_v54, %v5292_v42  ;;  %v8166_v59 = vpop.f32.mrf.mxu1  ;;  %v5285_v53 = vpop.permute.xlu0 %5284 }
 0x46e   : > { %v3830_v25 = vpack.c.bf16 %v3802_v51, %v3801_v8  ;;  %4356 = vmatmul.msk.bf16.gmra.mxu3 %vm1395_vm4, %v2997_v19  ;;  %v3649_v26 = vadd.f32 %v8088_v38, %v3560_v58  ;;  %v3008_v8 = vpack.c.bf16 %v2943_v62, %v2942_v37  ;;  %v3001_v38 = vpack.c.bf16 %v7708_v4, %v7705_v12  ;;  %v8622_v12 = vld [vmem:[#allocation9_spill] sm:$0xff]  ;;  %v8623_v62 = vld [vmem:[#allocation50_spill] sm:$0xff] }
 0x46f   : > { %v5277_v19 = vunpack.i.h.bf16 %v5275_v49  ;;  %v3476_v49 = vadd.f32 %v8002_v3, %v3387_v20 }
 0x470   : > { %4379 = vmatmul.msk.bf16.gmra.mxu2 %vm1395_vm4, %v3830_v25  ;;  %v8144_v1 = vpop.f32.mrf.mxu2  ;;  %3700 = vmatmul.bf16.gmra.mxu1 %v3008_v8  ;;  %v8626_v8 = vld [vmem:[#allocation39_spill] sm:$0xff] }
 0x471   : > { %v3735_v33 = vpop.f32.mrf.mxu3  ;;  %v2937_v4 = vsel %vm1395_vm4, %v8622_v12, %v5277_v19 }
 0x472   : > { %v3736_v60 = vadd.f32 %v3735_v33, %v3647_v61  ;;  %v3003_v58 = vpack.c.bf16 %v2937_v4, %v2936_v46  ;;  %v3425_v61 = vadd.f32 %v7713_v40, %v7967_v10  ;;  %v2538_v46 = vrot.slane %v8629_v44, 2 }
 0x473   : > { %v3562_v34 = vpop.f32.mrf.mxu0  ;;  %v2536_v4 = vrot.slane %v7971_v54, 2 }
 0x474   : > { %v3803_v56 = vmax.f32 %v3736_v60, 0.0  ;;  %v3563_v11 = vadd.f32 %v3562_v34, %v7887_v28 }
 0x476   : > { %3601 = vmatmul.bf16.gmra.mxu0 %v2999_v47  ;;  %v3652_v47 = vadd.f32 %v8104_v15, %v3563_v11  ;;  %v5286_v15 = vunpack.i.l.bf16 %v5285_v53 }
 0x478   : > { %v3508_v31 = vpop.f32.mrf.mxu2 }
 0x479   : > { %v3737_v6 = vpop.f32.mrf.mxu3  ;;  %v8158_v32 = vadd.f32 %v3508_v31, %v3420_v52  ;;  %v8183_v52 = vpop.f32.mrf.mxu1 }
 0x47a   : > { %v3738_v35 = vadd.f32 %v3737_v6, %v3649_v26 }
 0x47b   : > { %v3564_v0 = vpop.f32.mrf.mxu0 }
 0x47c   : > { %v3804_v51 = vmax.f32 %v3738_v35, 0.0  ;;  %v3565_v39 = vadd.f32 %v3564_v0, %v3476_v49  ;;  %v5287_v35 = vunpack.i.h.bf16 %v5285_v53  ;;  %v8624_v0 = vld [vmem:[#allocation49_spill] sm:$0xff] }
 0x47d   : > { %v8625_v10 = vpack.c.bf16 %v8623_v62, %v8624_v0 }
 0x47e   : > { %v3831_v25 = vpack.c.bf16 %v3804_v51, %v3803_v56  ;;  %4357 = vmatmul.msk.bf16.gmra.mxu3 %vm1395_vm4, %v3001_v38  ;;  %v3654_v60 = vadd.f32 %v8119_v50, %v3565_v39  ;;  %v3392_v50 = vadd.f32 %v7713_v40, %v8626_v8  ;;  %v8627_v38 = vld [vmem:[#allocation13_spill] sm:$0xff]  ;;  %v2535_v40 = vrot.slane %v7969_v43, 2 }
 0x47f   : > { %v2938_v19 = vsel %vm1395_vm4, %v8627_v38, %v5286_v15 }
 0x480   : > { %4380 = vmatmul.msk.bf16.gmra.mxu2 %vm1395_vm4, %v3831_v25  ;;  %v8172_v33 = vpop.f32.mrf.mxu2  ;;  %v2939_v25 = vsel %vm1395_vm4, %v8628_v18, %v5287_v35  ;;  %v3481_v20 = vadd.f32 %v8025_v21, %v3392_v50 }
 0x481   : > { %v3740_v17 = vpop.f32.mrf.mxu3  ;;  %v3666_v13 = vpop.f32.mrf.mxu1  ;;  %v3007_v11 = vpack.c.bf16 %v2939_v25, %v2938_v19 }
 0x482   : > { %v3741_v9 = vadd.f32 %v3740_v17, %v3652_v47  ;;  %v2539_v47 = vsel %vm616_vm3, %v2536_v4, %v2538_v46  ;;  %v8631_v46 = vld [vmem:[#allocation48_spill] sm:$0xff] }
 0x483   : > { %v3567_v2 = vpop.f32.mrf.mxu0 }
 0x484   : > { %v3805_v31 = vmax.f32 %v3741_v9, 0.0  ;;  %v3568_v17 = vadd.f32 %v3567_v2, %v8018_v29  ;;  %v8212_v29 = vld [vmem:[%s8358_s4] ss:$0 sm:$0xff] }
 0x485   : > { %v3430_v21 = vadd.f32 %v8212_v29, %v8004_v63  ;;  %v3432_v63 = vadd.f32 %v8212_v29, %v8016_v36 }
 0x486   : > { %3606 = vmatmul.bf16.gmra.mxu0 %v3003_v58  ;;  %v3657_v39 = vadd.f32 %v8134_v14, %v3568_v17  ;;  %v2537_v58 = vsel %vm616_vm3, %v2535_v40, %v2536_v4 }
 0x488   : > { %v3513_v26 = vpop.f32.mrf.mxu2 }
 0x489   : > { %v3742_v42 = vpop.f32.mrf.mxu3  ;;  %v8186_v3 = vadd.f32 %v3513_v26, %v3425_v61 }
 0x48a   : > { %v3743_v28 = vadd.f32 %v3742_v42, %v3654_v60  ;;  %v3009_v60 = vpack.c.bf16 %v2539_v47, %v2537_v58  ;;  %v3668_v42 = vpop.f32.mrf.mxu1 }
 0x48b   : > { %v3569_v34 = vpop.f32.mrf.mxu0 }
 0x48c   : > { %v3806_v6 = vmax.f32 %v3743_v28, 0.0  ;;  %v3570_v49 = vadd.f32 %v3569_v34, %v3481_v20 }
 0x48e   : > { %v3832_v37 = vpack.c.bf16 %v3806_v6, %v3805_v31  ;;  %4358 = vmatmul.msk.bf16.gmra.mxu3 %vm1395_vm4, %v8625_v10  ;;  %v3659_v54 = vadd.f32 %v8152_v55, %v3570_v49  ;;  %v8630_v31 = vld [vmem:[#allocation43_spill] sm:$0xff] }
 0x48f   : > { %v3397_v6 = vadd.f32 %v8212_v29, %v8630_v31 }
 0x490   : > { %4381 = vmatmul.msk.bf16.gmra.mxu2 %vm1395_vm4, %v3832_v37  ;;  %v8195_v56 = vpop.f32.mrf.mxu2 }
 0x491   : > { %v3745_v51 = vpop.f32.mrf.mxu3  ;;  %v3486_v15 = vadd.f32 %v8050_v5, %v3397_v6 }
 0x492   : > { %v3746_v43 = vadd.f32 %v3745_v51, %v3657_v39  ;;  %v3671_v8 = vpop.f32.mrf.mxu1  ;;  %v3435_v51 = vadd.f32 %v8212_v29, %v8023_v23 }
 0x493   : > { %v3572_v12 = vpop.f32.mrf.mxu0 }
 0x494   : > { %v3807_v53 = vmax.f32 %v3746_v43, 0.0  ;;  %v3573_v37 = vadd.f32 %v3572_v12, %v8039_v57  ;;  %v3402_v12 = vadd.f32 %v8212_v29, %v8631_v46 }
 0x496   : > { %3611 = vmatmul.bf16.gmra.mxu0 %v3007_v11  ;;  %v3662_v50 = vadd.f32 %v8166_v59, %v3573_v37  ;;  %v3437_v59 = vadd.f32 %v8212_v29, %v8037_v22  ;;  %v3491_v4 = vadd.f32 %v8072_v48, %v3402_v12 }
 0x498   : > { %v3518_v2 = vpop.f32.mrf.mxu2 }
 0x499   : > { %v3747_v61 = vpop.f32.mrf.mxu3  ;;  %v8217_v9 = vadd.f32 %v3518_v2, %v3430_v21 }
 0x49a   : > { %v3748_v14 = vadd.f32 %v3747_v61, %v3659_v54  ;;  %v3673_v40 = vpop.f32.mrf.mxu1 }
 0x49b   : > { %v3574_v26 = vpop.f32.mrf.mxu0 }
 0x49c   : > { %v3808_v28 = vmax.f32 %v3748_v14, 0.0  ;;  %v3575_v10 = vadd.f32 %v3574_v26, %v3486_v15 }
 0x49e   : > { %v3833_v34 = vpack.c.bf16 %v3808_v28, %v3807_v53  ;;  %4359 = vmatmul.msk.bf16.gmra.mxu3 %vm1395_vm4, %v3009_v60  ;;  %v3664_v36 = vadd.f32 %v8183_v52, %v3575_v10  ;;  %v8632_v53 = vld [vmem:[#allocation7_spill] sm:$0xff] }
 0x49f   : > { %v3407_v48 = vadd.f32 %v8212_v29, %v8632_v53 }
 0x4a0   : > { %4382 = vmatmul.msk.bf16.gmra.mxu2 %vm1395_vm4, %v3833_v34  ;;  %v3520_v55 = vpop.f32.mrf.mxu2 }
 0x4a1   : > { %v3750_v35 = vpop.f32.mrf.mxu3  ;;  %v8227_v62 = vadd.f32 %v3520_v55, %v3432_v63 }
 0x4a2   : > { %v3751_v38 = vadd.f32 %v3750_v35, %v3662_v50  ;;  %v3676_v2 = vpop.f32.mrf.mxu1 }
 0x4a3   : > { %v3577_v0 = vpop.f32.mrf.mxu0 }
 0x4a4   : > { %v3809_v57 = vmax.f32 %v3751_v38, 0.0  ;;  %v3578_v49 = vadd.f32 %v3577_v0, %v8064_v30  ;;  %v8251_v30 = vld [vmem:[%s8360_s6] ss:$0 sm:$0xff] }
 0x4a6   : > { %v3667_v47 = vadd.f32 %v3666_v13, %v3578_v49 }
 0x4a8   : > { %v3523_v19 = vpop.f32.mrf.mxu2 }
 0x4a9   : > { %v3752_v18 = vpop.f32.mrf.mxu3  ;;  %v8233_v25 = vadd.f32 %v3523_v19, %v3435_v51 }
 0x4aa   : > { %v3753_v5 = vadd.f32 %v3752_v18, %v3664_v36  ;;  %v3678_v6 = vpop.f32.mrf.mxu1  ;;  %v8633_v18 = vld [vmem:[#allocation8_spill] sm:$0xff] }
 0x4ab   : > { %v3579_v20 = vpop.f32.mrf.mxu0 }
 0x4ac   : > { %v3810_v17 = vmax.f32 %v3753_v5, 0.0  ;;  %v3580_v58 = vadd.f32 %v3579_v20, %v3491_v4  ;;  %v3412_v5 = vadd.f32 %v8212_v29, %v8633_v18 }
 0x4ae   : > { %v3834_v44 = vpack.c.bf16 %v3810_v17, %v3809_v57  ;;  %v3669_v43 = vadd.f32 %v3668_v42, %v3580_v58  ;;  %v3496_v42 = vadd.f32 %v8096_v45, %v3407_v48  ;;  %v3501_v20 = vadd.f32 %v8122_v41, %v3412_v5 }
 0x4b0   : > { %4383 = vmatmul.msk.bf16.gmra.mxu2 %vm1395_vm4, %v3834_v44  ;;  %v3525_v23 = vpop.f32.mrf.mxu2 }
 0x4b1   : > { %v3755_v52 = vpop.f32.mrf.mxu3  ;;  %v8242_v11 = vadd.f32 %v3525_v23, %v3437_v59 }
 0x4b2   : > { %v3756_v21 = vadd.f32 %v3755_v52, %v3667_v47  ;;  %v3681_v36 = vpop.f32.mrf.mxu1 }
 0x4b3   : > { %v3582_v39 = vpop.f32.mrf.mxu0 }
 0x4b4   : > { %v3811_v14 = vmax.f32 %v3756_v21, 0.0  ;;  %v3583_v28 = vadd.f32 %v3582_v39, %v8086_v27 }
 0x4b6   : > { %v3672_v35 = vadd.f32 %v3671_v8, %v3583_v28 }
 0x4b9   : > { %v3757_v54 = vpop.f32.mrf.mxu3 }
 0x4ba   : > { %v3758_v22 = vadd.f32 %v3757_v54, %v3669_v43  ;;  %v8634_v43 = vld [vmem:[#allocation18_spill] sm:$0xff] }
 0x4bb   : > { %v3584_v61 = vpop.f32.mrf.mxu0  ;;  %v3417_v54 = vadd.f32 %v8212_v29, %v8634_v43 }
 0x4bc   : > { %v3812_v60 = vmax.f32 %v3758_v22, 0.0  ;;  %v3585_v63 = vadd.f32 %v3584_v61, %v3496_v42 }
 0x4bd   : > { %v3506_v61 = vadd.f32 %v8144_v1, %v3417_v54 }
 0x4be   : > { %v3835_v26 = vpack.c.bf16 %v3812_v60, %v3811_v14  ;;  %v3674_v37 = vadd.f32 %v3673_v40, %v3585_v63  ;;  %v3683_v40 = vpop.f32.mrf.mxu1 }
 0x4c0   : > { %4384 = vmatmul.msk.bf16.gmra.mxu2 %vm1395_vm4, %v3835_v26 }
 0x4c1   : > { %v3760_v13 = vpop.f32.mrf.mxu3 }
 0x4c2   : > { %v3761_v15 = vadd.f32 %v3760_v13, %v3672_v35 }
 0x4c3   : > { %v3587_v34 = vpop.f32.mrf.mxu0  ;;  %v3936_v31 = vpop.f32.mrf.mxu2 }
 0x4c4   : > { %v3937_v55 = vadd.f32 %v8251_v30, %v3936_v31  ;;  %v3813_v50 = vmax.f32 %v3761_v15, 0.0  ;;  %v3588_v57 = vadd.f32 %v3587_v34, %v8110_v24 }
 0x4c6   : > { %4016 = vst [vmem:[%s8258_s23] sm:$0xff] %v3937_v55  ;;  %v3677_v59 = vadd.f32 %v3676_v2, %v3588_v57  ;;  %v3686_v22 = vpop.f32.mrf.mxu1 }
 0x4c9   : > { %v3762_v45 = vpop.f32.mrf.mxu3 }
 0x4ca   : > { %v3763_v0 = vadd.f32 %v3762_v45, %v3674_v37  ;;  %v8635_v37 = vld [vmem:[#allocation17_spill] sm:$0xff] }
 0x4cb   : > { %v3589_v27 = vpop.f32.mrf.mxu0  ;;  %v3938_v10 = vpop.f32.mrf.mxu2  ;;  %v3422_v45 = vadd.f32 %v8212_v29, %v8635_v37 }
 0x4cc   : > { %v3814_v51 = vmax.f32 %v3763_v0, 0.0  ;;  %v3939_v38 = vadd.f32 %v8251_v30, %v3938_v10  ;;  %v3590_v46 = vadd.f32 %v3589_v27, %v3501_v20 }
 0x4cd   : > { %v3511_v27 = vadd.f32 %v8172_v33, %v3422_v45 }
 0x4ce   : > { %v3836_v19 = vpack.c.bf16 %v3814_v51, %v3813_v50  ;;  %4017 = vst [vmem:[%s8258_s23 + $0x8] sm:$0xff] %v3939_v38  ;;  %v3679_v52 = vadd.f32 %v3678_v6, %v3590_v46 }
 0x4d0   : > { %4385 = vmatmul.msk.bf16.gmra.mxu2 %vm1395_vm4, %v3836_v19 }
 0x4d1   : > { %v3765_v8 = vpop.f32.mrf.mxu3 }
 0x4d2   : > { %v3766_v23 = vadd.f32 %v3765_v8, %v3677_v59  ;;  %v3427_v59 = vadd.f32 %v8212_v29, %v7995_v7 }
 0x4d3   : > { %v3592_v17 = vpop.f32.mrf.mxu0  ;;  %v3941_v44 = vpop.f32.mrf.mxu2 }
 0x4d4   : > { %v3942_v12 = vadd.f32 %v8251_v30, %v3941_v44  ;;  %v3815_v47 = vmax.f32 %v3766_v23, 0.0  ;;  %v3593_v14 = vadd.f32 %v3592_v17, %v8136_v16  ;;  %v3688_v16 = vpop.f32.mrf.mxu1 }
 0x4d6   : > { %4018 = vst [vmem:[%s8258_s23 + $0x10] sm:$0xff] %v3942_v12  ;;  %v3682_v13 = vadd.f32 %v3681_v36, %v3593_v14 }
 0x4d9   : > { %v3767_v4 = vpop.f32.mrf.mxu3 }
 0x4da   : > { %v3768_v49 = vadd.f32 %v3767_v4, %v3679_v52  ;;  %v3516_v52 = vadd.f32 %v8195_v56, %v3427_v59 }
 0x4db   : > { %v3594_v39 = vpop.f32.mrf.mxu0  ;;  %v3943_v58 = vpop.f32.mrf.mxu2 }
 0x4dc   : > { %v3816_v41 = vmax.f32 %v3768_v49, 0.0  ;;  %v3944_v24 = vadd.f32 %v8251_v30, %v3943_v58  ;;  %v3595_v53 = vadd.f32 %v3594_v39, %v3506_v61  ;;  %v3691_v18 = vpop.f32.mrf.mxu1 }
 0x4de   : > { %v3837_v21 = vpack.c.bf16 %v3816_v41, %v3815_v47  ;;  %4019 = vst [vmem:[%s8258_s23 + $0x18] sm:$0xff] %v3944_v24  ;;  %v3684_v28 = vadd.f32 %v3683_v40, %v3595_v53 }
 0x4e0   : > { %4386 = vmatmul.msk.bf16.gmra.mxu2 %vm1395_vm4, %v3837_v21 }
 0x4e1   : > { %v3770_v2 = vpop.f32.mrf.mxu3 }
 0x4e2   : > { %v3771_v42 = vadd.f32 %v3770_v2, %v3682_v13 }
 0x4e3   : > { %v3597_v60 = vpop.f32.mrf.mxu0  ;;  %v3946_v26 = vpop.f32.mrf.mxu2 }
 0x4e4   : > { %v3947_v48 = vadd.f32 %v8251_v30, %v3946_v26  ;;  %v3817_v55 = vmax.f32 %v3771_v42, 0.0  ;;  %v3598_v10 = vadd.f32 %v3597_v60, %v8158_v32  ;;  %v3693_v40 = vpop.f32.mrf.mxu1 }
 0x4e6   : > { %4020 = vst [vmem:[%s8258_s23 + $0x20] sm:$0xff] %v3947_v48  ;;  %v3687_v19 = vadd.f32 %v3686_v22, %v3598_v10 }
 0x4e9   : > { %v3772_v34 = vpop.f32.mrf.mxu3 }
 0x4ea   : > { %v3773_v31 = vadd.f32 %v3772_v34, %v3684_v28 }
 0x4eb   : > { %v3599_v6 = vpop.f32.mrf.mxu0  ;;  %v3948_v63 = vpop.f32.mrf.mxu2 }
 0x4ec   : > { %v3818_v35 = vmax.f32 %v3773_v31, 0.0  ;;  %v3949_v1 = vadd.f32 %v8251_v30, %v3948_v63  ;;  %v3600_v38 = vadd.f32 %v3599_v6, %v3511_v27  ;;  %v3696_v43 = vpop.f32.mrf.mxu1 }
 0x4ee   : > { %v3838_v15 = vpack.c.bf16 %v3818_v35, %v3817_v55  ;;  %4021 = vst [vmem:[%s8258_s23 + $0x28] sm:$0xff] %v3949_v1  ;;  %v3689_v8 = vadd.f32 %v3688_v16, %v3600_v38 }
 0x4f0   : > { %4387 = vmatmul.msk.bf16.gmra.mxu2 %vm1395_vm4, %v3838_v15 }
 0x4f1   : > { %v3775_v0 = vpop.f32.mrf.mxu3 }
 0x4f2   : > { %v3776_v5 = vadd.f32 %v3775_v0, %v3687_v19 }
 0x4f3   : > { %v3602_v50 = vpop.f32.mrf.mxu0  ;;  %v3951_v51 = vpop.f32.mrf.mxu2 }
 0x4f4   : > { %v3952_v36 = vadd.f32 %v8251_v30, %v3951_v51  ;;  %v3819_v46 = vmax.f32 %v3776_v5, 0.0  ;;  %v3603_v4 = vadd.f32 %v3602_v50, %v8186_v3  ;;  %v3698_v26 = vpop.f32.mrf.mxu1 }
 0x4f6   : > { %4022 = vst [vmem:[%s8258_s23 + $0x30] sm:$0xff] %v3952_v36  ;;  %v3692_v41 = vadd.f32 %v3691_v18, %v3603_v4 }
 0x4f9   : > { %v3777_v20 = vpop.f32.mrf.mxu3 }
 0x4fa   : > { %v3778_v57 = vadd.f32 %v3777_v20, %v3689_v8 }
 0x4fb   : > { %v3604_v17 = vpop.f32.mrf.mxu0  ;;  %v3953_v44 = vpop.f32.mrf.mxu2 }
 0x4fc   : > { %v3820_v33 = vmax.f32 %v3778_v57, 0.0  ;;  %v3954_v32 = vadd.f32 %v8251_v30, %v3953_v44  ;;  %v3605_v58 = vadd.f32 %v3604_v17, %v3516_v52  ;;  %v3701_v55 = vpop.f32.mrf.mxu1 }
 0x4fe   : > { %v3839_v12 = vpack.c.bf16 %v3820_v33, %v3819_v46  ;;  %4023 = vst [vmem:[%s8258_s23 + $0x38] sm:$0xff] %v3954_v32  ;;  %v3694_v21 = vadd.f32 %v3693_v40, %v3605_v58 }
 0x500   : > { %4388 = vmatmul.msk.bf16.gmra.mxu2 %vm1395_vm4, %v3839_v12 }
 0x501   : > { %v3780_v23 = vpop.f32.mrf.mxu3 }
 0x502   : > { %v3781_v24 = vadd.f32 %v3780_v23, %v3692_v41 }
 0x503   : > { %v3607_v49 = vpop.f32.mrf.mxu0  ;;  %v3956_v39 = vpop.f32.mrf.mxu2 }
 0x504   : > { %v3957_v47 = vadd.f32 %v8251_v30, %v3956_v39  ;;  %v3821_v2 = vmax.f32 %v3781_v24, 0.0  ;;  %v3608_v60 = vadd.f32 %v3607_v49, %v8217_v9  ;;  %v3703_v50 = vpop.f32.mrf.mxu1 }
 0x506   : > { %4024 = vst [vmem:[%s8258_s23 + $0x40] sm:$0xff] %v3957_v47  ;;  %v3697_v42 = vadd.f32 %v3696_v43, %v3608_v60 }
 0x509   : > { %v3782_v7 = vpop.f32.mrf.mxu3 }
 0x50a   : > { %v3783_v29 = vadd.f32 %v3782_v7, %v3694_v21 }
 0x50b   : > { %v3958_v54 = vpop.f32.mrf.mxu2  ;;  %v3609_v3 = vpop.f32.mrf.mxu0 }
 0x50c   : > { %v3822_v22 = vmax.f32 %v3783_v29, 0.0  ;;  %v3959_v56 = vadd.f32 %v8251_v30, %v3958_v54  ;;  %v3610_v48 = vadd.f32 %v3609_v3, %v8227_v62 }
 0x50e   : > { %v3840_v61 = vpack.c.bf16 %v3822_v22, %v3821_v2  ;;  %4025 = vst [vmem:[%s8258_s23 + $0x48] sm:$0xff] %v3959_v56  ;;  %v3699_v31 = vadd.f32 %v3698_v26, %v3610_v48 }
 0x510   : > { %4389 = vmatmul.msk.bf16.gmra.mxu2 %vm1395_vm4, %v3840_v61 }
 0x511   : > { %v3785_v14 = vpop.f32.mrf.mxu3 }
 0x512   : > { %v3786_v34 = vadd.f32 %v3785_v14, %v3697_v42 }
 0x513   : > { %v3961_v53 = vpop.f32.mrf.mxu2  ;;  %v3612_v28 = vpop.f32.mrf.mxu0 }
 0x514   : > { %v3962_v13 = vadd.f32 %v8251_v30, %v3961_v53  ;;  %v3823_v1 = vmax.f32 %v3786_v34, 0.0  ;;  %v3613_v45 = vadd.f32 %v3612_v28, %v8233_v25 }
 0x516   : > { %4026 = vst [vmem:[%s8258_s23 + $0x50] sm:$0xff] %v3962_v13  ;;  %v3702_v51 = vadd.f32 %v3701_v55, %v3613_v45 }
 0x519   : > { %v3787_v6 = vpop.f32.mrf.mxu3 }
 0x51a   : > { %v3788_v63 = vadd.f32 %v3787_v6, %v3699_v31 }
 0x51b   : > { %v3963_v35 = vpop.f32.mrf.mxu2  ;;  %v3614_v62 = vpop.f32.mrf.mxu0 }
 0x51c   : > { %v3824_v16 = vmax.f32 %v3788_v63, 0.0  ;;  %v3964_v9 = vadd.f32 %v8251_v30, %v3963_v35  ;;  %v3615_v27 = vadd.f32 %v3614_v62, %v8242_v11 }
 0x51e   : > { %v3841_v15 = vpack.c.bf16 %v3824_v16, %v3823_v1  ;;  %4027 = vst [vmem:[%s8258_s23 + $0x58] sm:$0xff] %v3964_v9  ;;  %v3704_v38 = vadd.f32 %v3703_v50, %v3615_v27 }
 0x520   : > { %4390 = vmatmul.msk.bf16.gmra.mxu2 %vm1395_vm4, %v3841_v15 }
 0x521   : > { %v3790_v37 = vpop.f32.mrf.mxu3 }
 0x522   : > { %v3791_v36 = vadd.f32 %v3790_v37, %v3702_v51 }
 0x523   : > { %v3966_v0 = vpop.f32.mrf.mxu2 }
 0x524   : > { %v3967_v10 = vadd.f32 %v8251_v30, %v3966_v0  ;;  %v3825_v8 = vmax.f32 %v3791_v36, 0.0 }
 0x526   : > { %4028 = vst [vmem:[%s8258_s23 + $0x60] sm:$0xff] %v3967_v10 }
 0x529   : > { %v3792_v19 = vpop.f32.mrf.mxu3 }
 0x52a   : > { %v3793_v18 = vadd.f32 %v3792_v19, %v3704_v38 }
 0x52b   : > { %v3968_v5 = vpop.f32.mrf.mxu2 }
 0x52c   : > { %v3826_v20 = vmax.f32 %v3793_v18, 0.0  ;;  %v3969_v25 = vadd.f32 %v8251_v30, %v3968_v5 }
 0x52e   : > { %v3842_v57 = vpack.c.bf16 %v3826_v20, %v3825_v8  ;;  %4029 = vst [vmem:[%s8258_s23 + $0x68] sm:$0xff] %v3969_v25 }
 0x530   : > { %4391 = vmatmul.msk.bf16.gmra.mxu2 %vm1395_vm4, %v3842_v57 }
 0x533   : > { %v3971_v11 = vpop.f32.mrf.mxu2 }
 0x534   : > { %v3972_v17 = vadd.f32 %v8251_v30, %v3971_v11 }
 0x536   : > { %4030 = vst [vmem:[%s8258_s23 + $0x70] sm:$0xff] %v3972_v17 }
 0x53b   : > { %v3973_v44 = vpop.f32.mrf.mxu2 }
 0x53c   : > { %v3974_v46 = vadd.f32 %v8251_v30, %v3973_v44 }
 0x53e   : > { %4031 = vst [vmem:[%s8258_s23 + $0x78] sm:$0xff] %v3974_v46 }
 0x543   : > { %v3976_v33 = vpop.f32.mrf.mxu2 }
 0x544   : > { %v3977_v32 = vadd.f32 %v8251_v30, %v3976_v33 }
 0x546   : > { %4032 = vst [vmem:[%s8258_s23 + $0x80] sm:$0xff] %v3977_v32 }
 0x54b   : > { %v3978_v12 = vpop.f32.mrf.mxu2 }
 0x54c   : > { %v3979_v59 = vadd.f32 %v8251_v30, %v3978_v12 }
 0x54e   : > { %4033 = vst [vmem:[%s8258_s23 + $0x88] sm:$0xff] %v3979_v59 }
 0x553   : > { %v3981_v40 = vpop.f32.mrf.mxu2 }
 0x554   : > { %v3982_v23 = vadd.f32 %v8251_v30, %v3981_v40 }
 0x556   : > { %4034 = vst [vmem:[%s8258_s23 + $0x90] sm:$0xff] %v3982_v23 }
 0x55b   : > { %v3983_v52 = vpop.f32.mrf.mxu2 }
 0x55c   : > { %v3984_v4 = vadd.f32 %v8251_v30, %v3983_v52 }
 0x55e   : > { %4035 = vst [vmem:[%s8258_s23 + $0x98] sm:$0xff] %v3984_v4 }
 0x563   : > { %v3986_v49 = vpop.f32.mrf.mxu2 }
 0x564   : > { %v3987_v39 = vadd.f32 %v8251_v30, %v3986_v49 }
 0x566   : > { %4036 = vst [vmem:[%s8258_s23 + $0xa0] sm:$0xff] %v3987_v39 }
 0x56b   : > { %v3988_v58 = vpop.f32.mrf.mxu2 }
 0x56c   : > { %v3989_v47 = vadd.f32 %v8251_v30, %v3988_v58 }
 0x56e   : > { %4037 = vst [vmem:[%s8258_s23 + $0xa8] sm:$0xff] %v3989_v47 }
 0x573   : > { %v3991_v41 = vpop.f32.mrf.mxu2 }
 0x574   : > { %v3992_v24 = vadd.f32 %v8251_v30, %v3991_v41 }
 0x576   : > { %4038 = vst [vmem:[%s8258_s23 + $0xb0] sm:$0xff] %v3992_v24 }
 0x57b   : > { %v3993_v21 = vpop.f32.mrf.mxu2 }
 0x57c   : > { %v3994_v43 = vadd.f32 %v8251_v30, %v3993_v21 }
 0x57e   : > { %4039 = vst [vmem:[%s8258_s23 + $0xb8] sm:$0xff] %v3994_v43 }
 0x583   : > { %v3996_v7 = vpop.f32.mrf.mxu2 }
 0x584   : > { %v3997_v29 = vadd.f32 %v8251_v30, %v3996_v7 }
 0x586   : > { %4040 = vst [vmem:[%s8258_s23 + $0xc0] sm:$0xff] %v3997_v29 }
 0x58b   : > { %v3998_v54 = vpop.f32.mrf.mxu2 }
 0x58c   : > { %v3999_v2 = vadd.f32 %v8251_v30, %v3998_v54 }
 0x58e   : > { %4041 = vst [vmem:[%s8258_s23 + $0xc8] sm:$0xff] %v3999_v2 }
 0x593   : > { %v4001_v22 = vpop.f32.mrf.mxu2 }
 0x594   : > { %v4002_v56 = vadd.f32 %v8251_v30, %v4001_v22 }
 0x596   : > { %4042 = vst [vmem:[%s8258_s23 + $0xd0] sm:$0xff] %v4002_v56 }
 0x59b   : > { %v4003_v3 = vpop.f32.mrf.mxu2 }
 0x59c   : > { %v4004_v61 = vadd.f32 %v8251_v30, %v4003_v3 }
 0x59e   : > { %4043 = vst [vmem:[%s8258_s23 + $0xd8] sm:$0xff] %v4004_v61 }
 0x5a3   : > { %v4006_v14 = vpop.f32.mrf.mxu2 }
 0x5a4   : > { %v4007_v60 = vadd.f32 %v8251_v30, %v4006_v14 }
 0x5a6   : > { %4044 = vst [vmem:[%s8258_s23 + $0xe0] sm:$0xff] %v4007_v60 }
 0x5ab   : > { %v4008_v26 = vpop.f32.mrf.mxu2 }
 0x5ac   : > { %v4009_v53 = vadd.f32 %v8251_v30, %v4008_v26 }
 0x5ae   : > { %4045 = vst [vmem:[%s8258_s23 + $0xe8] sm:$0xff] %v4009_v53 }
 0x5b3   : > { %v4011_v48 = vpop.f32.mrf.mxu2 }
 0x5b4   : > { %v4012_v13 = vadd.f32 %v8251_v30, %v4011_v48 }
 0x5b6   : > { %4046 = vst [vmem:[%s8258_s23 + $0xf0] sm:$0xff] %v4012_v13 }
 0x5bb   : > { %v4013_v42 = vpop.f32.mrf.mxu2 }
 0x5bc   : > { %v4014_v28 = vadd.f32 %v8251_v30, %v4013_v42 }
 0x5be   : > { %4047 = vst [vmem:[%s8258_s23 + $0xf8] sm:$0xff] %v4014_v28 }
 0x5bf PF: > { %s17_s24 = sadd.s32 1, %s5337_s24  }
 0x5c0   : > { %p14_p4 = scmp.ge.s32.totalorder %s17_s24, 4  }
 0x5c2   :  { %16 = sbr.rel (!%p14_p4) target bundleno = 1 (0x1), region = 80 }

</bundles_post_ra>
